<compile_context>
chip_gen: v7x
topology: tpu7x:2x2x1
jax: 0.10.0
libtpu: 0.0.40
codegen_flags: <defaults>
</compile_context>

<pallas_src>
import jax
import jax.numpy as jnp
from jax.experimental import pallas as pl
from jax.experimental.pallas import tpu as pltpu


LANE = 128        # lane-dense padding for channel / feature dims
HID1_PAD = 384    # 300 -> 3*128
KSIZE = 7
STRIDE = 2
PAD = 1


def _round_up(x, m):
    return (x + m - 1) // m * m


def _conv_out_len(l):
    return (l + 2 * PAD - KSIZE) // STRIDE + 1


# ----------------------------------------------------------------------------
# Fused kernel
# ----------------------------------------------------------------------------

def _make_kernel(l_outs, num_classes):
    l1, l2, l3, l4 = l_outs

    def kernel(x_ref, w1, s1, t1, w2, s2, t2, w3, s3, t3, w4, s4, t4,
               l1w, l1b, l2w, l2b, l3w, l3b, o_ref, scr):
        # Stage the pre-padded layer-1 input (zeros in pad rows / pad lanes)
        # into the activation scratch with one dense, aligned store.
        scr[...] = x_ref[0]

        def conv_bn_relu(w_ref, sc_ref, sh_ref, l_out):
            # out[l, co] = relu( (sum_k x_pad[2l+k, :] @ W_k) * scale + shift )
            xs = scr[pl.ds(0, l_out, stride=STRIDE), :]
            acc = jnp.dot(xs, w_ref[0], preferred_element_type=jnp.float32)
            for k in range(1, KSIZE):                      # static unroll
                xs = scr[pl.ds(k, l_out, stride=STRIDE), :]
                acc = acc + jnp.dot(xs, w_ref[k],
                                    preferred_element_type=jnp.float32)
            return jnp.maximum(acc * sc_ref[...] + sh_ref[...], 0.0)

        h = conv_bn_relu(w1, s1, t1, l1)          # (l1, 128)
        scr[pl.ds(1, l1), :] = h                  # row 0 stays the zero pad
        h = conv_bn_relu(w2, s2, t2, l2)          # (l2, 128)
        scr[pl.ds(1, l2), :] = h
        h = conv_bn_relu(w3, s3, t3, l3)          # (l3, 128)
        scr[pl.ds(1, l3), :] = h
        h = conv_bn_relu(w4, s4, t4, l4)          # (l4, 128); Dropout = identity

        # linear1: PyTorch (N, C, L) channel-major flatten folded into l1w
        y = jnp.dot(h[0:1, :], l1w[0], preferred_element_type=jnp.float32)
        for l in range(1, l4):
            y = y + jnp.dot(h[l:l + 1, :], l1w[l],
                            preferred_element_type=jnp.float32)
        y = jnp.maximum(y + l1b[...], 0.0)                                # (1, 384)

        # linear2 + ReLU
        y = jnp.maximum(
            jnp.dot(y, l2w[...], preferred_element_type=jnp.float32) + l2b[...],
            0.0)                                                          # (1, 128)

        # linear3 + masked softmax over the first num_classes lanes
        logits = jnp.dot(y, l3w[...],
                         preferred_element_type=jnp.float32) + l3b[...]   # (1, 128)
        col = jax.lax.broadcasted_iota(jnp.int32, logits.shape, 1)
        valid = col < num_classes
        logits = jnp.where(valid, logits, jnp.full_like(logits, -1e30))
        m = jnp.max(logits, axis=-1, keepdims=True)
        e = jnp.exp(logits - m) * valid.astype(jnp.float32)
        denom = jnp.sum(e, axis=-1, keepdims=True)
        r = pl.reciprocal(denom, approx=True)
        r = r * (2.0 - denom * r)                 # one Newton step for accuracy
        o_ref[0] = e * r

    return kernel


# ----------------------------------------------------------------------------
# Forward-pass builder (single jitted function wrapping one pallas_call)
# ----------------------------------------------------------------------------

def build_cnn_forward(num_classes, l_in, batch):
    ls = []
    l = l_in
    for _ in range(4):
        l = _conv_out_len(l)
        ls.append(l)
    l1, l2, l3, l4 = ls
    assert l4 == 8, "input length must make the conv stack produce L=8 (64*8=512)"

    scr_rows = _round_up(l_in + 2 * PAD, 8)       # padded layer-1 length
    kernel = _make_kernel((l1, l2, l3, l4), num_classes)

    def full(shape):
        return pl.BlockSpec(shape, lambda b, _n=len(shape): (0,) * _n)

    in_specs = [pl.BlockSpec((1, scr_rows, LANE), lambda b: (b, 0, 0))]
    for _ in range(4):
        in_specs += [full((KSIZE, LANE, LANE)), full((1, LANE)), full((1, LANE))]
    in_specs += [full((l4, LANE, HID1_PAD)), full((1, HID1_PAD)),
                 full((HID1_PAD, LANE)), full((1, LANE)),
                 full((LANE, LANE)), full((1, LANE))]

    call = pl.pallas_call(
        kernel,
        out_shape=jax.ShapeDtypeStruct((batch, 1, LANE), jnp.float32),
        grid=(batch,),
        in_specs=in_specs,
        out_specs=pl.BlockSpec((1, 1, LANE), lambda b: (b, 0, 0)),
        scratch_shapes=[pltpu.VMEM((scr_rows, LANE), jnp.float32)],
        compiler_params=pltpu.CompilerParams(
            dimension_semantics=("parallel",)),
    )

    @jax.jit
    def forward(x_ncl, pp):
        # x_ncl: (N, 1, L) like PyTorch Conv1d input
        x = jnp.transpose(x_ncl, (0, 2, 1)).astype(jnp.float32)     # (N, L, 1)
        # conv zero-padding (left=1, rest of rows) + lane padding 1 -> 128
        x = jnp.pad(x, ((0, 0), (PAD, scr_rows - l_in - PAD), (0, LANE - 1)))
        out = call(
            x,
            pp["w1"], pp["s1"], pp["t1"],
            pp["w2"], pp["s2"], pp["t2"],
            pp["w3"], pp["s3"], pp["t3"],
            pp["w4"], pp["s4"], pp["t4"],
            pp["l1w"], pp["l1b"], pp["l2w"], pp["l2b"], pp["l3w"], pp["l3b"],
        )
        return out[:, 0, :num_classes]

    return forward


# ----------------------------------------------------------------------------
# Parameters: raw (PyTorch-shaped) init + one-time prep (pad / fold / permute)
# ----------------------------------------------------------------------------

def init_params(key, num_classes):
    def nrm(k, shape, s=0.1):
        return s * jax.random.normal(k, shape, jnp.float32)

    keys = jax.random.split(key, 32)
    ki = iter(keys)
    p = {}
    conv_shapes = [(32, 1, 7), (64, 32, 7), (64, 64, 7), (64, 64, 7)]
    for li, (co, ci, k) in enumerate(conv_shapes, start=1):
        p[f"conv{li}_w"] = nrm(next(ki), (co, ci, k))
        p[f"conv{li}_b"] = nrm(next(ki), (co,))
        p[f"bn{li}_gamma"] = 1.0 + 0.1 * jax.random.normal(next(ki), (co,), jnp.float32)
        p[f"bn{li}_beta"] = nrm(next(ki), (co,))
        p[f"bn{li}_mean"] = nrm(next(ki), (co,))
        p[f"bn{li}_var"] = jax.random.uniform(next(ki), (co,), jnp.float32, 0.5, 1.5)

    p["lin1_w"] = nrm(next(ki), (300, 64 * 8))
    p["lin1_b"] = nrm(next(ki), (300,))
    p["lin2_w"] = nrm(next(ki), (100, 300))
    p["lin2_b"] = nrm(next(ki), (100,))
    p["lin3_w"] = nrm(next(ki), (num_classes, 100))
    p["lin3_b"] = nrm(next(ki), (num_classes,))
    return p


def prepare_params(p, num_classes, eps=1e-5):
    """One-time: transpose / lane-pad conv & linear weights, fold BN, fold flatten."""
    pp = {}
    for li in (1, 2, 3, 4):
        w = p[f"conv{li}_w"].astype(jnp.float32)            # (co, ci, K)
        co, ci, K = w.shape
        wk = jnp.transpose(w, (2, 1, 0))                    # (K, ci, co)
        pp[f"w{li}"] = (jnp.zeros((K, LANE, LANE), jnp.float32)
                        .at[:, :ci, :co].set(wk))
        scale = p[f"bn{li}_gamma"] / jnp.sqrt(p[f"bn{li}_var"] + eps)
        shift = (p[f"conv{li}_b"] - p[f"bn{li}_mean"]) * scale + p[f"bn{li}_beta"]
        pp[f"s{li}"] = jnp.zeros((1, LANE), jnp.float32).at[0, :co].set(scale)
        pp[f"t{li}"] = jnp.zeros((1, LANE), jnp.float32).at[0, :co].set(shift)

    # linear1: feature index is c*8 + l (PyTorch channel-major flatten)
    w1 = p["lin1_w"].astype(jnp.float32)                    # (300, 512)
    n1 = w1.shape[0]
    c_last, l_last = 64, w1.shape[1] // 64
    w1r = w1.reshape(n1, c_last, l_last)                    # [o, c, l]
    w1p = jnp.transpose(w1r, (2, 1, 0))                     # [l, c, o]
    pp["l1w"] = (jnp.zeros((l_last, LANE, HID1_PAD), jnp.float32)
                 .at[:, :c_last, :n1].set(w1p))
    pp["l1b"] = jnp.zeros((1, HID1_PAD), jnp.float32).at[0, :n1].set(p["lin1_b"])

    w2 = p["lin2_w"].astype(jnp.float32)                    # (100, 300)
    pp["l2w"] = (jnp.zeros((HID1_PAD, LANE), jnp.float32)
                 .at[:w2.shape[1], :w2.shape[0]].set(w2.T))
    pp["l2b"] = jnp.zeros((1, LANE), jnp.float32).at[0, :w2.shape[0]].set(p["lin2_b"])

    w3 = p["lin3_w"].astype(jnp.float32)                    # (nc, 100)
    pp["l3w"] = (jnp.zeros((LANE, LANE), jnp.float32)
                 .at[:w3.shape[1], :num_classes].set(w3.T))
    pp["l3b"] = jnp.zeros((1, LANE), jnp.float32).at[0, :num_classes].set(p["lin3_b"])
    return pp


# ----------------------------------------------------------------------------

if __name__ == "__main__":
    NUM_CLASSES = 10
    # L_in = 187 makes the conv stack produce L = 92 -> 44 -> 20 -> 8, so the
    # flattened feature size is 64*8 = 512 as linear1 requires.
    BATCH, C_IN, L_IN = 2, 1, 187

    key = jax.random.PRNGKey(0)
    k_x, k_p = jax.random.split(key)
    x = jax.random.normal(k_x, (BATCH, C_IN, L_IN), jnp.float32)

    raw = init_params(k_p, NUM_CLASSES)
    params = prepare_params(raw, NUM_CLASSES)        # one-time weight prep

    forward = build_cnn_forward(NUM_CLASSES, L_IN, BATCH)
    out = jax.block_until_ready(forward(x, params))

    assert out.shape == (BATCH, NUM_CLASSES)
    assert bool(jnp.all(jnp.isfinite(out)))
    # softmax rows sum to ~1 (approx reciprocal + Newton step)
    assert bool(jnp.all(jnp.abs(jnp.sum(out, axis=1) - 1.0) < 1e-3))

    print("KERNEL_OK")
</pallas_src>

<mosaic_0001>
module attributes {stable_mosaic.version = 11 : i64} {
  func.func @kernel(%arg0: i32, %arg1: memref<1x192x128xf32, #tpu.memory_space<vmem>>, %arg2: memref<7x128x128xf32, #tpu.memory_space<vmem>>, %arg3: memref<1x128xf32, #tpu.memory_space<vmem>>, %arg4: memref<1x128xf32, #tpu.memory_space<vmem>>, %arg5: memref<7x128x128xf32, #tpu.memory_space<vmem>>, %arg6: memref<1x128xf32, #tpu.memory_space<vmem>>, %arg7: memref<1x128xf32, #tpu.memory_space<vmem>>, %arg8: memref<7x128x128xf32, #tpu.memory_space<vmem>>, %arg9: memref<1x128xf32, #tpu.memory_space<vmem>>, %arg10: memref<1x128xf32, #tpu.memory_space<vmem>>, %arg11: memref<7x128x128xf32, #tpu.memory_space<vmem>>, %arg12: memref<1x128xf32, #tpu.memory_space<vmem>>, %arg13: memref<1x128xf32, #tpu.memory_space<vmem>>, %arg14: memref<8x128x384xf32, #tpu.memory_space<vmem>>, %arg15: memref<1x384xf32, #tpu.memory_space<vmem>>, %arg16: memref<384x128xf32, #tpu.memory_space<vmem>>, %arg17: memref<1x128xf32, #tpu.memory_space<vmem>>, %arg18: memref<128x128xf32, #tpu.memory_space<vmem>>, %arg19: memref<1x128xf32, #tpu.memory_space<vmem>>, %arg20: memref<1x1x128xf32, #tpu.memory_space<vmem>>, %arg21: memref<192x128xf32, #tpu.memory_space<vmem>>) attributes {dimension_semantics = [#tpu.dimension_semantics<parallel>], iteration_bounds = array<i64: 2>, scalar_prefetch = 0 : i64, scratch_operands = 1 : i64, tpu.core_type = #tpu.core_type<tc>, window_params = [{transform_indices = @transform_0, window_bounds = array<i64: 1, 192, 128>}, {pipeline_mode = #tpu.pipeline_mode<synchronous>, transform_indices = @transform_1, window_bounds = array<i64: 7, 128, 128>}, {pipeline_mode = #tpu.pipeline_mode<synchronous>, transform_indices = @transform_2, window_bounds = array<i64: 1, 128>}, {pipeline_mode = #tpu.pipeline_mode<synchronous>, transform_indices = @transform_3, window_bounds = array<i64: 1, 128>}, {pipeline_mode = #tpu.pipeline_mode<synchronous>, transform_indices = @transform_4, window_bounds = array<i64: 7, 128, 128>}, {pipeline_mode = #tpu.pipeline_mode<synchronous>, transform_indices = @transform_5, window_bounds = array<i64: 1, 128>}, {pipeline_mode = #tpu.pipeline_mode<synchronous>, transform_indices = @transform_6, window_bounds = array<i64: 1, 128>}, {pipeline_mode = #tpu.pipeline_mode<synchronous>, transform_indices = @transform_7, window_bounds = array<i64: 7, 128, 128>}, {pipeline_mode = #tpu.pipeline_mode<synchronous>, transform_indices = @transform_8, window_bounds = array<i64: 1, 128>}, {pipeline_mode = #tpu.pipeline_mode<synchronous>, transform_indices = @transform_9, window_bounds = array<i64: 1, 128>}, {pipeline_mode = #tpu.pipeline_mode<synchronous>, transform_indices = @transform_10, window_bounds = array<i64: 7, 128, 128>}, {pipeline_mode = #tpu.pipeline_mode<synchronous>, transform_indices = @transform_11, window_bounds = array<i64: 1, 128>}, {pipeline_mode = #tpu.pipeline_mode<synchronous>, transform_indices = @transform_12, window_bounds = array<i64: 1, 128>}, {pipeline_mode = #tpu.pipeline_mode<synchronous>, transform_indices = @transform_13, window_bounds = array<i64: 8, 128, 384>}, {pipeline_mode = #tpu.pipeline_mode<synchronous>, transform_indices = @transform_14, window_bounds = array<i64: 1, 384>}, {pipeline_mode = #tpu.pipeline_mode<synchronous>, transform_indices = @transform_15, window_bounds = array<i64: 384, 128>}, {pipeline_mode = #tpu.pipeline_mode<synchronous>, transform_indices = @transform_16, window_bounds = array<i64: 1, 128>}, {pipeline_mode = #tpu.pipeline_mode<synchronous>, transform_indices = @transform_17, window_bounds = array<i64: 128, 128>}, {pipeline_mode = #tpu.pipeline_mode<synchronous>, transform_indices = @transform_18, window_bounds = array<i64: 1, 128>}, {transform_indices = @transform_19, window_bounds = array<i64: 1, 1, 128>}]} {
    %c0 = arith.constant 0 : index
    %c0_0 = arith.constant 0 : index
    %c0_1 = arith.constant 0 : index
    %0 = vector.load %arg1[%c0, %c0_0, %c0_1] : memref<1x192x128xf32, #tpu.memory_space<vmem>>, vector<1x192x128xf32>
    %1 = vector.shape_cast %0 : vector<1x192x128xf32> to vector<192x128xf32>
    %c0_2 = arith.constant 0 : index
    %c0_3 = arith.constant 0 : index
    %2 = vector.load %arg21[%c0_2, %c0_3] : memref<192x128xf32, #tpu.memory_space<vmem>>, vector<192x128xf32>
    tpu.vector_store %arg21[%c0_2, %c0_3], %1 {strides = array<i32>} : memref<192x128xf32, #tpu.memory_space<vmem>>, vector<192x128xf32>,
    %c0_4 = arith.constant 0 : index
    %c0_5 = arith.constant 0 : index
    %3 = tpu.strided_load %arg21[%c0_4, %c0_5] {strides = array<i32: 2, 1>} : memref<192x128xf32, #tpu.memory_space<vmem>>, vector<92x128xf32>
    %c0_6 = arith.constant 0 : index
    %c0_7 = arith.constant 0 : index
    %c0_8 = arith.constant 0 : index
    %4 = vector.load %arg2[%c0_6, %c0_7, %c0_8] : memref<7x128x128xf32, #tpu.memory_space<vmem>>, vector<1x128x128xf32>
    %5 = vector.shape_cast %4 : vector<1x128x128xf32> to vector<128x128xf32>
    %cst = arith.constant dense<0.000000e+00> : vector<92x128xf32>
    %6 = tpu.matmul %3, %5, %cst {dimension_numbers = #tpu.dot_dimension_numbers<[1], [0], [0], [1], [0, 0, 1, 1], [], []>} : vector<92x128xf32>, vector<128x128xf32>, vector<92x128xf32> -> vector<92x128xf32>
    %c1 = arith.constant 1 : index
    %c0_9 = arith.constant 0 : index
    %7 = tpu.strided_load %arg21[%c1, %c0_9] {strides = array<i32: 2, 1>} : memref<192x128xf32, #tpu.memory_space<vmem>>, vector<92x128xf32>
    %c1_10 = arith.constant 1 : index
    %c0_11 = arith.constant 0 : index
    %c0_12 = arith.constant 0 : index
    %8 = vector.load %arg2[%c1_10, %c0_11, %c0_12] : memref<7x128x128xf32, #tpu.memory_space<vmem>>, vector<1x128x128xf32>
    %9 = vector.shape_cast %8 : vector<1x128x128xf32> to vector<128x128xf32>
    %cst_13 = arith.constant dense<0.000000e+00> : vector<92x128xf32>
    %10 = tpu.matmul %7, %9, %cst_13 {dimension_numbers = #tpu.dot_dimension_numbers<[1], [0], [0], [1], [0, 0, 1, 1], [], []>} : vector<92x128xf32>, vector<128x128xf32>, vector<92x128xf32> -> vector<92x128xf32>
    %11 = arith.addf %6, %10 : vector<92x128xf32>
    %c2 = arith.constant 2 : index
    %c0_14 = arith.constant 0 : index
    %12 = tpu.strided_load %arg21[%c2, %c0_14] {strides = array<i32: 2, 1>} : memref<192x128xf32, #tpu.memory_space<vmem>>, vector<92x128xf32>
    %c2_15 = arith.constant 2 : index
    %c0_16 = arith.constant 0 : index
    %c0_17 = arith.constant 0 : index
    %13 = vector.load %arg2[%c2_15, %c0_16, %c0_17] : memref<7x128x128xf32, #tpu.memory_space<vmem>>, vector<1x128x128xf32>
    %14 = vector.shape_cast %13 : vector<1x128x128xf32> to vector<128x128xf32>
    %cst_18 = arith.constant dense<0.000000e+00> : vector<92x128xf32>
    %15 = tpu.matmul %12, %14, %cst_18 {dimension_numbers = #tpu.dot_dimension_numbers<[1], [0], [0], [1], [0, 0, 1, 1], [], []>} : vector<92x128xf32>, vector<128x128xf32>, vector<92x128xf32> -> vector<92x128xf32>
    %16 = arith.addf %11, %15 : vector<92x128xf32>
    %c3 = arith.constant 3 : index
    %c0_19 = arith.constant 0 : index
    %17 = tpu.strided_load %arg21[%c3, %c0_19] {strides = array<i32: 2, 1>} : memref<192x128xf32, #tpu.memory_space<vmem>>, vector<92x128xf32>
    %c3_20 = arith.constant 3 : index
    %c0_21 = arith.constant 0 : index
    %c0_22 = arith.constant 0 : index
    %18 = vector.load %arg2[%c3_20, %c0_21, %c0_22] : memref<7x128x128xf32, #tpu.memory_space<vmem>>, vector<1x128x128xf32>
    %19 = vector.shape_cast %18 : vector<1x128x128xf32> to vector<128x128xf32>
    %cst_23 = arith.constant dense<0.000000e+00> : vector<92x128xf32>
    %20 = tpu.matmul %17, %19, %cst_23 {dimension_numbers = #tpu.dot_dimension_numbers<[1], [0], [0], [1], [0, 0, 1, 1], [], []>} : vector<92x128xf32>, vector<128x128xf32>, vector<92x128xf32> -> vector<92x128xf32>
    %21 = arith.addf %16, %20 : vector<92x128xf32>
    %c4 = arith.constant 4 : index
    %c0_24 = arith.constant 0 : index
    %22 = tpu.strided_load %arg21[%c4, %c0_24] {strides = array<i32: 2, 1>} : memref<192x128xf32, #tpu.memory_space<vmem>>, vector<92x128xf32>
    %c4_25 = arith.constant 4 : index
    %c0_26 = arith.constant 0 : index
    %c0_27 = arith.constant 0 : index
    %23 = vector.load %arg2[%c4_25, %c0_26, %c0_27] : memref<7x128x128xf32, #tpu.memory_space<vmem>>, vector<1x128x128xf32>
    %24 = vector.shape_cast %23 : vector<1x128x128xf32> to vector<128x128xf32>
    %cst_28 = arith.constant dense<0.000000e+00> : vector<92x128xf32>
    %25 = tpu.matmul %22, %24, %cst_28 {dimension_numbers = #tpu.dot_dimension_numbers<[1], [0], [0], [1], [0, 0, 1, 1], [], []>} : vector<92x128xf32>, vector<128x128xf32>, vector<92x128xf32> -> vector<92x128xf32>
    %26 = arith.addf %21, %25 : vector<92x128xf32>
    %c5 = arith.constant 5 : index
    %c0_29 = arith.constant 0 : index
    %27 = tpu.strided_load %arg21[%c5, %c0_29] {strides = array<i32: 2, 1>} : memref<192x128xf32, #tpu.memory_space<vmem>>, vector<92x128xf32>
    %c5_30 = arith.constant 5 : index
    %c0_31 = arith.constant 0 : index
    %c0_32 = arith.constant 0 : index
    %28 = vector.load %arg2[%c5_30, %c0_31, %c0_32] : memref<7x128x128xf32, #tpu.memory_space<vmem>>, vector<1x128x128xf32>
    %29 = vector.shape_cast %28 : vector<1x128x128xf32> to vector<128x128xf32>
    %cst_33 = arith.constant dense<0.000000e+00> : vector<92x128xf32>
    %30 = tpu.matmul %27, %29, %cst_33 {dimension_numbers = #tpu.dot_dimension_numbers<[1], [0], [0], [1], [0, 0, 1, 1], [], []>} : vector<92x128xf32>, vector<128x128xf32>, vector<92x128xf32> -> vector<92x128xf32>
    %31 = arith.addf %26, %30 : vector<92x128xf32>
    %c6 = arith.constant 6 : index
    %c0_34 = arith.constant 0 : index
    %32 = tpu.strided_load %arg21[%c6, %c0_34] {strides = array<i32: 2, 1>} : memref<192x128xf32, #tpu.memory_space<vmem>>, vector<92x128xf32>
    %c6_35 = arith.constant 6 : index
    %c0_36 = arith.constant 0 : index
    %c0_37 = arith.constant 0 : index
    %33 = vector.load %arg2[%c6_35, %c0_36, %c0_37] : memref<7x128x128xf32, #tpu.memory_space<vmem>>, vector<1x128x128xf32>
    %34 = vector.shape_cast %33 : vector<1x128x128xf32> to vector<128x128xf32>
    %cst_38 = arith.constant dense<0.000000e+00> : vector<92x128xf32>
    %35 = tpu.matmul %32, %34, %cst_38 {dimension_numbers = #tpu.dot_dimension_numbers<[1], [0], [0], [1], [0, 0, 1, 1], [], []>} : vector<92x128xf32>, vector<128x128xf32>, vector<92x128xf32> -> vector<92x128xf32>
    %36 = arith.addf %31, %35 : vector<92x128xf32>
    %c0_39 = arith.constant 0 : index
    %c0_40 = arith.constant 0 : index
    %37 = vector.load %arg3[%c0_39, %c0_40] : memref<1x128xf32, #tpu.memory_space<vmem>>, vector<1x128xf32>
    %38 = vector.broadcast %37 : vector<1x128xf32> to vector<92x128xf32>
    %39 = arith.mulf %36, %38 : vector<92x128xf32>
    %c0_41 = arith.constant 0 : index
    %c0_42 = arith.constant 0 : index
    %40 = vector.load %arg4[%c0_41, %c0_42] : memref<1x128xf32, #tpu.memory_space<vmem>>, vector<1x128xf32>
    %41 = vector.broadcast %40 : vector<1x128xf32> to vector<92x128xf32>
    %42 = arith.addf %39, %41 : vector<92x128xf32>
    %cst_43 = arith.constant 0.000000e+00 : f32
    %43 = vector.broadcast %cst_43 : f32 to vector<92x128xf32>
    %44 = arith.maximumf %42, %43 : vector<92x128xf32>
    %c1_44 = arith.constant 1 : index
    %c0_45 = arith.constant 0 : index
    %45 = vector.load %arg21[%c1_44, %c0_45] : memref<192x128xf32, #tpu.memory_space<vmem>>, vector<92x128xf32>
    tpu.vector_store %arg21[%c1_44, %c0_45], %44 {strides = array<i32>} : memref<192x128xf32, #tpu.memory_space<vmem>>, vector<92x128xf32>,
    %c0_46 = arith.constant 0 : index
    %c0_47 = arith.constant 0 : index
    %46 = tpu.strided_load %arg21[%c0_46, %c0_47] {strides = array<i32: 2, 1>} : memref<192x128xf32, #tpu.memory_space<vmem>>, vector<44x128xf32>
    %c0_48 = arith.constant 0 : index
    %c0_49 = arith.constant 0 : index
    %c0_50 = arith.constant 0 : index
    %47 = vector.load %arg5[%c0_48, %c0_49, %c0_50] : memref<7x128x128xf32, #tpu.memory_space<vmem>>, vector<1x128x128xf32>
    %48 = vector.shape_cast %47 : vector<1x128x128xf32> to vector<128x128xf32>
    %cst_51 = arith.constant dense<0.000000e+00> : vector<44x128xf32>
    %49 = tpu.matmul %46, %48, %cst_51 {dimension_numbers = #tpu.dot_dimension_numbers<[1], [0], [0], [1], [0, 0, 1, 1], [], []>} : vector<44x128xf32>, vector<128x128xf32>, vector<44x128xf32> -> vector<44x128xf32>
    %c1_52 = arith.constant 1 : index
    %c0_53 = arith.constant 0 : index
    %50 = tpu.strided_load %arg21[%c1_52, %c0_53] {strides = array<i32: 2, 1>} : memref<192x128xf32, #tpu.memory_space<vmem>>, vector<44x128xf32>
    %c1_54 = arith.constant 1 : index
    %c0_55 = arith.constant 0 : index
    %c0_56 = arith.constant 0 : index
    %51 = vector.load %arg5[%c1_54, %c0_55, %c0_56] : memref<7x128x128xf32, #tpu.memory_space<vmem>>, vector<1x128x128xf32>
    %52 = vector.shape_cast %51 : vector<1x128x128xf32> to vector<128x128xf32>
    %cst_57 = arith.constant dense<0.000000e+00> : vector<44x128xf32>
    %53 = tpu.matmul %50, %52, %cst_57 {dimension_numbers = #tpu.dot_dimension_numbers<[1], [0], [0], [1], [0, 0, 1, 1], [], []>} : vector<44x128xf32>, vector<128x128xf32>, vector<44x128xf32> -> vector<44x128xf32>
    %54 = arith.addf %49, %53 : vector<44x128xf32>
    %c2_58 = arith.constant 2 : index
    %c0_59 = arith.constant 0 : index
    %55 = tpu.strided_load %arg21[%c2_58, %c0_59] {strides = array<i32: 2, 1>} : memref<192x128xf32, #tpu.memory_space<vmem>>, vector<44x128xf32>
    %c2_60 = arith.constant 2 : index
    %c0_61 = arith.constant 0 : index
    %c0_62 = arith.constant 0 : index
    %56 = vector.load %arg5[%c2_60, %c0_61, %c0_62] : memref<7x128x128xf32, #tpu.memory_space<vmem>>, vector<1x128x128xf32>
    %57 = vector.shape_cast %56 : vector<1x128x128xf32> to vector<128x128xf32>
    %cst_63 = arith.constant dense<0.000000e+00> : vector<44x128xf32>
    %58 = tpu.matmul %55, %57, %cst_63 {dimension_numbers = #tpu.dot_dimension_numbers<[1], [0], [0], [1], [0, 0, 1, 1], [], []>} : vector<44x128xf32>, vector<128x128xf32>, vector<44x128xf32> -> vector<44x128xf32>
    %59 = arith.addf %54, %58 : vector<44x128xf32>
    %c3_64 = arith.constant 3 : index
    %c0_65 = arith.constant 0 : index
    %60 = tpu.strided_load %arg21[%c3_64, %c0_65] {strides = array<i32: 2, 1>} : memref<192x128xf32, #tpu.memory_space<vmem>>, vector<44x128xf32>
    %c3_66 = arith.constant 3 : index
    %c0_67 = arith.constant 0 : index
    %c0_68 = arith.constant 0 : index
    %61 = vector.load %arg5[%c3_66, %c0_67, %c0_68] : memref<7x128x128xf32, #tpu.memory_space<vmem>>, vector<1x128x128xf32>
    %62 = vector.shape_cast %61 : vector<1x128x128xf32> to vector<128x128xf32>
    %cst_69 = arith.constant dense<0.000000e+00> : vector<44x128xf32>
    %63 = tpu.matmul %60, %62, %cst_69 {dimension_numbers = #tpu.dot_dimension_numbers<[1], [0], [0], [1], [0, 0, 1, 1], [], []>} : vector<44x128xf32>, vector<128x128xf32>, vector<44x128xf32> -> vector<44x128xf32>
    %64 = arith.addf %59, %63 : vector<44x128xf32>
    %c4_70 = arith.constant 4 : index
    %c0_71 = arith.constant 0 : index
    %65 = tpu.strided_load %arg21[%c4_70, %c0_71] {strides = array<i32: 2, 1>} : memref<192x128xf32, #tpu.memory_space<vmem>>, vector<44x128xf32>
    %c4_72 = arith.constant 4 : index
    %c0_73 = arith.constant 0 : index
    %c0_74 = arith.constant 0 : index
    %66 = vector.load %arg5[%c4_72, %c0_73, %c0_74] : memref<7x128x128xf32, #tpu.memory_space<vmem>>, vector<1x128x128xf32>
    %67 = vector.shape_cast %66 : vector<1x128x128xf32> to vector<128x128xf32>
    %cst_75 = arith.constant dense<0.000000e+00> : vector<44x128xf32>
    %68 = tpu.matmul %65, %67, %cst_75 {dimension_numbers = #tpu.dot_dimension_numbers<[1], [0], [0], [1], [0, 0, 1, 1], [], []>} : vector<44x128xf32>, vector<128x128xf32>, vector<44x128xf32> -> vector<44x128xf32>
    %69 = arith.addf %64, %68 : vector<44x128xf32>
    %c5_76 = arith.constant 5 : index
    %c0_77 = arith.constant 0 : index
    %70 = tpu.strided_load %arg21[%c5_76, %c0_77] {strides = array<i32: 2, 1>} : memref<192x128xf32, #tpu.memory_space<vmem>>, vector<44x128xf32>
    %c5_78 = arith.constant 5 : index
    %c0_79 = arith.constant 0 : index
    %c0_80 = arith.constant 0 : index
    %71 = vector.load %arg5[%c5_78, %c0_79, %c0_80] : memref<7x128x128xf32, #tpu.memory_space<vmem>>, vector<1x128x128xf32>
    %72 = vector.shape_cast %71 : vector<1x128x128xf32> to vector<128x128xf32>
    %cst_81 = arith.constant dense<0.000000e+00> : vector<44x128xf32>
    %73 = tpu.matmul %70, %72, %cst_81 {dimension_numbers = #tpu.dot_dimension_numbers<[1], [0], [0], [1], [0, 0, 1, 1], [], []>} : vector<44x128xf32>, vector<128x128xf32>, vector<44x128xf32> -> vector<44x128xf32>
    %74 = arith.addf %69, %73 : vector<44x128xf32>
    %c6_82 = arith.constant 6 : index
    %c0_83 = arith.constant 0 : index
    %75 = tpu.strided_load %arg21[%c6_82, %c0_83] {strides = array<i32: 2, 1>} : memref<192x128xf32, #tpu.memory_space<vmem>>, vector<44x128xf32>
    %c6_84 = arith.constant 6 : index
    %c0_85 = arith.constant 0 : index
    %c0_86 = arith.constant 0 : index
    %76 = vector.load %arg5[%c6_84, %c0_85, %c0_86] : memref<7x128x128xf32, #tpu.memory_space<vmem>>, vector<1x128x128xf32>
    %77 = vector.shape_cast %76 : vector<1x128x128xf32> to vector<128x128xf32>
    %cst_87 = arith.constant dense<0.000000e+00> : vector<44x128xf32>
    %78 = tpu.matmul %75, %77, %cst_87 {dimension_numbers = #tpu.dot_dimension_numbers<[1], [0], [0], [1], [0, 0, 1, 1], [], []>} : vector<44x128xf32>, vector<128x128xf32>, vector<44x128xf32> -> vector<44x128xf32>
    %79 = arith.addf %74, %78 : vector<44x128xf32>
    %c0_88 = arith.constant 0 : index
    %c0_89 = arith.constant 0 : index
    %80 = vector.load %arg6[%c0_88, %c0_89] : memref<1x128xf32, #tpu.memory_space<vmem>>, vector<1x128xf32>
    %81 = vector.broadcast %80 : vector<1x128xf32> to vector<44x128xf32>
    %82 = arith.mulf %79, %81 : vector<44x128xf32>
    %c0_90 = arith.constant 0 : index
    %c0_91 = arith.constant 0 : index
    %83 = vector.load %arg7[%c0_90, %c0_91] : memref<1x128xf32, #tpu.memory_space<vmem>>, vector<1x128xf32>
    %84 = vector.broadcast %83 : vector<1x128xf32> to vector<44x128xf32>
    %85 = arith.addf %82, %84 : vector<44x128xf32>
    %cst_92 = arith.constant 0.000000e+00 : f32
    %86 = vector.broadcast %cst_92 : f32 to vector<44x128xf32>
    %87 = arith.maximumf %85, %86 : vector<44x128xf32>
    %c1_93 = arith.constant 1 : index
    %c0_94 = arith.constant 0 : index
    %88 = vector.load %arg21[%c1_93, %c0_94] : memref<192x128xf32, #tpu.memory_space<vmem>>, vector<44x128xf32>
    tpu.vector_store %arg21[%c1_93, %c0_94], %87 {strides = array<i32>} : memref<192x128xf32, #tpu.memory_space<vmem>>, vector<44x128xf32>,
    %c0_95 = arith.constant 0 : index
    %c0_96 = arith.constant 0 : index
    %89 = tpu.strided_load %arg21[%c0_95, %c0_96] {strides = array<i32: 2, 1>} : memref<192x128xf32, #tpu.memory_space<vmem>>, vector<20x128xf32>
    %c0_97 = arith.constant 0 : index
    %c0_98 = arith.constant 0 : index
    %c0_99 = arith.constant 0 : index
    %90 = vector.load %arg8[%c0_97, %c0_98, %c0_99] : memref<7x128x128xf32, #tpu.memory_space<vmem>>, vector<1x128x128xf32>
    %91 = vector.shape_cast %90 : vector<1x128x128xf32> to vector<128x128xf32>
    %cst_100 = arith.constant dense<0.000000e+00> : vector<20x128xf32>
    %92 = tpu.matmul %89, %91, %cst_100 {dimension_numbers = #tpu.dot_dimension_numbers<[1], [0], [0], [1], [0, 0, 1, 1], [], []>} : vector<20x128xf32>, vector<128x128xf32>, vector<20x128xf32> -> vector<20x128xf32>
    %c1_101 = arith.constant 1 : index
    %c0_102 = arith.constant 0 : index
    %93 = tpu.strided_load %arg21[%c1_101, %c0_102] {strides = array<i32: 2, 1>} : memref<192x128xf32, #tpu.memory_space<vmem>>, vector<20x128xf32>
    %c1_103 = arith.constant 1 : index
    %c0_104 = arith.constant 0 : index
    %c0_105 = arith.constant 0 : index
    %94 = vector.load %arg8[%c1_103, %c0_104, %c0_105] : memref<7x128x128xf32, #tpu.memory_space<vmem>>, vector<1x128x128xf32>
    %95 = vector.shape_cast %94 : vector<1x128x128xf32> to vector<128x128xf32>
    %cst_106 = arith.constant dense<0.000000e+00> : vector<20x128xf32>
    %96 = tpu.matmul %93, %95, %cst_106 {dimension_numbers = #tpu.dot_dimension_numbers<[1], [0], [0], [1], [0, 0, 1, 1], [], []>} : vector<20x128xf32>, vector<128x128xf32>, vector<20x128xf32> -> vector<20x128xf32>
    %97 = arith.addf %92, %96 : vector<20x128xf32>
    %c2_107 = arith.constant 2 : index
    %c0_108 = arith.constant 0 : index
    %98 = tpu.strided_load %arg21[%c2_107, %c0_108] {strides = array<i32: 2, 1>} : memref<192x128xf32, #tpu.memory_space<vmem>>, vector<20x128xf32>
    %c2_109 = arith.constant 2 : index
    %c0_110 = arith.constant 0 : index
    %c0_111 = arith.constant 0 : index
    %99 = vector.load %arg8[%c2_109, %c0_110, %c0_111] : memref<7x128x128xf32, #tpu.memory_space<vmem>>, vector<1x128x128xf32>
    %100 = vector.shape_cast %99 : vector<1x128x128xf32> to vector<128x128xf32>
    %cst_112 = arith.constant dense<0.000000e+00> : vector<20x128xf32>
    %101 = tpu.matmul %98, %100, %cst_112 {dimension_numbers = #tpu.dot_dimension_numbers<[1], [0], [0], [1], [0, 0, 1, 1], [], []>} : vector<20x128xf32>, vector<128x128xf32>, vector<20x128xf32> -> vector<20x128xf32>
    %102 = arith.addf %97, %101 : vector<20x128xf32>
    %c3_113 = arith.constant 3 : index
    %c0_114 = arith.constant 0 : index
    %103 = tpu.strided_load %arg21[%c3_113, %c0_114] {strides = array<i32: 2, 1>} : memref<192x128xf32, #tpu.memory_space<vmem>>, vector<20x128xf32>
    %c3_115 = arith.constant 3 : index
    %c0_116 = arith.constant 0 : index
    %c0_117 = arith.constant 0 : index
    %104 = vector.load %arg8[%c3_115, %c0_116, %c0_117] : memref<7x128x128xf32, #tpu.memory_space<vmem>>, vector<1x128x128xf32>
    %105 = vector.shape_cast %104 : vector<1x128x128xf32> to vector<128x128xf32>
    %cst_118 = arith.constant dense<0.000000e+00> : vector<20x128xf32>
    %106 = tpu.matmul %103, %105, %cst_118 {dimension_numbers = #tpu.dot_dimension_numbers<[1], [0], [0], [1], [0, 0, 1, 1], [], []>} : vector<20x128xf32>, vector<128x128xf32>, vector<20x128xf32> -> vector<20x128xf32>
    %107 = arith.addf %102, %106 : vector<20x128xf32>
    %c4_119 = arith.constant 4 : index
    %c0_120 = arith.constant 0 : index
    %108 = tpu.strided_load %arg21[%c4_119, %c0_120] {strides = array<i32: 2, 1>} : memref<192x128xf32, #tpu.memory_space<vmem>>, vector<20x128xf32>
    %c4_121 = arith.constant 4 : index
    %c0_122 = arith.constant 0 : index
    %c0_123 = arith.constant 0 : index
    %109 = vector.load %arg8[%c4_121, %c0_122, %c0_123] : memref<7x128x128xf32, #tpu.memory_space<vmem>>, vector<1x128x128xf32>
    %110 = vector.shape_cast %109 : vector<1x128x128xf32> to vector<128x128xf32>
    %cst_124 = arith.constant dense<0.000000e+00> : vector<20x128xf32>
    %111 = tpu.matmul %108, %110, %cst_124 {dimension_numbers = #tpu.dot_dimension_numbers<[1], [0], [0], [1], [0, 0, 1, 1], [], []>} : vector<20x128xf32>, vector<128x128xf32>, vector<20x128xf32> -> vector<20x128xf32>
    %112 = arith.addf %107, %111 : vector<20x128xf32>
    %c5_125 = arith.constant 5 : index
    %c0_126 = arith.constant 0 : index
    %113 = tpu.strided_load %arg21[%c5_125, %c0_126] {strides = array<i32: 2, 1>} : memref<192x128xf32, #tpu.memory_space<vmem>>, vector<20x128xf32>
    %c5_127 = arith.constant 5 : index
    %c0_128 = arith.constant 0 : index
    %c0_129 = arith.constant 0 : index
    %114 = vector.load %arg8[%c5_127, %c0_128, %c0_129] : memref<7x128x128xf32, #tpu.memory_space<vmem>>, vector<1x128x128xf32>
    %115 = vector.shape_cast %114 : vector<1x128x128xf32> to vector<128x128xf32>
    %cst_130 = arith.constant dense<0.000000e+00> : vector<20x128xf32>
    %116 = tpu.matmul %113, %115, %cst_130 {dimension_numbers = #tpu.dot_dimension_numbers<[1], [0], [0], [1], [0, 0, 1, 1], [], []>} : vector<20x128xf32>, vector<128x128xf32>, vector<20x128xf32> -> vector<20x128xf32>
    %117 = arith.addf %112, %116 : vector<20x128xf32>
    %c6_131 = arith.constant 6 : index
    %c0_132 = arith.constant 0 : index
    %118 = tpu.strided_load %arg21[%c6_131, %c0_132] {strides = array<i32: 2, 1>} : memref<192x128xf32, #tpu.memory_space<vmem>>, vector<20x128xf32>
    %c6_133 = arith.constant 6 : index
    %c0_134 = arith.constant 0 : index
    %c0_135 = arith.constant 0 : index
    %119 = vector.load %arg8[%c6_133, %c0_134, %c0_135] : memref<7x128x128xf32, #tpu.memory_space<vmem>>, vector<1x128x128xf32>
    %120 = vector.shape_cast %119 : vector<1x128x128xf32> to vector<128x128xf32>
    %cst_136 = arith.constant dense<0.000000e+00> : vector<20x128xf32>
    %121 = tpu.matmul %118, %120, %cst_136 {dimension_numbers = #tpu.dot_dimension_numbers<[1], [0], [0], [1], [0, 0, 1, 1], [], []>} : vector<20x128xf32>, vector<128x128xf32>, vector<20x128xf32> -> vector<20x128xf32>
    %122 = arith.addf %117, %121 : vector<20x128xf32>
    %c0_137 = arith.constant 0 : index
    %c0_138 = arith.constant 0 : index
    %123 = vector.load %arg9[%c0_137, %c0_138] : memref<1x128xf32, #tpu.memory_space<vmem>>, vector<1x128xf32>
    %124 = vector.broadcast %123 : vector<1x128xf32> to vector<20x128xf32>
    %125 = arith.mulf %122, %124 : vector<20x128xf32>
    %c0_139 = arith.constant 0 : index
    %c0_140 = arith.constant 0 : index
    %126 = vector.load %arg10[%c0_139, %c0_140] : memref<1x128xf32, #tpu.memory_space<vmem>>, vector<1x128xf32>
    %127 = vector.broadcast %126 : vector<1x128xf32> to vector<20x128xf32>
    %128 = arith.addf %125, %127 : vector<20x128xf32>
    %cst_141 = arith.constant 0.000000e+00 : f32
    %129 = vector.broadcast %cst_141 : f32 to vector<20x128xf32>
    %130 = arith.maximumf %128, %129 : vector<20x128xf32>
    %c1_142 = arith.constant 1 : index
    %c0_143 = arith.constant 0 : index
    %131 = vector.load %arg21[%c1_142, %c0_143] : memref<192x128xf32, #tpu.memory_space<vmem>>, vector<20x128xf32>
    tpu.vector_store %arg21[%c1_142, %c0_143], %130 {strides = array<i32>} : memref<192x128xf32, #tpu.memory_space<vmem>>, vector<20x128xf32>,
    %c0_144 = arith.constant 0 : index
    %c0_145 = arith.constant 0 : index
    %132 = tpu.strided_load %arg21[%c0_144, %c0_145] {strides = array<i32: 2, 1>} : memref<192x128xf32, #tpu.memory_space<vmem>>, vector<8x128xf32>
    %c0_146 = arith.constant 0 : index
    %c0_147 = arith.constant 0 : index
    %c0_148 = arith.constant 0 : index
    %133 = vector.load %arg11[%c0_146, %c0_147, %c0_148] : memref<7x128x128xf32, #tpu.memory_space<vmem>>, vector<1x128x128xf32>
    %134 = vector.shape_cast %133 : vector<1x128x128xf32> to vector<128x128xf32>
    %cst_149 = arith.constant dense<0.000000e+00> : vector<8x128xf32>
    %135 = tpu.matmul %132, %134, %cst_149 {dimension_numbers = #tpu.dot_dimension_numbers<[1], [0], [0], [1], [0, 0, 1, 1], [], []>} : vector<8x128xf32>, vector<128x128xf32>, vector<8x128xf32> -> vector<8x128xf32>
    %c1_150 = arith.constant 1 : index
    %c0_151 = arith.constant 0 : index
    %136 = tpu.strided_load %arg21[%c1_150, %c0_151] {strides = array<i32: 2, 1>} : memref<192x128xf32, #tpu.memory_space<vmem>>, vector<8x128xf32>
    %c1_152 = arith.constant 1 : index
    %c0_153 = arith.constant 0 : index
    %c0_154 = arith.constant 0 : index
    %137 = vector.load %arg11[%c1_152, %c0_153, %c0_154] : memref<7x128x128xf32, #tpu.memory_space<vmem>>, vector<1x128x128xf32>
    %138 = vector.shape_cast %137 : vector<1x128x128xf32> to vector<128x128xf32>
    %cst_155 = arith.constant dense<0.000000e+00> : vector<8x128xf32>
    %139 = tpu.matmul %136, %138, %cst_155 {dimension_numbers = #tpu.dot_dimension_numbers<[1], [0], [0], [1], [0, 0, 1, 1], [], []>} : vector<8x128xf32>, vector<128x128xf32>, vector<8x128xf32> -> vector<8x128xf32>
    %140 = arith.addf %135, %139 : vector<8x128xf32>
    %c2_156 = arith.constant 2 : index
    %c0_157 = arith.constant 0 : index
    %141 = tpu.strided_load %arg21[%c2_156, %c0_157] {strides = array<i32: 2, 1>} : memref<192x128xf32, #tpu.memory_space<vmem>>, vector<8x128xf32>
    %c2_158 = arith.constant 2 : index
    %c0_159 = arith.constant 0 : index
    %c0_160 = arith.constant 0 : index
    %142 = vector.load %arg11[%c2_158, %c0_159, %c0_160] : memref<7x128x128xf32, #tpu.memory_space<vmem>>, vector<1x128x128xf32>
    %143 = vector.shape_cast %142 : vector<1x128x128xf32> to vector<128x128xf32>
    %cst_161 = arith.constant dense<0.000000e+00> : vector<8x128xf32>
    %144 = tpu.matmul %141, %143, %cst_161 {dimension_numbers = #tpu.dot_dimension_numbers<[1], [0], [0], [1], [0, 0, 1, 1], [], []>} : vector<8x128xf32>, vector<128x128xf32>, vector<8x128xf32> -> vector<8x128xf32>
    %145 = arith.addf %140, %144 : vector<8x128xf32>
    %c3_162 = arith.constant 3 : index
    %c0_163 = arith.constant 0 : index
    %146 = tpu.strided_load %arg21[%c3_162, %c0_163] {strides = array<i32: 2, 1>} : memref<192x128xf32, #tpu.memory_space<vmem>>, vector<8x128xf32>
    %c3_164 = arith.constant 3 : index
    %c0_165 = arith.constant 0 : index
    %c0_166 = arith.constant 0 : index
    %147 = vector.load %arg11[%c3_164, %c0_165, %c0_166] : memref<7x128x128xf32, #tpu.memory_space<vmem>>, vector<1x128x128xf32>
    %148 = vector.shape_cast %147 : vector<1x128x128xf32> to vector<128x128xf32>
    %cst_167 = arith.constant dense<0.000000e+00> : vector<8x128xf32>
    %149 = tpu.matmul %146, %148, %cst_167 {dimension_numbers = #tpu.dot_dimension_numbers<[1], [0], [0], [1], [0, 0, 1, 1], [], []>} : vector<8x128xf32>, vector<128x128xf32>, vector<8x128xf32> -> vector<8x128xf32>
    %150 = arith.addf %145, %149 : vector<8x128xf32>
    %c4_168 = arith.constant 4 : index
    %c0_169 = arith.constant 0 : index
    %151 = tpu.strided_load %arg21[%c4_168, %c0_169] {strides = array<i32: 2, 1>} : memref<192x128xf32, #tpu.memory_space<vmem>>, vector<8x128xf32>
    %c4_170 = arith.constant 4 : index
    %c0_171 = arith.constant 0 : index
    %c0_172 = arith.constant 0 : index
    %152 = vector.load %arg11[%c4_170, %c0_171, %c0_172] : memref<7x128x128xf32, #tpu.memory_space<vmem>>, vector<1x128x128xf32>
    %153 = vector.shape_cast %152 : vector<1x128x128xf32> to vector<128x128xf32>
    %cst_173 = arith.constant dense<0.000000e+00> : vector<8x128xf32>
    %154 = tpu.matmul %151, %153, %cst_173 {dimension_numbers = #tpu.dot_dimension_numbers<[1], [0], [0], [1], [0, 0, 1, 1], [], []>} : vector<8x128xf32>, vector<128x128xf32>, vector<8x128xf32> -> vector<8x128xf32>
    %155 = arith.addf %150, %154 : vector<8x128xf32>
    %c5_174 = arith.constant 5 : index
    %c0_175 = arith.constant 0 : index
    %156 = tpu.strided_load %arg21[%c5_174, %c0_175] {strides = array<i32: 2, 1>} : memref<192x128xf32, #tpu.memory_space<vmem>>, vector<8x128xf32>
    %c5_176 = arith.constant 5 : index
    %c0_177 = arith.constant 0 : index
    %c0_178 = arith.constant 0 : index
    %157 = vector.load %arg11[%c5_176, %c0_177, %c0_178] : memref<7x128x128xf32, #tpu.memory_space<vmem>>, vector<1x128x128xf32>
    %158 = vector.shape_cast %157 : vector<1x128x128xf32> to vector<128x128xf32>
    %cst_179 = arith.constant dense<0.000000e+00> : vector<8x128xf32>
    %159 = tpu.matmul %156, %158, %cst_179 {dimension_numbers = #tpu.dot_dimension_numbers<[1], [0], [0], [1], [0, 0, 1, 1], [], []>} : vector<8x128xf32>, vector<128x128xf32>, vector<8x128xf32> -> vector<8x128xf32>
    %160 = arith.addf %155, %159 : vector<8x128xf32>
    %c6_180 = arith.constant 6 : index
    %c0_181 = arith.constant 0 : index
    %161 = tpu.strided_load %arg21[%c6_180, %c0_181] {strides = array<i32: 2, 1>} : memref<192x128xf32, #tpu.memory_space<vmem>>, vector<8x128xf32>
    %c6_182 = arith.constant 6 : index
    %c0_183 = arith.constant 0 : index
    %c0_184 = arith.constant 0 : index
    %162 = vector.load %arg11[%c6_182, %c0_183, %c0_184] : memref<7x128x128xf32, #tpu.memory_space<vmem>>, vector<1x128x128xf32>
    %163 = vector.shape_cast %162 : vector<1x128x128xf32> to vector<128x128xf32>
    %cst_185 = arith.constant dense<0.000000e+00> : vector<8x128xf32>
    %164 = tpu.matmul %161, %163, %cst_185 {dimension_numbers = #tpu.dot_dimension_numbers<[1], [0], [0], [1], [0, 0, 1, 1], [], []>} : vector<8x128xf32>, vector<128x128xf32>, vector<8x128xf32> -> vector<8x128xf32>
    %165 = arith.addf %160, %164 : vector<8x128xf32>
    %c0_186 = arith.constant 0 : index
    %c0_187 = arith.constant 0 : index
    %166 = vector.load %arg12[%c0_186, %c0_187] : memref<1x128xf32, #tpu.memory_space<vmem>>, vector<1x128xf32>
    %167 = vector.broadcast %166 : vector<1x128xf32> to vector<8x128xf32>
    %168 = arith.mulf %165, %167 : vector<8x128xf32>
    %c0_188 = arith.constant 0 : index
    %c0_189 = arith.constant 0 : index
    %169 = vector.load %arg13[%c0_188, %c0_189] : memref<1x128xf32, #tpu.memory_space<vmem>>, vector<1x128xf32>
    %170 = vector.broadcast %169 : vector<1x128xf32> to vector<8x128xf32>
    %171 = arith.addf %168, %170 : vector<8x128xf32>
    %cst_190 = arith.constant 0.000000e+00 : f32
    %172 = vector.broadcast %cst_190 : f32 to vector<8x128xf32>
    %173 = arith.maximumf %171, %172 : vector<8x128xf32>
    %174 = vector.extract_strided_slice %173 {offsets = [0, 0], sizes = [1, 128], strides = [1, 1]} : vector<8x128xf32> to vector<1x128xf32>
    %c0_191 = arith.constant 0 : index
    %c0_192 = arith.constant 0 : index
    %c0_193 = arith.constant 0 : index
    %175 = vector.load %arg14[%c0_191, %c0_192, %c0_193] : memref<8x128x384xf32, #tpu.memory_space<vmem>>, vector<1x128x384xf32>
    %176 = vector.shape_cast %175 : vector<1x128x384xf32> to vector<128x384xf32>
    %cst_194 = arith.constant dense<0.000000e+00> : vector<1x384xf32>
    %177 = tpu.matmul %174, %176, %cst_194 {dimension_numbers = #tpu.dot_dimension_numbers<[1], [0], [0], [1], [0, 0, 1, 1], [], []>} : vector<1x128xf32>, vector<128x384xf32>, vector<1x384xf32> -> vector<1x384xf32>
    %178 = vector.extract_strided_slice %173 {offsets = [1, 0], sizes = [1, 128], strides = [1, 1]} : vector<8x128xf32> to vector<1x128xf32>
    %c1_195 = arith.constant 1 : index
    %c0_196 = arith.constant 0 : index
    %c0_197 = arith.constant 0 : index
    %179 = vector.load %arg14[%c1_195, %c0_196, %c0_197] : memref<8x128x384xf32, #tpu.memory_space<vmem>>, vector<1x128x384xf32>
    %180 = vector.shape_cast %179 : vector<1x128x384xf32> to vector<128x384xf32>
    %cst_198 = arith.constant dense<0.000000e+00> : vector<1x384xf32>
    %181 = tpu.matmul %178, %180, %cst_198 {dimension_numbers = #tpu.dot_dimension_numbers<[1], [0], [0], [1], [0, 0, 1, 1], [], []>} : vector<1x128xf32>, vector<128x384xf32>, vector<1x384xf32> -> vector<1x384xf32>
    %182 = arith.addf %177, %181 : vector<1x384xf32>
    %183 = vector.extract_strided_slice %173 {offsets = [2, 0], sizes = [1, 128], strides = [1, 1]} : vector<8x128xf32> to vector<1x128xf32>
    %c2_199 = arith.constant 2 : index
    %c0_200 = arith.constant 0 : index
    %c0_201 = arith.constant 0 : index
    %184 = vector.load %arg14[%c2_199, %c0_200, %c0_201] : memref<8x128x384xf32, #tpu.memory_space<vmem>>, vector<1x128x384xf32>
    %185 = vector.shape_cast %184 : vector<1x128x384xf32> to vector<128x384xf32>
    %cst_202 = arith.constant dense<0.000000e+00> : vector<1x384xf32>
    %186 = tpu.matmul %183, %185, %cst_202 {dimension_numbers = #tpu.dot_dimension_numbers<[1], [0], [0], [1], [0, 0, 1, 1], [], []>} : vector<1x128xf32>, vector<128x384xf32>, vector<1x384xf32> -> vector<1x384xf32>
    %187 = arith.addf %182, %186 : vector<1x384xf32>
    %188 = vector.extract_strided_slice %173 {offsets = [3, 0], sizes = [1, 128], strides = [1, 1]} : vector<8x128xf32> to vector<1x128xf32>
    %c3_203 = arith.constant 3 : index
    %c0_204 = arith.constant 0 : index
    %c0_205 = arith.constant 0 : index
    %189 = vector.load %arg14[%c3_203, %c0_204, %c0_205] : memref<8x128x384xf32, #tpu.memory_space<vmem>>, vector<1x128x384xf32>
    %190 = vector.shape_cast %189 : vector<1x128x384xf32> to vector<128x384xf32>
    %cst_206 = arith.constant dense<0.000000e+00> : vector<1x384xf32>
    %191 = tpu.matmul %188, %190, %cst_206 {dimension_numbers = #tpu.dot_dimension_numbers<[1], [0], [0], [1], [0, 0, 1, 1], [], []>} : vector<1x128xf32>, vector<128x384xf32>, vector<1x384xf32> -> vector<1x384xf32>
    %192 = arith.addf %187, %191 : vector<1x384xf32>
    %193 = vector.extract_strided_slice %173 {offsets = [4, 0], sizes = [1, 128], strides = [1, 1]} : vector<8x128xf32> to vector<1x128xf32>
    %c4_207 = arith.constant 4 : index
    %c0_208 = arith.constant 0 : index
    %c0_209 = arith.constant 0 : index
    %194 = vector.load %arg14[%c4_207, %c0_208, %c0_209] : memref<8x128x384xf32, #tpu.memory_space<vmem>>, vector<1x128x384xf32>
    %195 = vector.shape_cast %194 : vector<1x128x384xf32> to vector<128x384xf32>
    %cst_210 = arith.constant dense<0.000000e+00> : vector<1x384xf32>
    %196 = tpu.matmul %193, %195, %cst_210 {dimension_numbers = #tpu.dot_dimension_numbers<[1], [0], [0], [1], [0, 0, 1, 1], [], []>} : vector<1x128xf32>, vector<128x384xf32>, vector<1x384xf32> -> vector<1x384xf32>
    %197 = arith.addf %192, %196 : vector<1x384xf32>
    %198 = vector.extract_strided_slice %173 {offsets = [5, 0], sizes = [1, 128], strides = [1, 1]} : vector<8x128xf32> to vector<1x128xf32>
    %c5_211 = arith.constant 5 : index
    %c0_212 = arith.constant 0 : index
    %c0_213 = arith.constant 0 : index
    %199 = vector.load %arg14[%c5_211, %c0_212, %c0_213] : memref<8x128x384xf32, #tpu.memory_space<vmem>>, vector<1x128x384xf32>
    %200 = vector.shape_cast %199 : vector<1x128x384xf32> to vector<128x384xf32>
    %cst_214 = arith.constant dense<0.000000e+00> : vector<1x384xf32>
    %201 = tpu.matmul %198, %200, %cst_214 {dimension_numbers = #tpu.dot_dimension_numbers<[1], [0], [0], [1], [0, 0, 1, 1], [], []>} : vector<1x128xf32>, vector<128x384xf32>, vector<1x384xf32> -> vector<1x384xf32>
    %202 = arith.addf %197, %201 : vector<1x384xf32>
    %203 = vector.extract_strided_slice %173 {offsets = [6, 0], sizes = [1, 128], strides = [1, 1]} : vector<8x128xf32> to vector<1x128xf32>
    %c6_215 = arith.constant 6 : index
    %c0_216 = arith.constant 0 : index
    %c0_217 = arith.constant 0 : index
    %204 = vector.load %arg14[%c6_215, %c0_216, %c0_217] : memref<8x128x384xf32, #tpu.memory_space<vmem>>, vector<1x128x384xf32>
    %205 = vector.shape_cast %204 : vector<1x128x384xf32> to vector<128x384xf32>
    %cst_218 = arith.constant dense<0.000000e+00> : vector<1x384xf32>
    %206 = tpu.matmul %203, %205, %cst_218 {dimension_numbers = #tpu.dot_dimension_numbers<[1], [0], [0], [1], [0, 0, 1, 1], [], []>} : vector<1x128xf32>, vector<128x384xf32>, vector<1x384xf32> -> vector<1x384xf32>
    %207 = arith.addf %202, %206 : vector<1x384xf32>
    %208 = vector.extract_strided_slice %173 {offsets = [7, 0], sizes = [1, 128], strides = [1, 1]} : vector<8x128xf32> to vector<1x128xf32>
    %c7 = arith.constant 7 : index
    %c0_219 = arith.constant 0 : index
    %c0_220 = arith.constant 0 : index
    %209 = vector.load %arg14[%c7, %c0_219, %c0_220] : memref<8x128x384xf32, #tpu.memory_space<vmem>>, vector<1x128x384xf32>
    %210 = vector.shape_cast %209 : vector<1x128x384xf32> to vector<128x384xf32>
    %cst_221 = arith.constant dense<0.000000e+00> : vector<1x384xf32>
    %211 = tpu.matmul %208, %210, %cst_221 {dimension_numbers = #tpu.dot_dimension_numbers<[1], [0], [0], [1], [0, 0, 1, 1], [], []>} : vector<1x128xf32>, vector<128x384xf32>, vector<1x384xf32> -> vector<1x384xf32>
    %212 = arith.addf %207, %211 : vector<1x384xf32>
    %c0_222 = arith.constant 0 : index
    %c0_223 = arith.constant 0 : index
    %213 = vector.load %arg15[%c0_222, %c0_223] : memref<1x384xf32, #tpu.memory_space<vmem>>, vector<1x384xf32>
    %214 = arith.addf %212, %213 : vector<1x384xf32>
    %cst_224 = arith.constant 0.000000e+00 : f32
    %215 = vector.broadcast %cst_224 : f32 to vector<1x384xf32>
    %216 = arith.maximumf %214, %215 : vector<1x384xf32>
    %c0_225 = arith.constant 0 : index
    %c0_226 = arith.constant 0 : index
    %217 = vector.load %arg16[%c0_225, %c0_226] : memref<384x128xf32, #tpu.memory_space<vmem>>, vector<384x128xf32>
    %cst_227 = arith.constant dense<0.000000e+00> : vector<1x128xf32>
    %218 = tpu.matmul %216, %217, %cst_227 {dimension_numbers = #tpu.dot_dimension_numbers<[1], [0], [0], [1], [0, 0, 1, 1], [], []>} : vector<1x384xf32>, vector<384x128xf32>, vector<1x128xf32> -> vector<1x128xf32>
    %c0_228 = arith.constant 0 : index
    %c0_229 = arith.constant 0 : index
    %219 = vector.load %arg17[%c0_228, %c0_229] : memref<1x128xf32, #tpu.memory_space<vmem>>, vector<1x128xf32>
    %220 = arith.addf %218, %219 : vector<1x128xf32>
    %cst_230 = arith.constant 0.000000e+00 : f32
    %221 = vector.broadcast %cst_230 : f32 to vector<1x128xf32>
    %222 = arith.maximumf %220, %221 : vector<1x128xf32>
    %c0_231 = arith.constant 0 : index
    %c0_232 = arith.constant 0 : index
    %223 = vector.load %arg18[%c0_231, %c0_232] : memref<128x128xf32, #tpu.memory_space<vmem>>, vector<128x128xf32>
    %cst_233 = arith.constant dense<0.000000e+00> : vector<1x128xf32>
    %224 = tpu.matmul %222, %223, %cst_233 {dimension_numbers = #tpu.dot_dimension_numbers<[1], [0], [0], [1], [0, 0, 1, 1], [], []>} : vector<1x128xf32>, vector<128x128xf32>, vector<1x128xf32> -> vector<1x128xf32>
    %c0_234 = arith.constant 0 : index
    %c0_235 = arith.constant 0 : index
    %225 = vector.load %arg19[%c0_234, %c0_235] : memref<1x128xf32, #tpu.memory_space<vmem>>, vector<1x128xf32>
    %226 = arith.addf %224, %225 : vector<1x128xf32>
    %227 = tpu.iota {dimensions = array<i32: 1>} : vector<1x128xi32>
    %c10_i32 = arith.constant 10 : i32
    %228 = vector.broadcast %c10_i32 : i32 to vector<1x128xi32>
    %229 = arith.cmpi slt, %227, %228 : vector<1x128xi32>
    %cst_236 = arith.constant -1.000000e+30 : f32
    %230 = vector.broadcast %cst_236 : f32 to vector<1x128xf32>
    %231 = arith.select %229, %226, %230 : vector<1x128xi1>, vector<1x128xf32>
    %cst_237 = arith.constant dense<0xFF800000> : vector<1xf32>
    %232 = vector.multi_reduction <maximumf>, %231, %cst_237 [1] : vector<1x128xf32> to vector<1xf32>
    %233 = vector.shape_cast %232 : vector<1xf32> to vector<1x1xf32>
    %234 = vector.broadcast %233 : vector<1x1xf32> to vector<1x128xf32>
    %235 = arith.subf %231, %234 : vector<1x128xf32>
    %236 = math.exp %235 : vector<1x128xf32>
    %237 = arith.extui %229 : vector<1x128xi1> to vector<1x128xi32>
    %238 = arith.sitofp %237 : vector<1x128xi32> to vector<1x128xf32>
    %239 = arith.mulf %236, %238 : vector<1x128xf32>
    %cst_238 = arith.constant dense<0.000000e+00> : vector<1xf32>
    %240 = vector.multi_reduction <add>, %239, %cst_238 [1] : vector<1x128xf32> to vector<1xf32>
    %241 = vector.shape_cast %240 : vector<1xf32> to vector<1x1xf32>
    %242 = tpu.reciprocal %241 {approx = true} : vector<1x1xf32> -> vector<1x1xf32>
    %243 = arith.mulf %241, %242 : vector<1x1xf32>
    %cst_239 = arith.constant 2.000000e+00 : f32
    %244 = vector.broadcast %cst_239 : f32 to vector<1x1xf32>
    %245 = arith.subf %244, %243 : vector<1x1xf32>
    %246 = arith.mulf %242, %245 : vector<1x1xf32>
    %247 = vector.broadcast %246 : vector<1x1xf32> to vector<1x128xf32>
    %248 = arith.mulf %239, %247 : vector<1x128xf32>
    %c0_240 = arith.constant 0 : index
    %c0_241 = arith.constant 0 : index
    %c0_242 = arith.constant 0 : index
    %249 = vector.load %arg20[%c0_240, %c0_241, %c0_242] : memref<1x1x128xf32, #tpu.memory_space<vmem>>, vector<1x1x128xf32>
    %250 = vector.shape_cast %249 : vector<1x1x128xf32> to vector<1x128xf32>
    %251 = vector.shape_cast %248 : vector<1x128xf32> to vector<1x1x128xf32>
    tpu.vector_store %arg20[%c0_240, %c0_241, %c0_242], %251 {strides = array<i32>} : memref<1x1x128xf32, #tpu.memory_space<vmem>>, vector<1x1x128xf32>,
    return
  }
  func.func @transform_0(%arg0: i32) -> (i32, i32, i32) {
    %c0_i32 = arith.constant 0 : i32
    %c0_i32_0 = arith.constant 0 : i32
    %c0_i32_1 = arith.constant 0 : i32
    return %arg0, %c0_i32, %c0_i32_0 : i32, i32, i32
  }
  func.func @transform_1(%arg0: i32) -> (i32, i32, i32) {
    %c0_i32 = arith.constant 0 : i32
    %c0_i32_0 = arith.constant 0 : i32
    %c0_i32_1 = arith.constant 0 : i32
    %c0_i32_2 = arith.constant 0 : i32
    return %c0_i32, %c0_i32_0, %c0_i32_1 : i32, i32, i32
  }
  func.func @transform_2(%arg0: i32) -> (i32, i32) {
    %c0_i32 = arith.constant 0 : i32
    %c0_i32_0 = arith.constant 0 : i32
    %c0_i32_1 = arith.constant 0 : i32
    return %c0_i32, %c0_i32_0 : i32, i32
  }
  func.func @transform_3(%arg0: i32) -> (i32, i32) {
    %c0_i32 = arith.constant 0 : i32
    %c0_i32_0 = arith.constant 0 : i32
    %c0_i32_1 = arith.constant 0 : i32
    return %c0_i32, %c0_i32_0 : i32, i32
  }
  func.func @transform_4(%arg0: i32) -> (i32, i32, i32) {
    %c0_i32 = arith.constant 0 : i32
    %c0_i32_0 = arith.constant 0 : i32
    %c0_i32_1 = arith.constant 0 : i32
    %c0_i32_2 = arith.constant 0 : i32
    return %c0_i32, %c0_i32_0, %c0_i32_1 : i32, i32, i32
  }
  func.func @transform_5(%arg0: i32) -> (i32, i32) {
    %c0_i32 = arith.constant 0 : i32
    %c0_i32_0 = arith.constant 0 : i32
    %c0_i32_1 = arith.constant 0 : i32
    return %c0_i32, %c0_i32_0 : i32, i32
  }
  func.func @transform_6(%arg0: i32) -> (i32, i32) {
    %c0_i32 = arith.constant 0 : i32
    %c0_i32_0 = arith.constant 0 : i32
    %c0_i32_1 = arith.constant 0 : i32
    return %c0_i32, %c0_i32_0 : i32, i32
  }
  func.func @transform_7(%arg0: i32) -> (i32, i32, i32) {
    %c0_i32 = arith.constant 0 : i32
    %c0_i32_0 = arith.constant 0 : i32
    %c0_i32_1 = arith.constant 0 : i32
    %c0_i32_2 = arith.constant 0 : i32
    return %c0_i32, %c0_i32_0, %c0_i32_1 : i32, i32, i32
  }
  func.func @transform_8(%arg0: i32) -> (i32, i32) {
    %c0_i32 = arith.constant 0 : i32
    %c0_i32_0 = arith.constant 0 : i32
    %c0_i32_1 = arith.constant 0 : i32
    return %c0_i32, %c0_i32_0 : i32, i32
  }
  func.func @transform_9(%arg0: i32) -> (i32, i32) {
    %c0_i32 = arith.constant 0 : i32
    %c0_i32_0 = arith.constant 0 : i32
    %c0_i32_1 = arith.constant 0 : i32
    return %c0_i32, %c0_i32_0 : i32, i32
  }
  func.func @transform_10(%arg0: i32) -> (i32, i32, i32) {
    %c0_i32 = arith.constant 0 : i32
    %c0_i32_0 = arith.constant 0 : i32
    %c0_i32_1 = arith.constant 0 : i32
    %c0_i32_2 = arith.constant 0 : i32
    return %c0_i32, %c0_i32_0, %c0_i32_1 : i32, i32, i32
  }
  func.func @transform_11(%arg0: i32) -> (i32, i32) {
    %c0_i32 = arith.constant 0 : i32
    %c0_i32_0 = arith.constant 0 : i32
    %c0_i32_1 = arith.constant 0 : i32
    return %c0_i32, %c0_i32_0 : i32, i32
  }
  func.func @transform_12(%arg0: i32) -> (i32, i32) {
    %c0_i32 = arith.constant 0 : i32
    %c0_i32_0 = arith.constant 0 : i32
    %c0_i32_1 = arith.constant 0 : i32
    return %c0_i32, %c0_i32_0 : i32, i32
  }
  func.func @transform_13(%arg0: i32) -> (i32, i32, i32) {
    %c0_i32 = arith.constant 0 : i32
    %c0_i32_0 = arith.constant 0 : i32
    %c0_i32_1 = arith.constant 0 : i32
    %c0_i32_2 = arith.constant 0 : i32
    return %c0_i32, %c0_i32_0, %c0_i32_1 : i32, i32, i32
  }
  func.func @transform_14(%arg0: i32) -> (i32, i32) {
    %c0_i32 = arith.constant 0 : i32
    %c0_i32_0 = arith.constant 0 : i32
    %c0_i32_1 = arith.constant 0 : i32
    return %c0_i32, %c0_i32_0 : i32, i32
  }
  func.func @transform_15(%arg0: i32) -> (i32, i32) {
    %c0_i32 = arith.constant 0 : i32
    %c0_i32_0 = arith.constant 0 : i32
    %c0_i32_1 = arith.constant 0 : i32
    return %c0_i32, %c0_i32_0 : i32, i32
  }
  func.func @transform_16(%arg0: i32) -> (i32, i32) {
    %c0_i32 = arith.constant 0 : i32
    %c0_i32_0 = arith.constant 0 : i32
    %c0_i32_1 = arith.constant 0 : i32
    return %c0_i32, %c0_i32_0 : i32, i32
  }
  func.func @transform_17(%arg0: i32) -> (i32, i32) {
    %c0_i32 = arith.constant 0 : i32
    %c0_i32_0 = arith.constant 0 : i32
    %c0_i32_1 = arith.constant 0 : i32
    return %c0_i32, %c0_i32_0 : i32, i32
  }
  func.func @transform_18(%arg0: i32) -> (i32, i32) {
    %c0_i32 = arith.constant 0 : i32
    %c0_i32_0 = arith.constant 0 : i32
    %c0_i32_1 = arith.constant 0 : i32
    return %c0_i32, %c0_i32_0 : i32, i32
  }
  func.func @transform_19(%arg0: i32) -> (i32, i32, i32) {
    %c0_i32 = arith.constant 0 : i32
    %c0_i32_0 = arith.constant 0 : i32
    %c0_i32_1 = arith.constant 0 : i32
    return %arg0, %c0_i32, %c0_i32_0 : i32, i32, i32
  }
}

</mosaic_0001>

<bundles_post_ra>
// kernel: forward.1
= control target key start
LH: loop header
LB: loop body
LE: loop exit
PB: predicated region body
PF: predicated region fallthrough
CT: control target
= control target key end

     0   :  { %s12244_s0 = inlined_call_operand.vmem [shape: f32[2,192,128], index: 0, kind: input, shape index: {}]   ;;  %s12245_s1 = inlined_call_operand.hbm [shape: f32[7,128,128], index: 1, kind: input, shape index: {}]   ;;  %s12246_s2 = inlined_call_operand.hbm [shape: f32[1,128], index: 2, kind: input, shape index: {}]   ;;  %s12247_s3 = inlined_call_operand.hbm [shape: f32[1,128], index: 3, kind: input, shape index: {}]   ;;  %s12248_s4 = inlined_call_operand.hbm [shape: f32[7,128,128], index: 4, kind: input, shape index: {}]   ;;  %s12249_s5 = inlined_call_operand.hbm [shape: f32[1,128], index: 5, kind: input, shape index: {}]   ;;  %s12250_s6 = inlined_call_operand.hbm [shape: f32[1,128], index: 6, kind: input, shape index: {}]   ;;  %s12251_s7 = inlined_call_operand.hbm [shape: f32[7,128,128], index: 7, kind: input, shape index: {}]   ;;  %s12252_s8 = inlined_call_operand.hbm [shape: f32[1,128], index: 8, kind: input, shape index: {}]   ;;  %s12253_s9 = inlined_call_operand.hbm [shape: f32[1,128], index: 9, kind: input, shape index: {}]   ;;  %s12254_s10 = inlined_call_operand.hbm [shape: f32[7,128,128], index: 10, kind: input, shape index: {}]   ;;  %s12255_s11 = inlined_call_operand.hbm [shape: f32[1,128], index: 11, kind: input, shape index: {}]   ;;  %s12256_s12 = inlined_call_operand.hbm [shape: f32[1,128], index: 12, kind: input, shape index: {}]   ;;  %s12257_s13 = inlined_call_operand.hbm [shape: f32[8,128,384], index: 13, kind: input, shape index: {}]   ;;  %s12258_s14 = inlined_call_operand.hbm [shape: f32[1,384], index: 14, kind: input, shape index: {}]   ;;  %s12259_s15 = inlined_call_operand.hbm [shape: f32[384,128], index: 15, kind: input, shape index: {}]   ;;  %s12260_s16 = inlined_call_operand.hbm [shape: f32[1,128], index: 16, kind: input, shape index: {}]   ;;  %s12261_s17 = inlined_call_operand.hbm [shape: f32[128,128], index: 17, kind: input, shape index: {}]   ;;  %s12262_s18 = inlined_call_operand.hbm [shape: f32[1,128], index: 18, kind: input, shape index: {}]   ;;  %s12263_s19 = inlined_call_operand.hbm [shape: f32[2,1,128], index: 19, kind: output, shape index: {}]  }
   0x1   :  { %12287 = sst [smem:[#allocation53_spill]] %s12244_s0 }
   0x2   :  { %12288 = sst [smem:[#allocation54_spill]] %s12245_s1 }
   0x3   :  { %12289 = sst [smem:[#allocation55_spill]] %s12246_s2 }
   0x4   :  { %12290 = sst [smem:[#allocation56_spill]] %s12247_s3 }
   0x5   :  { %12291 = sst [smem:[#allocation57_spill]] %s12248_s4 }
   0x6   :  { %12292 = sst [smem:[#allocation58_spill]] %s12249_s5 }
   0x7   :  { %12293 = sst [smem:[#allocation59_spill]] %s12250_s6 }
   0x8   :  { %12294 = sst [smem:[#allocation60_spill]] %s12251_s7 }
   0x9   :  { %12295 = sst [smem:[#allocation61_spill]] %s12252_s8 }
   0xa   :  { %12296 = sst [smem:[#allocation62_spill]] %s12253_s9 }
   0xb   :  { %12297 = sst [smem:[#allocation63_spill]] %s12254_s10 }
   0xc   :  { %12298 = sst [smem:[#allocation64_spill]] %s12263_s19 }
   0xd   :  { %24 = vsyncpa [#allocation4], 0 }
   0xe   :  { %25 = vsyncpa [#allocation7], 0 }
   0xf   :  { %26 = vsyncpa [#allocation10], 0 }
  0x10   :  { %27 = vsyncpa [#allocation13], 0 }
  0x11   :  { %28 = vsyncpa [#allocation16], 0 }
  0x12   :  { %29 = vsyncpa [#allocation19], 0 }
  0x13   :  { %30 = vsyncpa [#allocation22], 0 }
  0x14   :  { %31 = vsyncpa [#allocation25], 0 }
  0x15   :  { %32 = vsyncpa [#allocation28], 0 }
  0x16   :  { %33 = vsyncpa [#allocation31], 0 }
  0x17   :  { %34 = vsyncpa [#allocation5], 0 }
  0x18   :  { %36 = vsyncpa [#allocation5 + $0x1], 0  ;;  %s11384_s0 = smov 0   ;;  %s11386_s30 = smov 0  }
  0x19   :  { %s11388_s20 = smov 0   ;;  %s11390_s21 = smov 0  }
  0x1a LB: > { %12299 = sst [smem:[#allocation44_spill]] %s11244_s0  ;;  %s11405_s1 = sadd.s32 4294967295, %s11256_s21   ;;  %s11256_s21 = sphi %s11390_s21, %s12357_s21   ;;  %s11252_s20 = sphi %s11388_s20, %s12360_s20   ;;  %s11248_s30 = sphi %s11386_s30, %s12359_s30   ;;  %s11244_s0 = sphi %s11384_s0, %s12358_s0  }
  0x1b   : > { %12300 = sst [smem:[#allocation45_spill]] %s11248_s30  ;;  %s6557_s22 = sadd.s32 4294967294, %s11256_s21  }
  0x1c   : > { %12301 = sst [smem:[#allocation46_spill]] %s11252_s20  ;;  %s11409_s2 = sadd.s32 1, %s11256_s21  }
  0x1d   : > { %12302 = sst [smem:[#allocation47_spill]] %s11256_s21  ;;  %s453_s23 = sadd.s32 1, %s11252_s20 }
  0x1e   : > { %12303 = sst [smem:[#allocation48_spill]] %s11405_s1  ;;  %s450_s24 = ssub.s32 %s11256_s21, %s11409_s2 }
  0x1f   : > { %12304 = sst [smem:[#allocation49_spill]] %s11409_s2  ;;  %p463_p0 = scmp.ne.s32.totalorder %s11252_s20, %s11248_s30 }
  0x20   : > { %p451_p1 = scmp.eq.s32.totalorder %s450_s24, 0  ;;  %p464_p2 = scmp.eq.s32.totalorder %s11405_s1, 1 }
  0x21   : > { %p469_p3 = scmp.ne.s32.totalorder %s11248_s30, %s11244_s0  ;;  %p470_p4 = scmp.eq.s32.totalorder %s6557_s22, 1 }
  0x22   : > { %s11420_s25 = scalar_select %p451_p1, %s11252_s20, %s453_s23  }
  0x23   : > { %p11422_p5 = por %p464_p2, %p463_p0  ;;  %p11426_p6 = por %p470_p4, %p469_p3 }
  0x24   : > { %12305 = sst [smem:[#allocation50_spill]] %s11420_s25  ;;  %p6558_p7 = scmp.ge.s32.totalorder %s11256_s21, 1 }
  0x25   : > { %s12306_s3 = scalar_select %p11422_p5, 1, 0 }
  0x26   : > { %s12308_s26 = scalar_select %p11426_p6, 1, 0 }
  0x27   : > { %12307 = sst [smem:[#allocation51_spill]] %s12306_s3  ;;  %p477_p8 = scmp.lt.s32.totalorder %s11256_s21, 3 }
  0x28   : > { %12309 = sst [smem:[#allocation52_spill]] %s12308_s26  ;;  %p12277_p9 = scmp.eq.s32.totalorder %s11405_s1, 0 }
  0x29   : > { %p11433_p10 = pnand %p6558_p7, %p477_p8  ;;  %s11258_s28 = smov [#allocation6]  }
  0x2a   : > { %s503_s29 = sshll.u32 %s11258_s28, 4  ;;  %s11259_s23 = smov [#allocation9]   ;;  %s504_s29 = int_to_ptr.vmem [resolvable:$true] %s503_s29 }
  0x2b   : > { %s12310_s27 = scalar_select %p11433_p10, 1, 0 }
  0x2c   : > { %p10493_p11 = pneg %p11433_p10  ;;  %s524_s24 = sshll.u32 %s11259_s23, 4  ;;  %s11445_s24 = int_to_ptr.vmem [resolvable:$true] %s524_s24 }
  0x2d   : > { %s11260_s25 = smov [#allocation12]   ;;  %s12312_s0 = sld [smem:[#allocation55_spill]] }
  0x2e   : > { %p11441_p12 = pnand %p12277_p9, %p10493_p11  ;;  %s11447_s20 = sshll.u32 %s11260_s25, 4  ;;  %s550_s20 = int_to_ptr.vmem [resolvable:$true] %s11447_s20 }
  0x30   : > { %p11457_p0 = pneg %p11441_p12 }
  0x33   : > { %s12313_s19 = smov %s12312_s0  ;;  %s10650_s28 = scalar_lea.hbm %s12312_s0, 16 }
  0x34   : > { %p10651_p13 = scmp.ne.s32.totalorder %s12313_s19, %s10650_s28  ;;  %p10657_p3 = scmp.lt.u32.totalorder %s10650_s28, %s12313_s19 }
  0x36   : > { %p10653_p1 = pnand %p11457_p0, %p10651_p13 }
  0x38   : > { %p10654_p2 = pneg %p10653_p1 }
  0x3a   : > { %p10659_p4 = pnand %p10657_p3, %p10654_p2 }
  0x3c   : > { %10662 = shalt.err (!%p10659_p4)
}
  0x3d   : > { %s10663_s0 = scalar_lea.vmem %s504_s29, 16  ;;  %s10670_s21 = scalar_lea.vmem %s504_s29, 32 }
  0x3e   : > { %p10664_p7 = scmp.ne.s32.totalorder %s504_s29, %s10663_s0  ;;  %p10671_p9 = scmp.lt.s32.totalorder %s504_s29, %s504_s29 }
  0x3f   : > { %p10672_p6 = scmp.lt.s32.totalorder %s10670_s21, %s10663_s0 }
  0x40   : > { %p10666_p8 = pnand %p10664_p7, %p11457_p0 }
  0x41   : > { %p10673_p5 = por %p10672_p6, %p10671_p9 }
  0x42   : > { %p10667_p11 = pneg %p10666_p8 }
  0x44   : > { %p10674_p10 = pnand %p10673_p5, %p10667_p11 }
  0x46   : > { %10677 = shalt.err (!%p10674_p10)
}
  0x47   : > { %10499 = dma.hbm_to_vmem [thread:$0]  (!%p11441_p12), %s12313_s19, 16, %s504_s29, [#allocation7]  }
  0x48   : > { %s12315_s4 = sld [smem:[#allocation57_spill]] }
  0x4e   : > { %s10678_s23 = scalar_lea.hbm %s12315_s4, 14336 }
  0x4f   : > { %p10679_p13 = scmp.ne.s32.totalorder %s12315_s4, %s10678_s23  ;;  %p10685_p5 = scmp.lt.u32.totalorder %s10678_s23, %s12315_s4 }
  0x51   : > { %p10681_p1 = pnand %p10679_p13, %p11457_p0 }
  0x53   : > { %p10682_p6 = pneg %p10681_p1 }
  0x55   : > { %p10687_p9 = pnand %p10685_p5, %p10682_p6 }
  0x57   : > { %10690 = shalt.err (!%p10687_p9)
}
  0x58   : > { %s10691_s29 = scalar_lea.vmem %s11445_s24, 14336  ;;  %p10699_p4 = scmp.lt.s32.totalorder %s11445_s24, %s11445_s24 }
  0x59   : > { %p10692_p10 = scmp.ne.s32.totalorder %s11445_s24, %s10691_s29  ;;  %p10700_p7 = scmp.lt.s32.totalorder %s10691_s29, %s10691_s29 }
  0x5b   : > { %p10694_p2 = pnand %p10692_p10, %p11457_p0  ;;  %p10701_p8 = por %p10700_p7, %p10699_p4 }
  0x5d   : > { %p10695_p3 = pneg %p10694_p2 }
  0x5f   : > { %p10702_p11 = pnand %p10701_p8, %p10695_p3 }
  0x61   : > { %10705 = shalt.err (!%p10702_p11)
}
  0x62   : > { %s12283_s1 = smov 128   ;;  %s12285_s2 = smov 8  }
  0x63   : > { %10505 = dma.hbm_to_vmem [thread:$0]  (!%p11441_p12), %s12315_s4, 14336, %s11445_s24, [#allocation10], %s12283_s1, %s12283_s1, %s12285_s2  }
  0x64   : > { %s12316_s6 = sld [smem:[#allocation59_spill]] }
  0x6a   : > { %s10706_s25 = scalar_lea.hbm %s12316_s6, 16 }
  0x6b   : > { %p10707_p13 = scmp.ne.s32.totalorder %s12316_s6, %s10706_s25  ;;  %p10713_p5 = scmp.lt.u32.totalorder %s10706_s25, %s12316_s6 }
  0x6d   : > { %p10709_p1 = pnand %p10707_p13, %p11457_p0 }
  0x6f   : > { %p10710_p6 = pneg %p10709_p1 }
  0x71   : > { %p10715_p9 = pnand %p10713_p5, %p10710_p6 }
  0x73   : > { %10718 = shalt.err (!%p10715_p9)
}
  0x74   : > { %s10719_s3 = scalar_lea.vmem %s550_s20, 16  ;;  %s10726_s24 = scalar_lea.vmem %s550_s20, 32 }
  0x75   : > { %p10720_p10 = scmp.ne.s32.totalorder %s550_s20, %s10719_s3  ;;  %p10727_p4 = scmp.lt.s32.totalorder %s550_s20, %s550_s20 }
  0x76   : > { %p10728_p7 = scmp.lt.s32.totalorder %s10726_s24, %s10719_s3 }
  0x77   : > { %p10722_p2 = pnand %p10720_p10, %p11457_p0 }
  0x78   : > { %p10729_p8 = por %p10728_p7, %p10727_p4 }
  0x79   : > { %p10723_p3 = pneg %p10722_p2 }
  0x7b   : > { %p10730_p11 = pnand %p10729_p8, %p10723_p3 }
  0x7d   : > { %10733 = shalt.err (!%p10730_p11)
}
  0x7e   : > { %10511 = dma.hbm_to_vmem [thread:$0]  (!%p11441_p12), %s12316_s6, 16, %s550_s20, [#allocation13]  }
  0x7f   : > { %s11263_s19 = smov [#allocation15]   ;;  %s11264_s25 = smov [#allocation18]  }
  0x80   : > { %s573_s23 = sshll.u32 %s11263_s19, 4  ;;  %s594_s0 = sshll.u32 %s11264_s25, 4  ;;  %s574_s23 = int_to_ptr.vmem [resolvable:$true] %s573_s23  ;;  %s595_s0 = int_to_ptr.vmem [resolvable:$true] %s594_s0 }
  0x81   : > { %s12317_s8 = sld [smem:[#allocation61_spill]] }
  0x87   : > { %s10734_s1 = scalar_lea.hbm %s12317_s8, 16 }
  0x88   : > { %p10735_p13 = scmp.ne.s32.totalorder %s12317_s8, %s10734_s1  ;;  %p10741_p5 = scmp.lt.u32.totalorder %s10734_s1, %s12317_s8 }
  0x8a   : > { %p10737_p1 = pnand %p10735_p13, %p11457_p0 }
  0x8c   : > { %p10738_p6 = pneg %p10737_p1 }
  0x8e   : > { %p10743_p9 = pnand %p10741_p5, %p10738_p6 }
  0x90   : > { %10746 = shalt.err (!%p10743_p9)
}
  0x91   : > { %s10747_s20 = scalar_lea.vmem %s574_s23, 16  ;;  %s10754_s28 = scalar_lea.vmem %s574_s23, 32 }
  0x92   : > { %p10748_p10 = scmp.ne.s32.totalorder %s574_s23, %s10747_s20  ;;  %p10755_p4 = scmp.lt.s32.totalorder %s574_s23, %s574_s23 }
  0x93   : > { %p10756_p7 = scmp.lt.s32.totalorder %s10754_s28, %s10747_s20 }
  0x94   : > { %p10750_p2 = pnand %p10748_p10, %p11457_p0 }
  0x95   : > { %p10757_p8 = por %p10756_p7, %p10755_p4 }
  0x96   : > { %p10751_p3 = pneg %p10750_p2 }
  0x98   : > { %p10758_p11 = pnand %p10757_p8, %p10751_p3 }
  0x9a   : > { %10761 = shalt.err (!%p10758_p11)
}
  0x9b   : > { %10517 = dma.hbm_to_vmem [thread:$0]  (!%p11441_p12), %s12317_s8, 16, %s574_s23, [#allocation16]  }
  0x9c   : > { %s12318_s10 = sld [smem:[#allocation63_spill]] }
  0xa2   : > { %s10762_s21 = scalar_lea.hbm %s12318_s10, 14336 }
  0xa3   : > { %p10763_p13 = scmp.ne.s32.totalorder %s12318_s10, %s10762_s21  ;;  %p10769_p5 = scmp.lt.u32.totalorder %s10762_s21, %s12318_s10 }
  0xa5   : > { %p10765_p1 = pnand %p10763_p13, %p11457_p0 }
  0xa7   : > { %p10766_p6 = pneg %p10765_p1 }
  0xa9   : > { %p10771_p9 = pnand %p10769_p5, %p10766_p6 }
  0xab   : > { %10774 = shalt.err (!%p10771_p9)
}
  0xac   : > { %s10775_s20 = scalar_lea.vmem %s595_s0, 14336  ;;  %p10783_p4 = scmp.lt.s32.totalorder %s595_s0, %s595_s0 }
  0xad   : > { %p10776_p10 = scmp.ne.s32.totalorder %s595_s0, %s10775_s20  ;;  %p10784_p7 = scmp.lt.s32.totalorder %s10775_s20, %s10775_s20 }
  0xaf   : > { %p10778_p2 = pnand %p10776_p10, %p11457_p0  ;;  %p10785_p8 = por %p10784_p7, %p10783_p4 }
  0xb1   : > { %p10779_p3 = pneg %p10778_p2 }
  0xb3   : > { %p10786_p11 = pnand %p10785_p8, %p10779_p3 }
  0xb5   : > { %10789 = shalt.err (!%p10786_p11)
}
  0xb6   : > { %s12319_s23 = smov 8   ;;  %s12320_s28 = smov 128  }
  0xb7   : > { %10523 = dma.hbm_to_vmem [thread:$0]  (!%p11441_p12), %s12318_s10, 14336, %s595_s0, [#allocation19], %s12320_s28, %s12320_s28, %s12319_s23  }
  0xb8   : > { %s11265_s1 = smov [#allocation21]   ;;  %s11266_s21 = smov [#allocation24]  }
  0xb9   : > { %s619_s2 = sshll.u32 %s11265_s1, 4  ;;  %s643_s29 = sshll.u32 %s11266_s21, 4  ;;  %s620_s2 = int_to_ptr.vmem [resolvable:$true] %s619_s2  ;;  %s644_s29 = int_to_ptr.vmem [resolvable:$true] %s643_s29 }
  0xba   : > { %s10790_s26 = scalar_lea.hbm %s12256_s12, 16 }
  0xbb   : > { %p10791_p13 = scmp.ne.s32.totalorder %s12256_s12, %s10790_s26  ;;  %p10797_p5 = scmp.lt.u32.totalorder %s10790_s26, %s12256_s12 }
  0xbd   : > { %p10793_p1 = pnand %p10791_p13, %p11457_p0 }
  0xbf   : > { %p10794_p6 = pneg %p10793_p1 }
  0xc1   : > { %p10799_p9 = pnand %p10797_p5, %p10794_p6 }
  0xc3   : > { %10802 = shalt.err (!%p10799_p9)
}
  0xc4   : > { %s10803_s0 = scalar_lea.vmem %s620_s2, 16  ;;  %s10810_s25 = scalar_lea.vmem %s620_s2, 32 }
  0xc5   : > { %p10804_p10 = scmp.ne.s32.totalorder %s620_s2, %s10803_s0  ;;  %p10811_p4 = scmp.lt.s32.totalorder %s620_s2, %s620_s2 }
  0xc6   : > { %p10812_p7 = scmp.lt.s32.totalorder %s10810_s25, %s10803_s0 }
  0xc7   : > { %p10806_p2 = pnand %p10804_p10, %p11457_p0 }
  0xc8   : > { %p10813_p8 = por %p10812_p7, %p10811_p4 }
  0xc9   : > { %p10807_p3 = pneg %p10806_p2 }
  0xcb   : > { %p10814_p11 = pnand %p10813_p8, %p10807_p3 }
  0xcd   : > { %10817 = shalt.err (!%p10814_p11)
}
  0xce   : > { %10529 = dma.hbm_to_vmem [thread:$0]  (!%p11441_p12), %s12256_s12, 16, %s620_s2, [#allocation22]  }
  0xcf   : > { %s10818_s3 = scalar_lea.hbm %s12258_s14, 48 }
  0xd0   : > { %p10819_p13 = scmp.ne.s32.totalorder %s12258_s14, %s10818_s3  ;;  %p10825_p5 = scmp.lt.u32.totalorder %s10818_s3, %s12258_s14 }
  0xd2   : > { %p10821_p1 = pnand %p10819_p13, %p11457_p0 }
  0xd4   : > { %p10822_p6 = pneg %p10821_p1 }
  0xd6   : > { %p10827_p9 = pnand %p10825_p5, %p10822_p6 }
  0xd8   : > { %10830 = shalt.err (!%p10827_p9)
}
  0xd9   : > { %s10831_s0 = scalar_lea.vmem %s644_s29, 48  ;;  %s10838_s2 = scalar_lea.vmem %s644_s29, 64 }
  0xda   : > { %p10832_p10 = scmp.ne.s32.totalorder %s644_s29, %s10831_s0  ;;  %p10839_p4 = scmp.lt.s32.totalorder %s644_s29, %s644_s29 }
  0xdb   : > { %p10840_p7 = scmp.lt.s32.totalorder %s10838_s2, %s10831_s0 }
  0xdc   : > { %p10834_p2 = pnand %p10832_p10, %p11457_p0 }
  0xdd   : > { %p10841_p8 = por %p10840_p7, %p10839_p4 }
  0xde   : > { %p10835_p3 = pneg %p10834_p2 }
  0xe0   : > { %p10842_p11 = pnand %p10841_p8, %p10835_p3 }
  0xe2   : > { %10845 = shalt.err (!%p10842_p11)
}
  0xe3   : > { %10535 = dma.hbm_to_vmem [thread:$0]  (!%p11441_p12), %s12258_s14, 48, %s644_s29, [#allocation25]  }
  0xe4   : > { %s11267_s1 = smov [#allocation27]   ;;  %s11268_s21 = smov [#allocation3]  }
  0xe5   : > { %s667_s6 = sshll.u32 %s11267_s1, 4  ;;  %s489_s3 = sshll.u32 %s11268_s21, 4  ;;  %s668_s6 = int_to_ptr.vmem [resolvable:$true] %s667_s6  ;;  %s490_s3 = int_to_ptr.vmem [resolvable:$true] %s489_s3 }
  0xe6   : > { %s10846_s20 = scalar_lea.hbm %s12260_s16, 16 }
  0xe7   : > { %p10847_p13 = scmp.ne.s32.totalorder %s12260_s16, %s10846_s20  ;;  %p10853_p5 = scmp.lt.u32.totalorder %s10846_s20, %s12260_s16 }
  0xe9   : > { %p10849_p1 = pnand %p10847_p13, %p11457_p0 }
  0xeb   : > { %p10850_p6 = pneg %p10849_p1 }
  0xed   : > { %p10855_p9 = pnand %p10853_p5, %p10850_p6 }
  0xef   : > { %10858 = shalt.err (!%p10855_p9)
}
  0xf0   : > { %s10859_s29 = scalar_lea.vmem %s668_s6, 16  ;;  %s10866_s4 = scalar_lea.vmem %s668_s6, 32 }
  0xf1   : > { %p10860_p10 = scmp.ne.s32.totalorder %s668_s6, %s10859_s29  ;;  %p10867_p4 = scmp.lt.s32.totalorder %s668_s6, %s668_s6 }
  0xf2   : > { %p10868_p7 = scmp.lt.s32.totalorder %s10866_s4, %s10859_s29 }
  0xf3   : > { %p10862_p2 = pnand %p10860_p10, %p11457_p0 }
  0xf4   : > { %p10869_p8 = por %p10868_p7, %p10867_p4 }
  0xf5   : > { %p10863_p3 = pneg %p10862_p2 }
  0xf7   : > { %p10870_p11 = pnand %p10869_p8, %p10863_p3 }
  0xf9   : > { %10873 = shalt.err (!%p10870_p11)
}
  0xfa   : > { %10541 = dma.hbm_to_vmem [thread:$0]  (!%p11441_p12), %s12260_s16, 16, %s668_s6, [#allocation28]  }
  0xfb   : > { %s12321_s20 = sld [smem:[#allocation54_spill]] }
 0x101   : > { %s12322_s19 = smov %s12321_s20  ;;  %s10874_s0 = scalar_lea.hbm %s12321_s20, 14336 }
 0x102   : > { %p10875_p13 = scmp.ne.s32.totalorder %s12322_s19, %s10874_s0  ;;  %p10881_p5 = scmp.lt.u32.totalorder %s10874_s0, %s12322_s19 }
 0x104   : > { %p10877_p1 = pnand %p10875_p13, %p11457_p0 }
 0x106   : > { %p10878_p6 = pneg %p10877_p1 }
 0x108   : > { %p10883_p9 = pnand %p10881_p5, %p10878_p6 }
 0x10a   : > { %10886 = shalt.err (!%p10883_p9)
}
 0x10b   : > { %s10887_s1 = scalar_lea.vmem %s490_s3, 14336  ;;  %p10895_p4 = scmp.lt.s32.totalorder %s490_s3, %s490_s3 }
 0x10c   : > { %p10888_p10 = scmp.ne.s32.totalorder %s490_s3, %s10887_s1  ;;  %p10896_p7 = scmp.lt.s32.totalorder %s10887_s1, %s10887_s1 }
 0x10e   : > { %p10890_p2 = pnand %p10888_p10, %p11457_p0  ;;  %p10897_p8 = por %p10896_p7, %p10895_p4 }
 0x110   : > { %p10891_p3 = pneg %p10890_p2 }
 0x112   : > { %p10898_p11 = pnand %p10897_p8, %p10891_p3 }
 0x114   : > { %10901 = shalt.err (!%p10898_p11)
}
 0x115   : > { %10496 = dma.hbm_to_vmem [thread:$0]  (!%p11441_p12), %s12322_s19, 14336, %s490_s3, [#allocation4], %s12320_s28, %s12320_s28, %s12319_s23  }
 0x116   : > { %s11269_s24 = smov [#allocation8]   ;;  %s11270_s20 = smov [#allocation11]  }
 0x117   : > { %s514_s26 = sshll.u32 %s11269_s24, 4  ;;  %s538_s0 = sshll.u32 %s11270_s20, 4  ;;  %s515_s26 = int_to_ptr.vmem [resolvable:$true] %s514_s26  ;;  %s539_s0 = int_to_ptr.vmem [resolvable:$true] %s538_s0 }
 0x118   : > { %s12323_s29 = sld [smem:[#allocation56_spill]] }
 0x11e   : > { %s10902_s4 = scalar_lea.hbm %s12323_s29, 16 }
 0x11f   : > { %p10903_p13 = scmp.ne.s32.totalorder %s12323_s29, %s10902_s4  ;;  %p10909_p5 = scmp.lt.u32.totalorder %s10902_s4, %s12323_s29 }
 0x121   : > { %p10905_p1 = pnand %p10903_p13, %p11457_p0 }
 0x123   : > { %p10906_p6 = pneg %p10905_p1 }
 0x125   : > { %p10911_p9 = pnand %p10909_p5, %p10906_p6 }
 0x127   : > { %10914 = shalt.err (!%p10911_p9)
}
 0x128   : > { %s10915_s3 = scalar_lea.vmem %s515_s26, 16  ;;  %s10922_s21 = scalar_lea.vmem %s515_s26, 32 }
 0x129   : > { %p10916_p10 = scmp.ne.s32.totalorder %s515_s26, %s10915_s3  ;;  %p10923_p4 = scmp.lt.s32.totalorder %s515_s26, %s515_s26 }
 0x12a   : > { %p10924_p7 = scmp.lt.s32.totalorder %s10922_s21, %s10915_s3 }
 0x12b   : > { %p10918_p2 = pnand %p10916_p10, %p11457_p0 }
 0x12c   : > { %p10925_p8 = por %p10924_p7, %p10923_p4 }
 0x12d   : > { %p10919_p3 = pneg %p10918_p2 }
 0x12f   : > { %p10926_p11 = pnand %p10925_p8, %p10919_p3 }
 0x131   : > { %10929 = shalt.err (!%p10926_p11)
}
 0x132   : > { %10502 = dma.hbm_to_vmem [thread:$0]  (!%p11441_p12), %s12323_s29, 16, %s515_s26, [#allocation7]  }
 0x133   : > { %s12324_s5 = sld [smem:[#allocation58_spill]] }
 0x139   : > { %s10930_s2 = scalar_lea.hbm %s12324_s5, 16 }
 0x13a   : > { %p10931_p13 = scmp.ne.s32.totalorder %s12324_s5, %s10930_s2  ;;  %p10937_p5 = scmp.lt.u32.totalorder %s10930_s2, %s12324_s5 }
 0x13c   : > { %p10933_p1 = pnand %p10931_p13, %p11457_p0 }
 0x13e   : > { %p10934_p6 = pneg %p10933_p1 }
 0x140   : > { %p10939_p9 = pnand %p10937_p5, %p10934_p6 }
 0x142   : > { %10942 = shalt.err (!%p10939_p9)
}
 0x143   : > { %s10943_s3 = scalar_lea.vmem %s539_s0, 16  ;;  %s10950_s26 = scalar_lea.vmem %s539_s0, 32 }
 0x144   : > { %p10944_p10 = scmp.ne.s32.totalorder %s539_s0, %s10943_s3  ;;  %p10951_p4 = scmp.lt.s32.totalorder %s539_s0, %s539_s0 }
 0x145   : > { %p10952_p7 = scmp.lt.s32.totalorder %s10950_s26, %s10943_s3 }
 0x146   : > { %p10946_p2 = pnand %p10944_p10, %p11457_p0 }
 0x147   : > { %p10953_p8 = por %p10952_p7, %p10951_p4 }
 0x148   : > { %p10947_p3 = pneg %p10946_p2 }
 0x14a   : > { %p10954_p11 = pnand %p10953_p8, %p10947_p3 }
 0x14c   : > { %10957 = shalt.err (!%p10954_p11)
}
 0x14d   : > { %10508 = dma.hbm_to_vmem [thread:$0]  (!%p11441_p12), %s12324_s5, 16, %s539_s0, [#allocation10]  }
 0x14e   : > { %s11271_s24 = smov [#allocation14]   ;;  %s11272_s20 = smov [#allocation17]  }
 0x14f   : > { %s559_s10 = sshll.u32 %s11271_s24, 4  ;;  %s584_s2 = sshll.u32 %s11272_s20, 4  ;;  %s560_s10 = int_to_ptr.vmem [resolvable:$true] %s559_s10  ;;  %s585_s2 = int_to_ptr.vmem [resolvable:$true] %s584_s2 }
 0x150   : > { %s12325_s7 = sld [smem:[#allocation60_spill]] }
 0x156   : > { %s10958_s1 = scalar_lea.hbm %s12325_s7, 14336 }
 0x157   : > { %p10959_p13 = scmp.ne.s32.totalorder %s12325_s7, %s10958_s1  ;;  %p10965_p5 = scmp.lt.u32.totalorder %s10958_s1, %s12325_s7 }
 0x159   : > { %p10961_p1 = pnand %p10959_p13, %p11457_p0 }
 0x15b   : > { %p10962_p6 = pneg %p10961_p1 }
 0x15d   : > { %p10967_p9 = pnand %p10965_p5, %p10962_p6 }
 0x15f   : > { %10970 = shalt.err (!%p10967_p9)
}
 0x160   : > { %s10971_s0 = scalar_lea.vmem %s560_s10, 14336  ;;  %p10979_p4 = scmp.lt.s32.totalorder %s560_s10, %s560_s10 }
 0x161   : > { %p10972_p10 = scmp.ne.s32.totalorder %s560_s10, %s10971_s0  ;;  %p10980_p7 = scmp.lt.s32.totalorder %s10971_s0, %s10971_s0 }
 0x163   : > { %p10974_p2 = pnand %p10972_p10, %p11457_p0  ;;  %p10981_p8 = por %p10980_p7, %p10979_p4 }
 0x165   : > { %p10975_p3 = pneg %p10974_p2 }
 0x167   : > { %p10982_p11 = pnand %p10981_p8, %p10975_p3 }
 0x169   : > { %10985 = shalt.err (!%p10982_p11)
}
 0x16a   : > { %10514 = dma.hbm_to_vmem [thread:$0]  (!%p11441_p12), %s12325_s7, 14336, %s560_s10, [#allocation13], %s12320_s28, %s12320_s28, %s12319_s23  }
 0x16b   : > { %s12326_s9 = sld [smem:[#allocation62_spill]] }
 0x171   : > { %s10986_s4 = scalar_lea.hbm %s12326_s9, 16 }
 0x172   : > { %p10987_p13 = scmp.ne.s32.totalorder %s12326_s9, %s10986_s4  ;;  %p10993_p5 = scmp.lt.u32.totalorder %s10986_s4, %s12326_s9 }
 0x174   : > { %p10989_p1 = pnand %p10987_p13, %p11457_p0 }
 0x176   : > { %p10990_p6 = pneg %p10989_p1 }
 0x178   : > { %p10995_p9 = pnand %p10993_p5, %p10990_p6 }
 0x17a   : > { %10998 = shalt.err (!%p10995_p9)
}
 0x17b   : > { %s10999_s21 = scalar_lea.vmem %s585_s2, 16  ;;  %s11006_s10 = scalar_lea.vmem %s585_s2, 32 }
 0x17c   : > { %p11000_p10 = scmp.ne.s32.totalorder %s585_s2, %s10999_s21  ;;  %p11007_p4 = scmp.lt.s32.totalorder %s585_s2, %s585_s2 }
 0x17d   : > { %p11008_p7 = scmp.lt.s32.totalorder %s11006_s10, %s10999_s21 }
 0x17e   : > { %p11002_p2 = pnand %p11000_p10, %p11457_p0 }
 0x17f   : > { %p11009_p8 = por %p11008_p7, %p11007_p4 }
 0x180   : > { %p11003_p3 = pneg %p11002_p2 }
 0x182   : > { %p11010_p11 = pnand %p11009_p8, %p11003_p3 }
 0x184   : > { %11013 = shalt.err (!%p11010_p11)
}
 0x185   : > { %10520 = dma.hbm_to_vmem [thread:$0]  (!%p11441_p12), %s12326_s9, 16, %s585_s2, [#allocation16]  }
 0x186   : > { %s11273_s24 = smov [#allocation20]   ;;  %s11274_s25 = smov [#allocation23]  }
 0x187   : > { %s608_s20 = sshll.u32 %s11273_s24, 4  ;;  %s629_s4 = sshll.u32 %s11274_s25, 4  ;;  %s609_s20 = int_to_ptr.vmem [resolvable:$true] %s608_s20  ;;  %s630_s4 = int_to_ptr.vmem [resolvable:$true] %s629_s4 }
 0x188   : > { %s11014_s3 = scalar_lea.hbm %s12255_s11, 16 }
 0x189   : > { %p11015_p13 = scmp.ne.s32.totalorder %s12255_s11, %s11014_s3  ;;  %p11021_p5 = scmp.lt.u32.totalorder %s11014_s3, %s12255_s11 }
 0x18b   : > { %p11017_p1 = pnand %p11015_p13, %p11457_p0 }
 0x18d   : > { %p11018_p6 = pneg %p11017_p1 }
 0x18f   : > { %p11023_p9 = pnand %p11021_p5, %p11018_p6 }
 0x191   : > { %11026 = shalt.err (!%p11023_p9)
}
 0x192   : > { %s11027_s2 = scalar_lea.vmem %s609_s20, 16  ;;  %s11034_s8 = scalar_lea.vmem %s609_s20, 32 }
 0x193   : > { %p11028_p10 = scmp.ne.s32.totalorder %s609_s20, %s11027_s2  ;;  %p11035_p4 = scmp.lt.s32.totalorder %s609_s20, %s609_s20 }
 0x194   : > { %p11036_p7 = scmp.lt.s32.totalorder %s11034_s8, %s11027_s2 }
 0x195   : > { %p11030_p2 = pnand %p11028_p10, %p11457_p0 }
 0x196   : > { %p11037_p8 = por %p11036_p7, %p11035_p4 }
 0x197   : > { %p11031_p3 = pneg %p11030_p2 }
 0x199   : > { %p11038_p11 = pnand %p11037_p8, %p11031_p3 }
 0x19b   : > { %11041 = shalt.err (!%p11038_p11)
}
 0x19c   : > { %10526 = dma.hbm_to_vmem [thread:$0]  (!%p11441_p12), %s12255_s11, 16, %s609_s20, [#allocation19]  }
 0x19d   : > { %s11042_s3 = scalar_lea.hbm %s12257_s13, 49152 }
 0x19e   : > { %p11043_p13 = scmp.ne.s32.totalorder %s12257_s13, %s11042_s3  ;;  %p11049_p5 = scmp.lt.u32.totalorder %s11042_s3, %s12257_s13 }
 0x1a0   : > { %p11045_p1 = pnand %p11043_p13, %p11457_p0 }
 0x1a2   : > { %p11046_p6 = pneg %p11045_p1 }
 0x1a4   : > { %p11051_p9 = pnand %p11049_p5, %p11046_p6 }
 0x1a6   : > { %11054 = shalt.err (!%p11051_p9)
}
 0x1a7   : > { %s11055_s2 = scalar_lea.vmem %s630_s4, 49152  ;;  %p11063_p4 = scmp.lt.s32.totalorder %s630_s4, %s630_s4 }
 0x1a8   : > { %p11056_p10 = scmp.ne.s32.totalorder %s630_s4, %s11055_s2  ;;  %p11064_p7 = scmp.lt.s32.totalorder %s11055_s2, %s11055_s2 }
 0x1aa   : > { %p11058_p2 = pnand %p11056_p10, %p11457_p0  ;;  %p11065_p8 = por %p11064_p7, %p11063_p4 }
 0x1ac   : > { %p11059_p3 = pneg %p11058_p2 }
 0x1ae   : > { %p11066_p11 = pnand %p11065_p8, %p11059_p3 }
 0x1b0   : > { %11069 = shalt.err (!%p11066_p11)
}
 0x1b1   : > { %s11275_s20 = smov 384   ;;  %s11276_s8 = smov 24  }
 0x1b2   : > { %10532 = dma.hbm_to_vmem [thread:$0]  (!%p11441_p12), %s12257_s13, 49152, %s630_s4, [#allocation22], %s11275_s20, %s11275_s20, %s11276_s8  }
 0x1b3   : > { %s11277_s1 = smov [#allocation26]   ;;  %s11278_s3 = smov [#allocation29]  }
 0x1b4   : > { %s653_s6 = sshll.u32 %s11277_s1, 4  ;;  %s677_s26 = sshll.u32 %s11278_s3, 4  ;;  %s654_s6 = int_to_ptr.vmem [resolvable:$true] %s653_s6  ;;  %s678_s26 = int_to_ptr.vmem [resolvable:$true] %s677_s26 }
 0x1b5   : > { %s11070_s0 = scalar_lea.hbm %s12259_s15, 6144 }
 0x1b6   : > { %p11071_p13 = scmp.ne.s32.totalorder %s12259_s15, %s11070_s0  ;;  %p11077_p5 = scmp.lt.u32.totalorder %s11070_s0, %s12259_s15 }
 0x1b8   : > { %p11073_p1 = pnand %p11071_p13, %p11457_p0 }
 0x1ba   : > { %p11074_p6 = pneg %p11073_p1 }
 0x1bc   : > { %p11079_p9 = pnand %p11077_p5, %p11074_p6 }
 0x1be   : > { %11082 = shalt.err (!%p11079_p9)
}
 0x1bf   : > { %s11083_s4 = scalar_lea.vmem %s654_s6, 6144  ;;  %p11091_p4 = scmp.lt.s32.totalorder %s654_s6, %s654_s6 }
 0x1c0   : > { %p11084_p10 = scmp.ne.s32.totalorder %s654_s6, %s11083_s4  ;;  %p11092_p7 = scmp.lt.s32.totalorder %s11083_s4, %s11083_s4 }
 0x1c2   : > { %p11086_p2 = pnand %p11084_p10, %p11457_p0  ;;  %p11093_p8 = por %p11092_p7, %p11091_p4 }
 0x1c4   : > { %p11087_p3 = pneg %p11086_p2 }
 0x1c6   : > { %p11094_p11 = pnand %p11093_p8, %p11087_p3 }
 0x1c8   : > { %11097 = shalt.err (!%p11094_p11)
}
 0x1c9   : > { %10538 = dma.hbm_to_vmem [thread:$0]  (!%p11441_p12), %s12259_s15, 6144, %s654_s6, [#allocation25], %s12320_s28, %s12320_s28, %s12319_s23  }
 0x1ca   : > { %s11098_s8 = scalar_lea.hbm %s12261_s17, 2048 }
 0x1cb   : > { %p11099_p13 = scmp.ne.s32.totalorder %s12261_s17, %s11098_s8  ;;  %p11105_p5 = scmp.lt.u32.totalorder %s11098_s8, %s12261_s17 }
 0x1cd   : > { %p11101_p1 = pnand %p11099_p13, %p11457_p0 }
 0x1cf   : > { %p11102_p6 = pneg %p11101_p1 }
 0x1d1   : > { %p11107_p9 = pnand %p11105_p5, %p11102_p6 }
 0x1d3   : > { %11110 = shalt.err (!%p11107_p9)
}
 0x1d4   : > { %s11111_s21 = scalar_lea.vmem %s678_s26, 2048  ;;  %p11119_p4 = scmp.lt.s32.totalorder %s678_s26, %s678_s26 }
 0x1d5   : > { %p11112_p10 = scmp.ne.s32.totalorder %s678_s26, %s11111_s21  ;;  %p11120_p7 = scmp.lt.s32.totalorder %s11111_s21, %s11111_s21 }
 0x1d7   : > { %p11114_p2 = pnand %p11112_p10, %p11457_p0  ;;  %p11121_p8 = por %p11120_p7, %p11119_p4 }
 0x1d9   : > { %p11115_p3 = pneg %p11114_p2 }
 0x1db   : > { %p11122_p11 = pnand %p11121_p8, %p11115_p3 }
 0x1dd   : > { %11125 = shalt.err (!%p11122_p11)
}
 0x1de   : > { %10544 = dma.hbm_to_vmem [thread:$0]  (!%p11441_p12), %s12261_s17, 2048, %s678_s26, [#allocation28], %s12320_s28, %s12320_s28, %s12319_s23  }
 0x1df   : > { %s11279_s0 = smov [#allocation30]   ;;  %s11126_s7 = scalar_lea.hbm %s12262_s18, 16 }
 0x1e0   : > { %s691_s2 = sshll.u32 %s11279_s0, 4  ;;  %p11127_p13 = scmp.ne.s32.totalorder %s12262_s18, %s11126_s7  ;;  %s692_s2 = int_to_ptr.vmem [resolvable:$true] %s691_s2 }
 0x1e1   : > { %p11133_p5 = scmp.lt.u32.totalorder %s11126_s7, %s12262_s18 }
 0x1e2   : > { %p11129_p1 = pnand %p11127_p13, %p11457_p0 }
 0x1e4   : > { %p11130_p6 = pneg %p11129_p1 }
 0x1e6   : > { %p11135_p9 = pnand %p11133_p5, %p11130_p6 }
 0x1e8   : > { %11138 = shalt.err (!%p11135_p9)
}
 0x1e9   : > { %s11139_s23 = scalar_lea.vmem %s692_s2, 16  ;;  %s11146_s28 = scalar_lea.vmem %s692_s2, 32 }
 0x1ea   : > { %p11140_p10 = scmp.ne.s32.totalorder %s692_s2, %s11139_s23  ;;  %p11147_p4 = scmp.lt.s32.totalorder %s692_s2, %s692_s2 }
 0x1eb   : > { %p11148_p7 = scmp.lt.s32.totalorder %s11146_s28, %s11139_s23 }
 0x1ec   : > { %p11142_p2 = pnand %p11140_p10, %p11457_p0 }
 0x1ed   : > { %p11149_p8 = por %p11148_p7, %p11147_p4 }
 0x1ee   : > { %p11143_p3 = pneg %p11142_p2 }
 0x1f0   : > { %p11150_p11 = pnand %p11149_p8, %p11143_p3 }
 0x1f2   : > { %11153 = shalt.err (!%p11150_p11)
}
 0x1f3   : > { %10547 = dma.hbm_to_vmem [thread:$0]  (!%p11441_p12), %s12262_s18, 16, %s692_s2, [#allocation31]  }
 0x1f4   : > { %p12327_p13 = scmp.ne.s32.totalorder %s12310_s27, 0 }
 0x1f5   : > { %s12328_s1 = sld [smem:[#allocation48_spill]] (!%p12327_p13) }
 0x1f6   : > { %712 = sbr.rel (%p12327_p13) target bundleno = 3463 (0xd87), region = 96 }
 0x1fb   : > { %p12329_p1 = scmp.eq.s32.totalorder (!%p12327_p13), %s12328_s1, 0 }
 0x1fd   : > { %11199 = dma.done.wait (%p12329_p1), [#allocation4], 14336   ;;  %p12330_p0 = pmov %p12329_p1 }
 0x1ff   : > { %11201 = vsyncadd (%p12330_p0), [#allocation4], 4294952960  ;;  %p12331_p6 = pmov %p12330_p0 }
 0x200   : > { %p12332_p5 = pmov %p12330_p0 }
 0x201   : > { %11203 = dma.done.wait (%p12331_p6), [#allocation7], 32  }
 0x202   : > { %11205 = vsyncadd (%p12332_p5), [#allocation7], 4294967264  ;;  %p12333_p9 = pmov %p12330_p0 }
 0x203   : > { %p12334_p12 = pmov %p12330_p0 }
 0x204   : > { %11207 = dma.done.wait (%p12333_p9), [#allocation10], 14352  }
 0x205   : > { %11209 = vsyncadd (%p12334_p12), [#allocation10], 4294952944  ;;  %p12335_p10 = pmov %p12330_p0 }
 0x206   : > { %p12336_p2 = pmov %p12330_p0 }
 0x207   : > { %11211 = dma.done.wait (%p12335_p10), [#allocation13], 14352  }
 0x208   : > { %11213 = vsyncadd (%p12336_p2), [#allocation13], 4294952944  ;;  %p12337_p3 = pmov %p12330_p0 }
 0x209   : > { %p12338_p4 = pmov %p12330_p0 }
 0x20a   : > { %11215 = dma.done.wait (%p12337_p3), [#allocation16], 32  }
 0x20b   : > { %11217 = vsyncadd (%p12338_p4), [#allocation16], 4294967264  ;;  %p12339_p7 = pmov %p12330_p0 }
 0x20c   : > { %p12340_p8 = pmov %p12330_p0 }
 0x20d   : > { %11219 = dma.done.wait (%p12339_p7), [#allocation19], 14352  }
 0x20e   : > { %11221 = vsyncadd (%p12340_p8), [#allocation19], 4294952944  ;;  %p12341_p11 = pmov %p12330_p0 }
 0x20f   : > { %p12342_p13 = pmov %p12330_p0 }
 0x210   : > { %11223 = dma.done.wait (%p12341_p11), [#allocation22], 49168  }
 0x211   : > { %11225 = vsyncadd (%p12342_p13), [#allocation22], 4294918128  ;;  %p12343_p1 = pmov %p12330_p0 }
 0x213   : > { %11227 = dma.done.wait (%p12343_p1), [#allocation25], 6192  }
 0x214   : > { %11229 = vsyncadd (%p12330_p0), [#allocation25], 4294961104  ;;  %p12344_p6 = pmov %p12330_p0 }
 0x215   : > { %p12345_p5 = pmov %p12330_p0 }
 0x216   : > { %11231 = dma.done.wait (%p12344_p6), [#allocation28], 2064  }
 0x217   : > { %11233 = vsyncadd (%p12345_p5), [#allocation28], 4294965232  ;;  %p12346_p9 = pmov %p12330_p0 }
 0x218   : > { %p12347_p12 = pmov %p12330_p0 }
 0x219   : > { %11235 = dma.done.wait (%p12346_p9), [#allocation31], 16  }
 0x21a   : > { %11237 = vsyncadd (%p12347_p12), [#allocation31], 4294967280  ;;  %p835_p10 = scmp.lt.s32.totalorder %s12328_s1, 1  ;;  %v952_v0 = vld [vmem:[#allocation3 + $0x80] sm:$0xff]  ;;  %v953_v1 = vld [vmem:[#allocation3 + $0x88] sm:$0xff]  ;;  %s12348_s21 = sld [smem:[#allocation53_spill]] }
 0x21b   : > { %v954_v2 = vld [vmem:[#allocation3 + $0x90] sm:$0xff]  ;;  %v8936_v3 = vpack.c.bf16 %v953_v1, %v952_v0  ;;  %v955_v4 = vld [vmem:[#allocation3 + $0x98] sm:$0xff]  ;;  %v956_v6 = vld [vmem:[#allocation3 + $0xa0] sm:$0xff]  ;;  %vm11281_vm0 = vmmov 0   ;;  %s12349_s10 = sld [smem:[#allocation45_spill]]  ;;  %vm6296_vm2 = vcmask 1040384  }
 0x21c   : > { %s836_s30 = scalar_select %p835_p10, %s12328_s1, 1  ;;  %v8940_v5 = vpack.c.bf16 %v955_v4, %v954_v2  ;;  %v957_v7 = vld [vmem:[#allocation3 + $0xa8] sm:$0xff]  ;;  %v958_v11 = vld [vmem:[#allocation3 + $0xb0] sm:$0xff]  ;;  %v959_v12 = vld [vmem:[#allocation3 + $0xb8] sm:$0xff] }
 0x21d   : > { %8937 = vmatprep.subr.bf16.mxu0 %v8936_v3  ;;  %v8944_v8 = vpack.c.bf16 %v957_v7, %v956_v6  ;;  %v8948_v16 = vpack.c.bf16 %v959_v12, %v958_v11  ;;  %v960_v17 = vld [vmem:[#allocation3 + $0xc0] sm:$0xff]  ;;  %v961_v18 = vld [vmem:[#allocation3 + $0xc8] sm:$0xff]  ;;  %v962_v28 = vld [vmem:[#allocation3 + $0xd0] sm:$0xff]  ;;  %s12350_s0 = sld [smem:[#allocation51_spill]]  ;;  %s6607_s4 = sshll.u32 %s12328_s1, 4 }
 0x21e   : > { %s10418_s27 = smul.u32 192, %s836_s30  ;;  %8939 = vmatpush3.bf16.msra.mxu0 %v8936_v3  ;;  %v8952_v27 = vpack.c.bf16 %v961_v18, %v960_v17  ;;  %v963_v31 = vld [vmem:[#allocation3 + $0xd8] sm:$0xff]  ;;  %v964_v40 = vld [vmem:[#allocation3 + $0xe0] sm:$0xff]  ;;  %v965_v41 = vld [vmem:[#allocation3 + $0xe8] sm:$0xff]  ;;  %s12351_s8 = sld [smem:[#allocation64_spill]] }
 0x21f   : > { %8941 = vmatprep.subr.bf16.mxu0 %v8940_v5  ;;  %v8956_v37 = vpack.c.bf16 %v963_v31, %v962_v28  ;;  %v8960_v44 = vpack.c.bf16 %v965_v41, %v964_v40  ;;  %v966_v45 = vld [vmem:[#allocation3 + $0xf0] sm:$0xff]  ;;  %v967_v46 = vld [vmem:[#allocation3 + $0xf8] sm:$0xff]  ;;  %v911_v48 = vld [vmem:[#allocation3] sm:$0xff]  ;;  %s11283_s26 = smov [#allocation32]  }
 0x220   : > { %s11850_s6 = scalar_lea.vmem %s12348_s21, %s10418_s27  ;;  %v8964_v47 = vpack.c.bf16 %v967_v46, %v966_v45  ;;  %v912_v49 = vld [vmem:[#allocation3 + $0x8] sm:$0xff]  ;;  %v913_v51 = vld [vmem:[#allocation3 + $0x10] sm:$0xff]  ;;  %v914_v52 = vld [vmem:[#allocation3 + $0x18] sm:$0xff]  ;;  %s11158_s25 = sshll.u32 %s11283_s26, 4  ;;  %s11159_s25 = int_to_ptr.vmem [resolvable:$false] %s11158_s25 }
 0x221   : > { %v840_v9 = vld [vmem:[%s11850_s6] sm:$0xff]  ;;  %v841_v10 = vld [vmem:[%s11850_s6 + $0x8] sm:$0xff]  ;;  %v842_v13 = vld [vmem:[%s11850_s6 + $0x10] sm:$0xff]  ;;  %v8968_v50 = vpack.c.bf16 %v912_v49, %v911_v48  ;;  %v8972_v54 = vpack.c.bf16 %v914_v52, %v913_v51  ;;  %s833_s2 = sand.u32 1, %s12349_s10   ;;  %s11160_s1 = scalar_lea.vmem %s11159_s25, 32 }
 0x222   : > { %864 = vst [vmem:[#allocation2] sm:$0xff] %v840_v9  ;;  %865 = vst [vmem:[#allocation2 + $0x8] sm:$0xff] %v841_v10  ;;  %v843_v14 = vld [vmem:[%s11850_s6 + $0x18] sm:$0xff]  ;;  %8943 = vmatpush3.bf16.msra.mxu0 %v8940_v5  ;;  %v844_v15 = vld [vmem:[%s11850_s6 + $0x20] sm:$0xff]  ;;  %s834_s5 = scalar_lea.vmem [#allocation32], %s833_s2  ;;  %s6316_s23 = scalar_lea.sflag [#allocation5], %s833_s2 }
 0x223   : > { %866 = vst [vmem:[#allocation2 + $0x10] sm:$0xff] %v842_v13  ;;  %867 = vst [vmem:[#allocation2 + $0x18] sm:$0xff] %v843_v14  ;;  %8945 = vmatprep.subr.bf16.mxu0 %v8944_v8  ;;  %v845_v19 = vld [vmem:[%s11850_s6 + $0x28] sm:$0xff]  ;;  %v846_v20 = vld [vmem:[%s11850_s6 + $0x30] sm:$0xff]  ;;  %s6328_s7 = sshll.u32 %s834_s5, 4  ;;  %p12352_p3 = scmp.ne.s32.totalorder %s12350_s0, 0  ;;  %s12204_s7 = int_to_ptr.vmem [resolvable:$true] %s6328_s7 }
 0x224   : > { %868 = vst [vmem:[#allocation2 + $0x20] sm:$0xff] %v844_v15  ;;  %869 = vst [vmem:[#allocation2 + $0x28] sm:$0xff] %v845_v19  ;;  %v847_v21 = vld [vmem:[%s11850_s6 + $0x38] sm:$0xff]  ;;  %v848_v22 = vld [vmem:[%s11850_s6 + $0x40] sm:$0xff]  ;;  %s12202_s24 = scalar_lea.hbm %s12351_s8, %s6607_s4  ;;  %s11154_s28 = scalar_lea.vmem %s12204_s7, 16 }
 0x225   : > { %870 = vst [vmem:[#allocation2 + $0x30] sm:$0xff] %v846_v20  ;;  %871 = vst [vmem:[#allocation2 + $0x38] sm:$0xff] %v847_v21  ;;  %v849_v23 = vld [vmem:[%s11850_s6 + $0x48] sm:$0xff]  ;;  %v850_v24 = vld [vmem:[%s11850_s6 + $0x50] sm:$0xff]  ;;  %p11155_p2 = scmp.ne.s32.totalorder %s12204_s7, %s11154_s28  ;;  %p11161_p8 = scmp.lt.s32.totalorder %s12204_s7, %s11159_s25 }
 0x226   : > { %872 = vst [vmem:[#allocation2 + $0x40] sm:$0xff] %v848_v22  ;;  %8947 = vmatpush3.bf16.msra.mxu0 %v8944_v8  ;;  %873 = vst [vmem:[#allocation2 + $0x48] sm:$0xff] %v849_v23  ;;  %v851_v25 = vld [vmem:[%s11850_s6 + $0x58] sm:$0xff]  ;;  %v852_v26 = vld [vmem:[%s11850_s6 + $0x60] sm:$0xff]  ;;  %p11162_p11 = scmp.lt.s32.totalorder %s11160_s1, %s11154_s28 }
 0x227   : > { %8949 = vmatprep.subr.bf16.mxu0 %v8948_v16  ;;  %874 = vst [vmem:[#allocation2 + $0x50] sm:$0xff] %v850_v24  ;;  %875 = vst [vmem:[#allocation2 + $0x58] sm:$0xff] %v851_v25  ;;  %v853_v30 = vld [vmem:[%s11850_s6 + $0x68] sm:$0xff]  ;;  %v854_v32 = vld [vmem:[%s11850_s6 + $0x70] sm:$0xff]  ;;  %p11156_p4 = pnand %p11155_p2, %p12352_p3 }
 0x228   : > { %876 = vst [vmem:[#allocation2 + $0x60] sm:$0xff] %v852_v26  ;;  %877 = vst [vmem:[#allocation2 + $0x68] sm:$0xff] %v853_v30  ;;  %v855_v33 = vld [vmem:[%s11850_s6 + $0x78] sm:$0xff]  ;;  %v856_v34 = vld [vmem:[%s11850_s6 + $0x80] sm:$0xff]  ;;  %p11163_p13 = por %p11162_p11, %p11161_p8 }
 0x229   : > { %v928_v29 = vld [vmem:[#allocation2 + $0x1] ss:$2 sm:$0xff]  ;;  %878 = vst [vmem:[#allocation2 + $0x70] sm:$0xff] %v854_v32  ;;  %879 = vst [vmem:[#allocation2 + $0x78] sm:$0xff] %v855_v33  ;;  %v858_v36 = vld [vmem:[%s11850_s6 + $0x90] sm:$0xff]  ;;  %p11157_p7 = pneg %p11156_p4 }
 0x22a   : > { %7449 = vmatprep.mubr.f32.mxu0 %v928_v29  ;;  %v857_v35 = vld [vmem:[%s11850_s6 + $0x88] sm:$0xff]  ;;  %8951 = vmatpush3.bf16.msra.mxu0 %v8948_v16  ;;  %880 = vst [vmem:[#allocation2 + $0x80] sm:$0xff] %v856_v34  ;;  %v859_v38 = vld [vmem:[%s11850_s6 + $0x98] sm:$0xff]  ;;  %882 = vst [vmem:[#allocation2 + $0x90] sm:$0xff] %v858_v36 }
 0x22b   : > { %881 = vst [vmem:[#allocation2 + $0x88] sm:$0xff] %v857_v35  ;;  %8953 = vmatprep.subr.bf16.mxu0 %v8952_v27  ;;  %v860_v39 = vld [vmem:[%s11850_s6 + $0xa0] sm:$0xff]  ;;  %883 = vst [vmem:[#allocation2 + $0x98] sm:$0xff] %v859_v38  ;;  %v861_v42 = vld [vmem:[%s11850_s6 + $0xa8] sm:$0xff]  ;;  %p11164_p1 = pnand %p11163_p13, %p11157_p7 }
 0x22c   : > { %884 = vst [vmem:[#allocation2 + $0xa0] sm:$0xff] %v860_v39  ;;  %885 = vst [vmem:[#allocation2 + $0xa8] sm:$0xff] %v861_v42  ;;  %v862_v43 = vld [vmem:[%s11850_s6 + $0xb0] sm:$0xff]  ;;  %v932_v55 = vld [vmem:[#allocation2 + $0x21] ss:$2 sm:$0xff] }
 0x22d   : > { %886 = vst [vmem:[#allocation2 + $0xb0] sm:$0xff] %v862_v43  ;;  %v930_v53 = vld [vmem:[#allocation2 + $0x11] ss:$2 sm:$0xff]  ;;  %v915_v56 = vld [vmem:[#allocation3 + $0x20] sm:$0xff]  ;;  %v916_v57 = vld [vmem:[#allocation3 + $0x28] sm:$0xff] }
 0x22e   : > { %8955 = vmatpush3.bf16.msra.mxu0 %v8952_v27  ;;  %v934_v58 = vld [vmem:[#allocation2 + $0x31] ss:$2 sm:$0xff]  ;;  %v8976_v59 = vpack.c.bf16 %v916_v57, %v915_v56  ;;  %v936_v60 = vld [vmem:[#allocation2 + $0x41] ss:$2 sm:$0xff]  ;;  %v888_v17 = vld [vmem:[#allocation2] ss:$2 sm:$0xff] }
 0x22f   : > { %8957 = vmatprep.subr.bf16.mxu0 %v8956_v37  ;;  %v917_v61 = vld [vmem:[#allocation3 + $0x30] sm:$0xff]  ;;  %v918_v62 = vld [vmem:[#allocation3 + $0x38] sm:$0xff]  ;;  %v940_v2 = vld [vmem:[#allocation2 + $0x61] ss:$2 sm:$0xff] }
 0x230   : > { %v938_v63 = vld [vmem:[#allocation2 + $0x51] ss:$2 sm:$0xff]  ;;  %v8980_v1 = vpack.c.bf16 %v918_v62, %v917_v61  ;;  %v919_v3 = vld [vmem:[#allocation3 + $0x40] sm:$0xff]  ;;  %v920_v4 = vld [vmem:[#allocation3 + $0x48] sm:$0xff] }
 0x231   : > { %v863_v0 = vld [vmem:[%s11850_s6 + $0xb8] sm:$0xff]  ;;  %v8984_v6 = vpack.c.bf16 %v920_v4, %v919_v3  ;;  %v921_v8 = vld [vmem:[#allocation3 + $0x50] sm:$0xff]  ;;  %v923_v13 = vld [vmem:[#allocation3 + $0x60] sm:$0xff] }
 0x232   : > { %8959 = vmatpush3.bf16.msra.mxu0 %v8956_v37  ;;  %887 = vst [vmem:[#allocation2 + $0xb8] sm:$0xff] %v863_v0  ;;  %v942_v5 = vld [vmem:[#allocation2 + $0x71] ss:$2 sm:$0xff]  ;;  %v944_v7 = vld [vmem:[#allocation2 + $0x81] ss:$2 sm:$0xff] }
 0x233   : > { %8961 = vmatprep.subr.bf16.mxu0 %v8960_v44  ;;  %v922_v9 = vld [vmem:[#allocation3 + $0x58] sm:$0xff]  ;;  %v948_v12 = vld [vmem:[#allocation2 + $0xa1] ss:$2 sm:$0xff]  ;;  %v925_v18 = vld [vmem:[#allocation3 + $0x70] sm:$0xff] }
 0x234   : > { %v946_v10 = vld [vmem:[#allocation2 + $0x91] ss:$2 sm:$0xff]  ;;  %v8988_v11 = vpack.c.bf16 %v922_v9, %v921_v8  ;;  %v924_v14 = vld [vmem:[#allocation3 + $0x68] sm:$0xff]  ;;  %v1243_v21 = vld [vmem:[#allocation3 + $0x100] sm:$0xff] }
 0x235   : > { %v950_v15 = vld [vmem:[#allocation2 + $0xb1] ss:$2 sm:$0xf]  ;;  %v8992_v16 = vpack.c.bf16 %v924_v14, %v923_v13  ;;  %v926_v19 = vld [vmem:[#allocation3 + $0x78] sm:$0xff]  ;;  %v1244_v22 = vld [vmem:[#allocation3 + $0x108] sm:$0xff] }
 0x236   : > { %8963 = vmatpush3.bf16.msra.mxu0 %v8960_v44  ;;  %v8996_v20 = vpack.c.bf16 %v926_v19, %v925_v18  ;;  %v9000_v23 = vpack.c.bf16 %v1244_v22, %v1243_v21  ;;  %v1245_v24 = vld [vmem:[#allocation3 + $0x110] sm:$0xff]  ;;  %v1246_v25 = vld [vmem:[#allocation3 + $0x118] sm:$0xff]  ;;  %v892_v28 = vld [vmem:[#allocation2 + $0x20] ss:$2 sm:$0xff] }
 0x237   : > { %8965 = vmatprep.subr.bf16.mxu0 %v8964_v47  ;;  %v890_v26 = vld [vmem:[#allocation2 + $0x10] ss:$2 sm:$0xff]  ;;  %v9004_v27 = vpack.c.bf16 %v1246_v25, %v1245_v24  ;;  %v1247_v29 = vld [vmem:[#allocation3 + $0x120] sm:$0xff]  ;;  %v1248_v30 = vld [vmem:[#allocation3 + $0x128] sm:$0xff] }
 0x238   : > { %v894_v31 = vld [vmem:[#allocation2 + $0x30] ss:$2 sm:$0xff]  ;;  %v9008_v32 = vpack.c.bf16 %v1248_v30, %v1247_v29  ;;  %v896_v33 = vld [vmem:[#allocation2 + $0x40] ss:$2 sm:$0xff]  ;;  %v1397_v25 = vld [vmem:[#allocation2 + $0x3] ss:$2 sm:$0xff] }
 0x239   : > { %v1249_v34 = vld [vmem:[#allocation3 + $0x130] sm:$0xff]  ;;  %v1250_v35 = vld [vmem:[#allocation3 + $0x138] sm:$0xff]  ;;  %v900_v38 = vld [vmem:[#allocation2 + $0x60] ss:$2 sm:$0xff] }
 0x23a   : > { %8967 = vmatpush3.bf16.msra.mxu0 %v8964_v47  ;;  %v898_v36 = vld [vmem:[#allocation2 + $0x50] ss:$2 sm:$0xff]  ;;  %v9012_v37 = vpack.c.bf16 %v1250_v35, %v1249_v34  ;;  %v1251_v39 = vld [vmem:[#allocation3 + $0x140] sm:$0xff]  ;;  %v1252_v40 = vld [vmem:[#allocation3 + $0x148] sm:$0xff] }
 0x23b   : > { %8969 = vmatprep.subr.bf16.mxu0 %v8968_v50  ;;  %v902_v41 = vld [vmem:[#allocation2 + $0x70] ss:$2 sm:$0xff]  ;;  %v9016_v42 = vpack.c.bf16 %v1252_v40, %v1251_v39  ;;  %v904_v43 = vld [vmem:[#allocation2 + $0x80] ss:$2 sm:$0xff] }
 0x23c   : > { %v1253_v44 = vld [vmem:[#allocation3 + $0x150] sm:$0xff]  ;;  %v1254_v45 = vld [vmem:[#allocation3 + $0x158] sm:$0xff]  ;;  %v908_v48 = vld [vmem:[#allocation2 + $0xa0] ss:$2 sm:$0xff] }
 0x23d   : > { %7450 = vmatmul.mubr.f32.vlgmr.msra.gmra.mrb[0].mxu0 %v930_v53  ;;  %v906_v46 = vld [vmem:[#allocation2 + $0x90] ss:$2 sm:$0xff]  ;;  %v9020_v47 = vpack.c.bf16 %v1254_v45, %v1253_v44  ;;  %v1255_v49 = vld [vmem:[#allocation3 + $0x160] sm:$0xff]  ;;  %v1434_v22 = vld [vmem:[#allocation3 + $0x1e8] sm:$0xff] }
 0x23e   : > { %8971 = vmatpush3.bf16.msra.mxu0 %v8968_v50  ;;  %7452 = vmatprep.mubr.f32.mxu0 %v932_v55  ;;  %v1256_v50 = vld [vmem:[#allocation3 + $0x168] sm:$0xff]  ;;  %v910_v51 = vld [vmem:[#allocation2 + $0xb0] ss:$2 sm:$0xf]  ;;  %v1258_v55 = vld [vmem:[#allocation3 + $0x178] sm:$0xff] }
 0x23f   : > { %8973 = vmatprep.subr.bf16.mxu0 %v8972_v54  ;;  %v9024_v52 = vpack.c.bf16 %v1256_v50, %v1255_v49  ;;  %v1219_v53 = vld [vmem:[#allocation2 + $0x2] ss:$2 sm:$0xff]  ;;  %v1424_v61 = vld [vmem:[#allocation3 + $0x198] sm:$0xff] }
 0x240   : > { %v1421_v57 = vld [vmem:[#allocation3 + $0x180] sm:$0xff]  ;;  %v2200_v29 = vld [vmem:[#allocation9 + $0x88] sm:$0xff]  ;;  %v2201_v30 = vld [vmem:[#allocation9 + $0x90] sm:$0xff] }
 0x241   : > { %7453 = vmatmul.mubr.f32.gmra.mrb[2].mxu0 %v934_v58  ;;  %v1422_v58 = vld [vmem:[#allocation3 + $0x188] sm:$0xff]  ;;  %v1221_v62 = vld [vmem:[#allocation2 + $0x12] ss:$2 sm:$0xff]  ;;  %v1399_v45 = vld [vmem:[#allocation2 + $0x13] ss:$2 sm:$0xff] }
 0x242   : > { %8975 = vmatpush3.bf16.msra.mxu0 %v8972_v54  ;;  %7455 = vmatprep.mubr.f32.mxu0 %v936_v60  ;;  %v1257_v54 = vld [vmem:[#allocation3 + $0x170] sm:$0xff]  ;;  %v1433_v21 = vld [vmem:[#allocation3 + $0x1e0] sm:$0xff]  ;;  %v1604_v50 = vld [vmem:[#allocation3 + $0x228] sm:$0xff] }
 0x243   : > { %8977 = vmatprep.subr.bf16.mxu0 %v8976_v59  ;;  %v9028_v56 = vpack.c.bf16 %v1258_v55, %v1257_v54  ;;  %v1423_v60 = vld [vmem:[#allocation3 + $0x190] sm:$0xff]  ;;  %v9056_v24 = vpack.c.bf16 %v1434_v22, %v1433_v21  ;;  %v2203_v35 = vld [vmem:[#allocation9 + $0xa0] sm:$0xff]  ;;  %v2206_v44 = vld [vmem:[#allocation9 + $0xb8] sm:$0xff] }
 0x244   : > { %v1223_v0 = vld [vmem:[#allocation2 + $0x22] ss:$2 sm:$0xff]  ;;  %v1225_v3 = vld [vmem:[#allocation2 + $0x32] ss:$2 sm:$0xff] }
 0x245   : > { %7456 = vmatmul.mubr.f32.gmra.mrb[4].mxu0 %v938_v63  ;;  %v9036_v63 = vpack.c.bf16 %v1424_v61, %v1423_v60  ;;  %v1229_v8 = vld [vmem:[#allocation2 + $0x52] ss:$2 sm:$0xff]  ;;  %v1608_v60 = vld [vmem:[#allocation3 + $0x248] sm:$0xff]  ;;  %v1411_v61 = vld [vmem:[#allocation2 + $0x73] ss:$2 sm:$0xff] }
 0x246   : > { %8979 = vmatpush3.bf16.msra.mxu0 %v8976_v59  ;;  %7458 = vmatprep.mubr.f32.mxu0 %v940_v2  ;;  %v9032_v59 = vpack.c.bf16 %v1422_v58, %v1421_v57  ;;  %v1426_v2 = vld [vmem:[#allocation3 + $0x1a8] sm:$0xff]  ;;  %v1233_v13 = vld [vmem:[#allocation2 + $0x72] ss:$2 sm:$0xff] }
 0x247   : > { %8981 = vmatprep.subr.bf16.mxu0 %v8980_v1  ;;  %v1237_v18 = vld [vmem:[#allocation2 + $0x92] ss:$2 sm:$0xff]  ;;  %v1409_v58 = vld [vmem:[#allocation2 + $0x63] ss:$2 sm:$0xff] }
 0x248   : > { %v1603_v49 = vld [vmem:[#allocation3 + $0x220] sm:$0xff]  ;;  %v1605_v54 = vld [vmem:[#allocation3 + $0x230] sm:$0xff]  ;;  %v1606_v55 = vld [vmem:[#allocation3 + $0x238] sm:$0xff] }
 0x249   : > { %7459 = vmatmul.mubr.f32.gmra.mrb[6].mxu0 %v942_v5  ;;  %v1227_v5 = vld [vmem:[#allocation2 + $0x42] ss:$2 sm:$0xff]  ;;  %v9076_v57 = vpack.c.bf16 %v1606_v55, %v1605_v54  ;;  %v1755_v54 = vld [vmem:[#allocation2 + $0x15] ss:$2 sm:$0xff] }
 0x24a   : > { %8983 = vmatpush3.bf16.msra.mxu0 %v8980_v1  ;;  %7461 = vmatprep.mubr.f32.mxu0 %v944_v7  ;;  %v1425_v1 = vld [vmem:[#allocation3 + $0x1a0] sm:$0xff]  ;;  %v1428_v7 = vld [vmem:[#allocation3 + $0x1b8] sm:$0xff]  ;;  %v1782_v22 = vld [vmem:[#allocation3 + $0x2a8] sm:$0xff] }
 0x24b   : > { %8985 = vmatprep.subr.bf16.mxu0 %v8984_v6  ;;  %v9040_v4 = vpack.c.bf16 %v1426_v2, %v1425_v1  ;;  %v1610_v1 = vld [vmem:[#allocation3 + $0x258] sm:$0xff]  ;;  %v1781_v21 = vld [vmem:[#allocation3 + $0x2a0] sm:$0xff] }
 0x24c   : > { %v1415_v2 = vld [vmem:[#allocation2 + $0x93] ss:$2 sm:$0xff] }
 0x24d   : > { %7462 = vmatmul.mubr.f32.gmra.mrb[8].mxu0 %v946_v10  ;;  %v1231_v10 = vld [vmem:[#allocation2 + $0x62] ss:$2 sm:$0xff] }
 0x24e   : > { %8987 = vmatpush3.bf16.msra.mxu0 %v8984_v6  ;;  %7464 = vmatprep.mubr.f32.mxu0 %v948_v12  ;;  %v1427_v6 = vld [vmem:[#allocation3 + $0x1b0] sm:$0xff]  ;;  %v1430_v12 = vld [vmem:[#allocation3 + $0x1c8] sm:$0xff] }
 0x24f   : > { %8989 = vmatprep.subr.bf16.mxu0 %v8988_v11  ;;  %v9044_v9 = vpack.c.bf16 %v1428_v7, %v1427_v6  ;;  %v1612_v6 = vld [vmem:[#allocation3 + $0x268] sm:$0xff]  ;;  %v1419_v7 = vld [vmem:[#allocation2 + $0xb3] ss:$2 sm:$0xf] }
 0x251   : > { %7465 = vmatmul.mubr.f32.gmra.mrb[10].mxu0 %v950_v15  ;;  %v1235_v15 = vld [vmem:[#allocation2 + $0x82] ss:$2 sm:$0xff] }
 0x252   : > { %8991 = vmatpush3.bf16.msra.mxu0 %v8988_v11  ;;  %7499 = vmatprep.mubr.f32.mxu0 %v888_v17  ;;  %v1429_v11 = vld [vmem:[#allocation3 + $0x1c0] sm:$0xff]  ;;  %v1432_v17 = vld [vmem:[#allocation3 + $0x1d8] sm:$0xff] }
 0x253   : > { %8993 = vmatprep.subr.bf16.mxu0 %v8992_v16  ;;  %v9048_v14 = vpack.c.bf16 %v1430_v12, %v1429_v11  ;;  %v1614_v11 = vld [vmem:[#allocation3 + $0x278] sm:$0xff] }
 0x256   : > { %8995 = vmatpush3.bf16.msra.mxu0 %v8992_v16  ;;  %v1431_v16 = vld [vmem:[#allocation3 + $0x1d0] sm:$0xff] }
 0x257   : > { %8997 = vmatprep.subr.bf16.mxu0 %v8996_v20  ;;  %v9052_v19 = vpack.c.bf16 %v1432_v17, %v1431_v16  ;;  %v1779_v16 = vld [vmem:[#allocation3 + $0x290] sm:$0xff]  ;;  %v1780_v17 = vld [vmem:[#allocation3 + $0x298] sm:$0xff] }
 0x25a   : > { %8999 = vmatpush3.bf16.msra.mxu0 %v8996_v20  ;;  %v1239_v20 = vld [vmem:[#allocation2 + $0xa2] ss:$2 sm:$0xff] }
 0x25b   : > { %9001 = vmatprep.subr.bf16.mxu0 %v9000_v23 }
 0x25d   : > { %7500 = vmatmul.mubr.f32.vlgmr.msra.gmra.mrb[0].mxu0 %v890_v26  ;;  %v1435_v26 = vld [vmem:[#allocation3 + $0x1f0] sm:$0xff] }
 0x25e   : > { %9003 = vmatpush3.bf16.msra.mxu0 %v9000_v23  ;;  %7502 = vmatprep.mubr.f32.mxu0 %v892_v28  ;;  %v1241_v23 = vld [vmem:[#allocation2 + $0xb2] ss:$2 sm:$0xf]  ;;  %v2199_v28 = vld [vmem:[#allocation9 + $0x80] sm:$0xff] }
 0x25f   : > { %9005 = vmatprep.subr.bf16.mxu0 %v9004_v27 }
 0x261   : > { %7503 = vmatmul.mubr.f32.gmra.mrb[2].mxu0 %v894_v31  ;;  %v9160_v31 = vpack.c.bf16 %v2200_v29, %v2199_v28  ;;  %v1585_v28 = vld [vmem:[#allocation2 + $0x54] ss:$2 sm:$0xff] }
 0x262   : > { %9007 = vmatpush3.bf16.msra.mxu0 %v9004_v27  ;;  %7505 = vmatprep.mubr.f32.mxu0 %v896_v33  ;;  %v1436_v27 = vld [vmem:[#allocation3 + $0x1f8] sm:$0xff] }
 0x263   : > { %9009 = vmatprep.subr.bf16.mxu0 %v9008_v32  ;;  %v9060_v33 = vpack.c.bf16 %v1436_v27, %v1435_v26  ;;  %9161 = vmatprep.subr.bf16.mxu1 %v9160_v31  ;;  %v1783_v26 = vld [vmem:[#allocation3 + $0x2b0] sm:$0xff]  ;;  %v1784_v27 = vld [vmem:[#allocation3 + $0x2b8] sm:$0xff] }
 0x264   : > { %9163 = vmatpush3.bf16.msra.mxu1 %v9160_v31  ;;  %v9108_v29 = vpack.c.bf16 %v1784_v27, %v1783_v26  ;;  %v1785_v31 = vld [vmem:[#allocation3 + $0x2c0] sm:$0xff] }
 0x265   : > { %7506 = vmatmul.mubr.f32.gmra.mrb[4].mxu0 %v898_v36  ;;  %v2204_v36 = vld [vmem:[#allocation9 + $0xa8] sm:$0xff]  ;;  %v1945_v27 = vld [vmem:[#allocation2 + $0x76] ss:$2 sm:$0xff] }
 0x266   : > { %9011 = vmatpush3.bf16.msra.mxu0 %v9008_v32  ;;  %7508 = vmatprep.mubr.f32.mxu0 %v900_v38  ;;  %v2202_v32 = vld [vmem:[#allocation9 + $0x98] sm:$0xff]  ;;  %v1600_v38 = vld [vmem:[#allocation3 + $0x208] sm:$0xff]  ;;  %v9168_v39 = vpack.c.bf16 %v2204_v36, %v2203_v35  ;;  %v1787_v36 = vld [vmem:[#allocation3 + $0x2d0] sm:$0xff] }
 0x267   : > { %9013 = vmatprep.subr.bf16.mxu0 %v9012_v37  ;;  %v9164_v34 = vpack.c.bf16 %v2202_v32, %v2201_v30  ;;  %v1587_v30 = vld [vmem:[#allocation2 + $0x64] ss:$2 sm:$0xff] }
 0x268   : > { %v1786_v32 = vld [vmem:[#allocation3 + $0x2c8] sm:$0xff] }
 0x269   : > { %7509 = vmatmul.mubr.f32.gmra.mrb[6].mxu0 %v902_v41  ;;  %9165 = vmatprep.subr.bf16.mxu1 %v9164_v34  ;;  %v1601_v41 = vld [vmem:[#allocation3 + $0x210] sm:$0xff] }
 0x26a   : > { %9015 = vmatpush3.bf16.msra.mxu0 %v9012_v37  ;;  %7511 = vmatprep.mubr.f32.mxu0 %v904_v43  ;;  %v1599_v37 = vld [vmem:[#allocation3 + $0x200] sm:$0xff]  ;;  %v2205_v43 = vld [vmem:[#allocation9 + $0xb0] sm:$0xff] }
 0x26b   : > { %9017 = vmatprep.subr.bf16.mxu0 %v9016_v42  ;;  %v9064_v40 = vpack.c.bf16 %v1600_v38, %v1599_v37  ;;  %9167 = vmatpush3.bf16.msra.mxu1 %v9164_v34  ;;  %v9112_v34 = vpack.c.bf16 %v1786_v32, %v1785_v31  ;;  %v1591_v35 = vld [vmem:[#allocation2 + $0x84] ss:$2 sm:$0xff]  ;;  %v1788_v37 = vld [vmem:[#allocation3 + $0x2d8] sm:$0xff] }
 0x26c   : > { %9169 = vmatprep.subr.bf16.mxu1 %v9168_v39  ;;  %v1593_v38 = vld [vmem:[#allocation2 + $0x94] ss:$2 sm:$0xff]  ;;  %v2207_v32 = vld [vmem:[#allocation9 + $0xc0] sm:$0xff] }
 0x26d   : > { %7512 = vmatmul.mubr.f32.gmra.mrb[8].mxu0 %v906_v46  ;;  %v1943_v26 = vld [vmem:[#allocation2 + $0x66] ss:$2 sm:$0xff]  ;;  %v1953_v31 = vld [vmem:[#allocation2 + $0xb6] ss:$2 sm:$0xf] }
 0x26e   : > { %9019 = vmatpush3.bf16.msra.mxu0 %v9016_v42  ;;  %7514 = vmatprep.mubr.f32.mxu0 %v908_v48  ;;  %v1602_v42 = vld [vmem:[#allocation3 + $0x218] sm:$0xff]  ;;  %v9172_v48 = vpack.c.bf16 %v2206_v44, %v2205_v43 }
 0x26f   : > { %9021 = vmatprep.subr.bf16.mxu0 %v9020_v47  ;;  %v9068_v46 = vpack.c.bf16 %v1602_v42, %v1601_v41  ;;  %9171 = vmatpush3.bf16.msra.mxu1 %v9168_v39  ;;  %v9116_v39 = vpack.c.bf16 %v1788_v37, %v1787_v36  ;;  %v1789_v41 = vld [vmem:[#allocation3 + $0x2e0] sm:$0xff]  ;;  %v1790_v42 = vld [vmem:[#allocation3 + $0x2e8] sm:$0xff]  ;;  %v1597_v43 = vld [vmem:[#allocation2 + $0xb4] ss:$2 sm:$0xf] }
 0x270   : > { %9173 = vmatprep.subr.bf16.mxu1 %v9172_v48  ;;  %v9120_v44 = vpack.c.bf16 %v1790_v42, %v1789_v41  ;;  %v2210_v36 = vld [vmem:[#allocation9 + $0xd8] sm:$0xff]  ;;  %v2213_v41 = vld [vmem:[#allocation9 + $0xf0] sm:$0xff] }
 0x271   : > { %7515 = vmatmul.mubr.f32.gmra.mrb[10].mxu0 %v910_v51  ;;  %v1403_v51 = vld [vmem:[#allocation2 + $0x33] ss:$2 sm:$0xff] }
 0x272   : > { %9023 = vmatpush3.bf16.msra.mxu0 %v9020_v47  ;;  %7549 = vmatprep.mubr.f32.mxu0 %v1219_v53  ;;  %v1401_v47 = vld [vmem:[#allocation2 + $0x23] ss:$2 sm:$0xff] }
 0x273   : > { %9025 = vmatprep.subr.bf16.mxu0 %v9024_v52  ;;  %v1405_v53 = vld [vmem:[#allocation2 + $0x43] ss:$2 sm:$0xff]  ;;  %9175 = vmatpush3.bf16.msra.mxu1 %v9172_v48 }
 0x274   : > { %v2214_v42 = vld [vmem:[#allocation9 + $0xf8] sm:$0xff] }
 0x276   : > { %9027 = vmatpush3.bf16.msra.mxu0 %v9024_v52  ;;  %v9072_v52 = vpack.c.bf16 %v1604_v50, %v1603_v49  ;;  %v1955_v49 = vld [vmem:[#allocation3 + $0x300] sm:$0xff]  ;;  %v1956_v50 = vld [vmem:[#allocation3 + $0x308] sm:$0xff] }
 0x277   : > { %9029 = vmatprep.subr.bf16.mxu0 %v9028_v56 }
 0x27a   : > { %9031 = vmatpush3.bf16.msra.mxu0 %v9028_v56  ;;  %v1407_v56 = vld [vmem:[#allocation2 + $0x53] ss:$2 sm:$0xff] }
 0x27b   : > { %9033 = vmatprep.subr.bf16.mxu0 %v9032_v59 }
 0x27d   : > { %7550 = vmatmul.mubr.f32.vlgmr.msra.gmra.mrb[0].mxu0 %v1221_v62 }
 0x27e   : > { %9035 = vmatpush3.bf16.msra.mxu0 %v9032_v59  ;;  %7552 = vmatprep.mubr.f32.mxu0 %v1223_v0  ;;  %v1607_v59 = vld [vmem:[#allocation3 + $0x240] sm:$0xff]  ;;  %v1609_v0 = vld [vmem:[#allocation3 + $0x250] sm:$0xff] }
 0x27f   : > { %9037 = vmatprep.subr.bf16.mxu0 %v9036_v63  ;;  %v9080_v62 = vpack.c.bf16 %v1608_v60, %v1607_v59  ;;  %v1759_v59 = vld [vmem:[#allocation2 + $0x35] ss:$2 sm:$0xff] }
 0x281   : > { %7553 = vmatmul.mubr.f32.gmra.mrb[2].mxu0 %v1225_v3  ;;  %v9084_v3 = vpack.c.bf16 %v1610_v1, %v1609_v0  ;;  %v1763_v0 = vld [vmem:[#allocation2 + $0x55] ss:$2 sm:$0xff] }
 0x282   : > { %9039 = vmatpush3.bf16.msra.mxu0 %v9036_v63  ;;  %7555 = vmatprep.mubr.f32.mxu0 %v1227_v5  ;;  %v1413_v63 = vld [vmem:[#allocation2 + $0x83] ss:$2 sm:$0xff] }
 0x283   : > { %9041 = vmatprep.subr.bf16.mxu0 %v9040_v4  ;;  %v1611_v5 = vld [vmem:[#allocation3 + $0x260] sm:$0xff] }
 0x285   : > { %7556 = vmatmul.mubr.f32.gmra.mrb[4].mxu0 %v1229_v8  ;;  %v9088_v8 = vpack.c.bf16 %v1612_v6, %v1611_v5  ;;  %v1767_v5 = vld [vmem:[#allocation2 + $0x75] ss:$2 sm:$0xff] }
 0x286   : > { %9043 = vmatpush3.bf16.msra.mxu0 %v9040_v4  ;;  %7558 = vmatprep.mubr.f32.mxu0 %v1231_v10  ;;  %v1417_v4 = vld [vmem:[#allocation2 + $0xa3] ss:$2 sm:$0xff] }
 0x287   : > { %9045 = vmatprep.subr.bf16.mxu0 %v9044_v9  ;;  %v1613_v10 = vld [vmem:[#allocation3 + $0x270] sm:$0xff] }
 0x288   : > { %v9092_v12 = vpack.c.bf16 %v1614_v11, %v1613_v10  ;;  %v1771_v10 = vld [vmem:[#allocation2 + $0x95] ss:$2 sm:$0xff] }
 0x289   : > { %7559 = vmatmul.mubr.f32.gmra.mrb[6].mxu0 %v1233_v13  ;;  %v1777_v13 = vld [vmem:[#allocation3 + $0x280] sm:$0xff] }
 0x28a   : > { %9047 = vmatpush3.bf16.msra.mxu0 %v9044_v9  ;;  %7561 = vmatprep.mubr.f32.mxu0 %v1235_v15  ;;  %v1575_v9 = vld [vmem:[#allocation2 + $0x4] ss:$2 sm:$0xff] }
 0x28b   : > { %9049 = vmatprep.subr.bf16.mxu0 %v9048_v14 }
 0x28d   : > { %7562 = vmatmul.mubr.f32.gmra.mrb[8].mxu0 %v1237_v18  ;;  %v1577_v18 = vld [vmem:[#allocation2 + $0x14] ss:$2 sm:$0xff] }
 0x28e   : > { %9051 = vmatpush3.bf16.msra.mxu0 %v9048_v14  ;;  %7564 = vmatprep.mubr.f32.mxu0 %v1239_v20  ;;  %v1778_v14 = vld [vmem:[#allocation3 + $0x288] sm:$0xff] }
 0x28f   : > { %9053 = vmatprep.subr.bf16.mxu0 %v9052_v19  ;;  %v9096_v15 = vpack.c.bf16 %v1778_v14, %v1777_v13  ;;  %v1579_v20 = vld [vmem:[#allocation2 + $0x24] ss:$2 sm:$0xff] }
 0x290   : > { %v1967_v13 = vld [vmem:[#allocation3 + $0x360] sm:$0xff]  ;;  %v1968_v14 = vld [vmem:[#allocation3 + $0x368] sm:$0xff] }
 0x291   : > { %7565 = vmatmul.mubr.f32.gmra.mrb[10].mxu0 %v1241_v23  ;;  %v1581_v23 = vld [vmem:[#allocation2 + $0x34] ss:$2 sm:$0xff] }
 0x292   : > { %9055 = vmatpush3.bf16.msra.mxu0 %v9052_v19  ;;  %7599 = vmatprep.mubr.f32.mxu0 %v1397_v25  ;;  %v9100_v19 = vpack.c.bf16 %v1780_v17, %v1779_v16  ;;  %v1583_v25 = vld [vmem:[#allocation2 + $0x44] ss:$2 sm:$0xff]  ;;  %v9152_v16 = vpack.c.bf16 %v1968_v14, %v1967_v13 }
 0x293   : > { %9057 = vmatprep.subr.bf16.mxu0 %v9056_v24  ;;  %v1931_v17 = vld [vmem:[#allocation2 + $0x6] ss:$2 sm:$0xff] }
 0x296   : > { %9059 = vmatpush3.bf16.msra.mxu0 %v9056_v24  ;;  %v9104_v24 = vpack.c.bf16 %v1782_v22, %v1781_v21  ;;  %v1933_v21 = vld [vmem:[#allocation2 + $0x16] ss:$2 sm:$0xff]  ;;  %v1935_v22 = vld [vmem:[#allocation2 + $0x26] ss:$2 sm:$0xff] }
 0x297   : > { %9061 = vmatprep.subr.bf16.mxu0 %v9060_v33 }
 0x29a   : > { %9063 = vmatpush3.bf16.msra.mxu0 %v9060_v33  ;;  %v1589_v33 = vld [vmem:[#allocation2 + $0x74] ss:$2 sm:$0xff] }
 0x29b   : > { %9065 = vmatprep.subr.bf16.mxu0 %v9064_v40 }
 0x29d   : > { %7600 = vmatmul.mubr.f32.vlgmr.msra.gmra.mrb[0].mxu0 %v1399_v45  ;;  %v1753_v45 = vld [vmem:[#allocation2 + $0x5] ss:$2 sm:$0xff] }
 0x29e   : > { %9067 = vmatpush3.bf16.msra.mxu0 %v9064_v40  ;;  %7602 = vmatprep.mubr.f32.mxu0 %v1401_v47  ;;  %v1595_v40 = vld [vmem:[#allocation2 + $0xa4] ss:$2 sm:$0xff]  ;;  %v1792_v47 = vld [vmem:[#allocation3 + $0x2f8] sm:$0xff] }
 0x29f   : > { %9069 = vmatprep.subr.bf16.mxu0 %v9068_v46 }
 0x2a1   : > { %7603 = vmatmul.mubr.f32.gmra.mrb[2].mxu0 %v1403_v51  ;;  %v9128_v51 = vpack.c.bf16 %v1956_v50, %v1955_v49  ;;  %v11878_v49 = vld [vmem:[#allocation8] ss:$0 sm:$0xff] }
 0x2a2   : > { %9071 = vmatpush3.bf16.msra.mxu0 %v9068_v46  ;;  %7605 = vmatprep.mubr.f32.mxu0 %v1405_v53  ;;  %v1791_v46 = vld [vmem:[#allocation3 + $0x2f0] sm:$0xff]  ;;  %v1958_v53 = vld [vmem:[#allocation3 + $0x318] sm:$0xff] }
 0x2a3   : > { %9073 = vmatprep.subr.bf16.mxu0 %v9072_v52  ;;  %v9124_v48 = vpack.c.bf16 %v1792_v47, %v1791_v46  ;;  %v11876_v47 = vld [vmem:[#allocation6] ss:$0 sm:$0xff] }
 0x2a5   : > { %7606 = vmatmul.mubr.f32.gmra.mrb[4].mxu0 %v1407_v56  ;;  %v1757_v56 = vld [vmem:[#allocation2 + $0x25] ss:$2 sm:$0xff] }
 0x2a6   : > { %9075 = vmatpush3.bf16.msra.mxu0 %v9072_v52  ;;  %7608 = vmatprep.mubr.f32.mxu0 %v1409_v58  ;;  %v1957_v52 = vld [vmem:[#allocation3 + $0x310] sm:$0xff]  ;;  %v1960_v58 = vld [vmem:[#allocation3 + $0x328] sm:$0xff] }
 0x2a7   : > { %9077 = vmatprep.subr.bf16.mxu0 %v9076_v57  ;;  %v9132_v55 = vpack.c.bf16 %v1958_v53, %v1957_v52 }
 0x2a9   : > { %7609 = vmatmul.mubr.f32.gmra.mrb[6].mxu0 %v1411_v61  ;;  %v1761_v61 = vld [vmem:[#allocation2 + $0x45] ss:$2 sm:$0xff] }
 0x2aa   : > { %9079 = vmatpush3.bf16.msra.mxu0 %v9076_v57  ;;  %7611 = vmatprep.mubr.f32.mxu0 %v1413_v63  ;;  %v1959_v57 = vld [vmem:[#allocation3 + $0x320] sm:$0xff]  ;;  %v1962_v63 = vld [vmem:[#allocation3 + $0x338] sm:$0xff] }
 0x2ab   : > { %9081 = vmatprep.subr.bf16.mxu0 %v9080_v62  ;;  %v9136_v60 = vpack.c.bf16 %v1960_v58, %v1959_v57 }
 0x2ad   : > { %7612 = vmatmul.mubr.f32.gmra.mrb[8].mxu0 %v1415_v2  ;;  %v1765_v2 = vld [vmem:[#allocation2 + $0x65] ss:$2 sm:$0xff] }
 0x2ae   : > { %9083 = vmatpush3.bf16.msra.mxu0 %v9080_v62  ;;  %7614 = vmatprep.mubr.f32.mxu0 %v1417_v4  ;;  %v1961_v62 = vld [vmem:[#allocation3 + $0x330] sm:$0xff]  ;;  %v1964_v4 = vld [vmem:[#allocation3 + $0x348] sm:$0xff] }
 0x2af   : > { %9085 = vmatprep.subr.bf16.mxu0 %v9084_v3  ;;  %v9140_v1 = vpack.c.bf16 %v1962_v63, %v1961_v62 }
 0x2b1   : > { %7615 = vmatmul.mubr.f32.gmra.mrb[10].mxu0 %v1419_v7  ;;  %v1769_v7 = vld [vmem:[#allocation2 + $0x85] ss:$2 sm:$0xff] }
 0x2b2   : > { %9087 = vmatpush3.bf16.msra.mxu0 %v9084_v3  ;;  %7649 = vmatprep.mubr.f32.mxu0 %v1575_v9  ;;  %v1963_v3 = vld [vmem:[#allocation3 + $0x340] sm:$0xff]  ;;  %v1966_v9 = vld [vmem:[#allocation3 + $0x358] sm:$0xff] }
 0x2b3   : > { %9089 = vmatprep.subr.bf16.mxu0 %v9088_v8  ;;  %v9144_v6 = vpack.c.bf16 %v1964_v4, %v1963_v3 }
 0x2b6   : > { %9091 = vmatpush3.bf16.msra.mxu0 %v9088_v8  ;;  %v1965_v8 = vld [vmem:[#allocation3 + $0x350] sm:$0xff] }
 0x2b7   : > { %9093 = vmatprep.subr.bf16.mxu0 %v9092_v12  ;;  %v9148_v11 = vpack.c.bf16 %v1966_v9, %v1965_v8 }
 0x2ba   : > { %9095 = vmatpush3.bf16.msra.mxu0 %v9092_v12  ;;  %v1773_v12 = vld [vmem:[#allocation2 + $0xa5] ss:$2 sm:$0xff] }
 0x2bb   : > { %9097 = vmatprep.subr.bf16.mxu0 %v9096_v15 }
 0x2bd   : > { %7650 = vmatmul.mubr.f32.vlgmr.msra.gmra.mrb[0].mxu0 %v1577_v18  ;;  %v1969_v18 = vld [vmem:[#allocation3 + $0x370] sm:$0xff] }
 0x2be   : > { %9099 = vmatpush3.bf16.msra.mxu0 %v9096_v15  ;;  %7652 = vmatprep.mubr.f32.mxu0 %v1579_v20  ;;  %v1775_v15 = vld [vmem:[#allocation2 + $0xb5] ss:$2 sm:$0xf] }
 0x2bf   : > { %9101 = vmatprep.subr.bf16.mxu0 %v9100_v19 }
 0x2c1   : > { %7653 = vmatmul.mubr.f32.gmra.mrb[2].mxu0 %v1581_v23  ;;  %v1937_v23 = vld [vmem:[#allocation2 + $0x36] ss:$2 sm:$0xff] }
 0x2c2   : > { %9103 = vmatpush3.bf16.msra.mxu0 %v9100_v19  ;;  %7655 = vmatprep.mubr.f32.mxu0 %v1583_v25  ;;  %v1970_v19 = vld [vmem:[#allocation3 + $0x378] sm:$0xff] }
 0x2c3   : > { %9105 = vmatprep.subr.bf16.mxu0 %v9104_v24  ;;  %v9156_v20 = vpack.c.bf16 %v1970_v19, %v1969_v18  ;;  %v1941_v25 = vld [vmem:[#allocation2 + $0x56] ss:$2 sm:$0xff] }
 0x2c5   : > { %7656 = vmatmul.mubr.f32.gmra.mrb[4].mxu0 %v1585_v28  ;;  %v1947_v28 = vld [vmem:[#allocation2 + $0x86] ss:$2 sm:$0xff] }
 0x2c6   : > { %9107 = vmatpush3.bf16.msra.mxu0 %v9104_v24  ;;  %7658 = vmatprep.mubr.f32.mxu0 %v1587_v30  ;;  %v1939_v24 = vld [vmem:[#allocation2 + $0x46] ss:$2 sm:$0xff] }
 0x2c7   : > { %9109 = vmatprep.subr.bf16.mxu0 %v9108_v29  ;;  %v1951_v30 = vld [vmem:[#allocation2 + $0xa6] ss:$2 sm:$0xff] }
 0x2c9   : > { %7659 = vmatmul.mubr.f32.gmra.mrb[6].mxu0 %v1589_v33  ;;  %v2208_v33 = vld [vmem:[#allocation9 + $0xc8] sm:$0xff] }
 0x2ca   : > { %9111 = vmatpush3.bf16.msra.mxu0 %v9108_v29  ;;  %7661 = vmatprep.mubr.f32.mxu0 %v1591_v35  ;;  %v1949_v29 = vld [vmem:[#allocation2 + $0x96] ss:$2 sm:$0xff] }
 0x2cb   : > { %9113 = vmatprep.subr.bf16.mxu0 %v9112_v34  ;;  %v2209_v35 = vld [vmem:[#allocation9 + $0xd0] sm:$0xff] }
 0x2cc   : > { %v9180_v37 = vpack.c.bf16 %v2210_v36, %v2209_v35 }
 0x2cd   : > { %7662 = vmatmul.mubr.f32.gmra.mrb[8].mxu0 %v1593_v38  ;;  %v2211_v38 = vld [vmem:[#allocation9 + $0xe0] sm:$0xff] }
 0x2ce   : > { %9115 = vmatpush3.bf16.msra.mxu0 %v9112_v34  ;;  %7664 = vmatprep.mubr.f32.mxu0 %v1595_v40  ;;  %v9176_v34 = vpack.c.bf16 %v2208_v33, %v2207_v32 }
 0x2cf   : > { %9117 = vmatprep.subr.bf16.mxu0 %v9116_v39 }
 0x2d0   : > { %9177 = vmatprep.subr.bf16.mxu1 %v9176_v34 }
 0x2d1   : > { %7665 = vmatmul.mubr.f32.gmra.mrb[10].mxu0 %v1597_v43  ;;  %9179 = vmatpush3.bf16.msra.mxu1 %v9176_v34  ;;  %v9188_v43 = vpack.c.bf16 %v2214_v42, %v2213_v41 }
 0x2d2   : > { %9119 = vmatpush3.bf16.msra.mxu0 %v9116_v39  ;;  %7699 = vmatprep.mubr.f32.mxu0 %v1753_v45  ;;  %v2212_v39 = vld [vmem:[#allocation9 + $0xe8] sm:$0xff] }
 0x2d3   : > { %9121 = vmatprep.subr.bf16.mxu0 %v9120_v44  ;;  %9181 = vmatprep.subr.bf16.mxu1 %v9180_v37  ;;  %v9184_v40 = vpack.c.bf16 %v2212_v39, %v2211_v38  ;;  %v2177_v45 = vld [vmem:[#allocation9 + $0x8] sm:$0xff]  ;;  %v2182_v39 = vld [vmem:[#allocation9 + $0x30] sm:$0xff] }
 0x2d5   : > { %9183 = vmatpush3.bf16.msra.mxu1 %v9180_v37 }
 0x2d6   : > { %9123 = vmatpush3.bf16.msra.mxu0 %v9120_v44  ;;  %9185 = vmatprep.subr.bf16.mxu1 %v9184_v40  ;;  %v2176_v44 = vld [vmem:[#allocation9] sm:$0xff] }
 0x2d7   : > { %9125 = vmatprep.subr.bf16.mxu0 %v9124_v48  ;;  %v9192_v46 = vpack.c.bf16 %v2177_v45, %v2176_v44 }
 0x2d9   : > { %9187 = vmatpush3.bf16.msra.mxu1 %v9184_v40  ;;  %v2183_v40 = vld [vmem:[#allocation9 + $0x38] sm:$0xff] }
 0x2da   : > { %9127 = vmatpush3.bf16.msra.mxu0 %v9124_v48  ;;  %9189 = vmatprep.subr.bf16.mxu1 %v9188_v43  ;;  %v9204_v44 = vpack.c.bf16 %v2183_v40, %v2182_v39  ;;  %v2542_v39 = vld [vmem:[#allocation9 + $0x1b0] sm:$0xff]  ;;  %v2543_v40 = vld [vmem:[#allocation9 + $0x1b8] sm:$0xff] }
 0x2db   : > { %9129 = vmatprep.subr.bf16.mxu0 %v9128_v51 }
 0x2dd   : > { %7700 = vmatmul.mubr.f32.vlgmr.msra.gmra.mrb[0].mxu0 %v1755_v54  ;;  %9191 = vmatpush3.bf16.msra.mxu1 %v9188_v43 }
 0x2de   : > { %9131 = vmatpush3.bf16.msra.mxu0 %v9128_v51  ;;  %7702 = vmatprep.mubr.f32.mxu0 %v1757_v56 }
 0x2df   : > { %9133 = vmatprep.subr.bf16.mxu0 %v9132_v55  ;;  %9193 = vmatprep.subr.bf16.mxu1 %v9192_v46 }
 0x2e1   : > { %7703 = vmatmul.mubr.f32.gmra.mrb[2].mxu0 %v1759_v59 }
 0x2e2   : > { %9135 = vmatpush3.bf16.msra.mxu0 %v9132_v55  ;;  %7705 = vmatprep.mubr.f32.mxu0 %v1761_v61 }
 0x2e3   : > { %9137 = vmatprep.subr.bf16.mxu0 %v9136_v60 }
 0x2e5   : > { %7706 = vmatmul.mubr.f32.gmra.mrb[4].mxu0 %v1763_v0 }
 0x2e6   : > { %9139 = vmatpush3.bf16.msra.mxu0 %v9136_v60  ;;  %7708 = vmatprep.mubr.f32.mxu0 %v1765_v2 }
 0x2e7   : > { %9141 = vmatprep.subr.bf16.mxu0 %v9140_v1 }
 0x2e9   : > { %7709 = vmatmul.mubr.f32.gmra.mrb[6].mxu0 %v1767_v5 }
 0x2ea   : > { %9143 = vmatpush3.bf16.msra.mxu0 %v9140_v1  ;;  %7711 = vmatprep.mubr.f32.mxu0 %v1769_v7 }
 0x2eb   : > { %9145 = vmatprep.subr.bf16.mxu0 %v9144_v6 }
 0x2ed   : > { %7712 = vmatmul.mubr.f32.gmra.mrb[8].mxu0 %v1771_v10 }
 0x2ee   : > { %9147 = vmatpush3.bf16.msra.mxu0 %v9144_v6  ;;  %7714 = vmatprep.mubr.f32.mxu0 %v1773_v12 }
 0x2ef   : > { %9149 = vmatprep.subr.bf16.mxu0 %v9148_v11 }
 0x2f1   : > { %7715 = vmatmul.mubr.f32.gmra.mrb[10].mxu0 %v1775_v15  ;;  %v2178_v15 = vld [vmem:[#allocation9 + $0x10] sm:$0xff] }
 0x2f2   : > { %9151 = vmatpush3.bf16.msra.mxu0 %v9148_v11  ;;  %7749 = vmatprep.mubr.f32.mxu0 %v1931_v17 }
 0x2f3   : > { %9153 = vmatprep.subr.bf16.mxu0 %v9152_v16 }
 0x2f6   : > { %9155 = vmatpush3.bf16.msra.mxu0 %v9152_v16  ;;  %v2179_v16 = vld [vmem:[#allocation9 + $0x18] sm:$0xff] }
 0x2f7   : > { %9157 = vmatprep.subr.bf16.mxu0 %v9156_v20 }
 0x2fa   : > { %9159 = vmatpush3.bf16.msra.mxu0 %v9156_v20 }
 0x2fd   : > { %7750 = vmatmul.mubr.f32.vlgmr.msra.gmra.mrb[0].mxu0 %v1933_v21 }
 0x2fe   : > { %7752 = vmatprep.mubr.f32.mxu0 %v1935_v22 }
 0x301   : > { %7753 = vmatmul.mubr.f32.gmra.mrb[2].mxu0 %v1937_v23 }
 0x302   : > { %7755 = vmatprep.mubr.f32.mxu0 %v1939_v24  ;;  %v9196_v24 = vpack.c.bf16 %v2179_v16, %v2178_v15  ;;  %v2421_v15 = vld [vmem:[#allocation9 + $0x148] sm:$0xff] }
 0x305   : > { %7756 = vmatmul.mubr.f32.gmra.mrb[4].mxu0 %v1941_v25 }
 0x306   : > { %7758 = vmatprep.mubr.f32.mxu0 %v1943_v26 }
 0x309   : > { %7759 = vmatmul.mubr.f32.gmra.mrb[6].mxu0 %v1945_v27  ;;  %v2180_v27 = vld [vmem:[#allocation9 + $0x20] sm:$0xff] }
 0x30a   : > { %7761 = vmatprep.mubr.f32.mxu0 %v1947_v28  ;;  %v2181_v28 = vld [vmem:[#allocation9 + $0x28] sm:$0xff] }
 0x30b   : > { %v9200_v36 = vpack.c.bf16 %v2181_v28, %v2180_v27  ;;  %v2536_v27 = vld [vmem:[#allocation9 + $0x180] sm:$0xff]  ;;  %v2537_v28 = vld [vmem:[#allocation9 + $0x188] sm:$0xff] }
 0x30d   : > { %7762 = vmatmul.mubr.f32.gmra.mrb[8].mxu0 %v1949_v29 }
 0x30e   : > { %7764 = vmatprep.mubr.f32.mxu0 %v1951_v30 }
 0x311   : > { %7765 = vmatmul.mubr.f32.gmra.mrb[10].mxu0 %v1953_v31 }
 0x3d0   : > { %v7751_v48 = vpop.f32.mrb[0].mxu0 }
 0x3d1   : > { %v2116_v50 = vmul.f32 %v7751_v48, %v11876_v47  ;;  %v2037_v51 = vpop.f32.mrb[1].mxu0 }
 0x3d2   : > { %v2115_v52 = vmul.f32 %v11876_v47, %v2037_v51  ;;  %v2186_v51 = vld [vmem:[#allocation9 + $0x50] sm:$0xff] }
 0x3d3   : > { %v2135_v53 = vadd.f32 %v11878_v49, %v2116_v50 }
 0x3d4   : > { %v2134_v54 = vadd.f32 %v11878_v49, %v2115_v52  ;;  %v7754_v55 = vpop.f32.mrb[2].mxu0  ;;  %v2187_v52 = vld [vmem:[#allocation9 + $0x58] sm:$0xff] }
 0x3d5   : > { %v2147_v56 = vmax.f32 %v2135_v53, 0.0  ;;  %v2118_v57 = vmul.f32 %v7754_v55, %v11876_v47  ;;  %v2047_v58 = vpop.f32.mrb[3].mxu0  ;;  %v2189_v55 = vld [vmem:[#allocation9 + $0x68] sm:$0xff] }
 0x3d6   : > { %v2146_v59 = vmax.f32 %v2134_v54, 0.0  ;;  %v2117_v60 = vmul.f32 %v11876_v47, %v2047_v58  ;;  %v2188_v54 = vld [vmem:[#allocation9 + $0x60] sm:$0xff]  ;;  %v2190_v58 = vld [vmem:[#allocation9 + $0x70] sm:$0xff] }
 0x3d7   : > { %2159 = vst [vmem:[#allocation2 + $0x9] sm:$0xff] %v2147_v56  ;;  %v2137_v61 = vadd.f32 %v11878_v49, %v2118_v57  ;;  %v9216_v57 = vpack.c.bf16 %v2189_v55, %v2188_v54  ;;  %v2546_v54 = vld [vmem:[#allocation9 + $0x1d0] sm:$0xff]  ;;  %v2547_v55 = vld [vmem:[#allocation9 + $0x1d8] sm:$0xff] }
 0x3d8   : > { %2158 = vst [vmem:[#allocation2 + $0x1] sm:$0xff] %v2146_v59  ;;  %v2136_v62 = vadd.f32 %v11878_v49, %v2117_v60  ;;  %v7757_v63 = vpop.f32.mrb[4].mxu0  ;;  %v2191_v59 = vld [vmem:[#allocation9 + $0x78] sm:$0xff] }
 0x3d9   : > { %v2149_v0 = vmax.f32 %v2137_v61, 0.0  ;;  %v2120_v1 = vmul.f32 %v7757_v63, %v11876_v47  ;;  %v2057_v2 = vpop.f32.mrb[5].mxu0  ;;  %v9220_v60 = vpack.c.bf16 %v2191_v59, %v2190_v58  ;;  %v2412_v61 = vld [vmem:[#allocation9 + $0x100] sm:$0xff]  ;;  %v3091_v58 = vld [vmem:[#allocation14 + $0xa8] sm:$0xff]  ;;  %v9276_v59 = vpack.c.bf16 %v2547_v55, %v2546_v54 }
 0x3da   : > { %v2148_v3 = vmax.f32 %v2136_v62, 0.0  ;;  %v2119_v4 = vmul.f32 %v11876_v47, %v2057_v2  ;;  %v2413_v62 = vld [vmem:[#allocation9 + $0x108] sm:$0xff]  ;;  %v2792_v54 = vld [vmem:[#allocation9 + $0x2c0] sm:$0xff] }
 0x3db   : > { %2161 = vst [vmem:[#allocation2 + $0x19] sm:$0xff] %v2149_v0  ;;  %v2139_v5 = vadd.f32 %v11878_v49, %v2120_v1  ;;  %v9224_v63 = vpack.c.bf16 %v2413_v62, %v2412_v61  ;;  %v2414_v0 = vld [vmem:[#allocation9 + $0x110] sm:$0xff]  ;;  %v2415_v1 = vld [vmem:[#allocation9 + $0x118] sm:$0xff]  ;;  %v2549_v61 = vld [vmem:[#allocation9 + $0x1e8] sm:$0xff] }
 0x3dc   : > { %2160 = vst [vmem:[#allocation2 + $0x11] sm:$0xff] %v2148_v3  ;;  %v2138_v6 = vadd.f32 %v11878_v49, %v2119_v4  ;;  %v7760_v7 = vpop.f32.mrb[6].mxu0  ;;  %v9228_v2 = vpack.c.bf16 %v2415_v1, %v2414_v0  ;;  %v2416_v4 = vld [vmem:[#allocation9 + $0x120] sm:$0xff]  ;;  %v2793_v55 = vld [vmem:[#allocation9 + $0x2c8] sm:$0xff] }
 0x3dd   : > { %v2151_v8 = vmax.f32 %v2139_v5, 0.0  ;;  %v2122_v9 = vmul.f32 %v7760_v7, %v11876_v47  ;;  %v2067_v10 = vpop.f32.mrb[7].mxu0  ;;  %v2417_v5 = vld [vmem:[#allocation9 + $0x128] sm:$0xff]  ;;  %v3093_v0 = vld [vmem:[#allocation14 + $0xb8] sm:$0xff] }
 0x3de   : > { %v2150_v11 = vmax.f32 %v2138_v6, 0.0  ;;  %v2121_v12 = vmul.f32 %v11876_v47, %v2067_v10  ;;  %v9232_v7 = vpack.c.bf16 %v2417_v5, %v2416_v4  ;;  %v2419_v10 = vld [vmem:[#allocation9 + $0x138] sm:$0xff] }
 0x3df   : > { %2163 = vst [vmem:[#allocation2 + $0x29] sm:$0xff] %v2151_v8  ;;  %v2141_v13 = vadd.f32 %v11878_v49, %v2122_v9  ;;  %v2192_v14 = vld [vmem:[#allocation2 + $0x1] ss:$2 sm:$0xff]  ;;  %v2170_v56 = vld [vmem:[#allocation2] ss:$2 sm:$0xff]  ;;  %v2418_v9 = vld [vmem:[#allocation9 + $0x130] sm:$0xff] }
 0x3e0   : > { %2162 = vst [vmem:[#allocation2 + $0x21] sm:$0xff] %v2150_v11  ;;  %v2140_v17 = vadd.f32 %v11878_v49, %v2121_v12  ;;  %v7763_v18 = vpop.f32.mrb[8].mxu0  ;;  %7799 = vmatprep.mubr.f32.mxu1 %v2192_v14  ;;  %v9236_v12 = vpack.c.bf16 %v2419_v10, %v2418_v9  ;;  %v2420_v14 = vld [vmem:[#allocation9 + $0x140] sm:$0xff]  ;;  %v2662_v9 = vld [vmem:[#allocation9 + $0x210] sm:$0xff]  ;;  %v2663_v10 = vld [vmem:[#allocation9 + $0x218] sm:$0xff] }
 0x3e1   : > { %v2153_v19 = vmax.f32 %v2141_v13, 0.0  ;;  %v2124_v20 = vmul.f32 %v7763_v18, %v11876_v47  ;;  %v2077_v21 = vpop.f32.mrb[9].mxu0  ;;  %v2405_v16 = vld [vmem:[#allocation2 + $0x2] ss:$2 sm:$0xff]  ;;  %v2422_v18 = vld [vmem:[#allocation9 + $0x150] sm:$0xff] }
 0x3e2   : > { %v2152_v22 = vmax.f32 %v2140_v17, 0.0  ;;  %v2123_v23 = vmul.f32 %v11876_v47, %v2077_v21  ;;  %v9240_v17 = vpack.c.bf16 %v2421_v15, %v2420_v14  ;;  %v2424_v21 = vld [vmem:[#allocation9 + $0x160] sm:$0xff]  ;;  %v2665_v14 = vld [vmem:[#allocation9 + $0x228] sm:$0xff] }
 0x3e3   : > { %2165 = vst [vmem:[#allocation2 + $0x39] sm:$0xff] %v2153_v19  ;;  %v2143_v25 = vadd.f32 %v11878_v49, %v2124_v20  ;;  %v2193_v26 = vld [vmem:[#allocation2 + $0x11] ss:$2 sm:$0xff]  ;;  %v2171_v3 = vld [vmem:[#allocation2 + $0x10] ss:$2 sm:$0xff] }
 0x3e4   : > { %2164 = vst [vmem:[#allocation2 + $0x31] sm:$0xff] %v2152_v22  ;;  %v2142_v29 = vadd.f32 %v11878_v49, %v2123_v23  ;;  %v7766_v30 = vpop.f32.mrb[10].mxu0  ;;  %7800 = vmatmul.mubr.f32.vlgmr.msra.gmra.mrb[0].mxu1 %v2193_v26  ;;  %v2423_v19 = vld [vmem:[#allocation9 + $0x158] sm:$0xff]  ;;  %v2425_v22 = vld [vmem:[#allocation9 + $0x168] sm:$0xff] }
 0x3e5   : > { %v2155_v31 = vmax.f32 %v2143_v25, 0.0  ;;  %v2126_v32 = vmul.f32 %v7766_v30, %v11876_v47  ;;  %9195 = vmatpush3.bf16.msra.mxu1 %v9192_v46  ;;  %v2087_v33 = vpop.f32.mrb[11].mxu0  ;;  %v2184_v46 = vld [vmem:[#allocation9 + $0x40] sm:$0xff]  ;;  %v9244_v20 = vpack.c.bf16 %v2423_v19, %v2422_v18  ;;  %v9248_v23 = vpack.c.bf16 %v2425_v22, %v2424_v21  ;;  %v2427_v25 = vld [vmem:[#allocation9 + $0x178] sm:$0xff]  ;;  %v2538_v30 = vld [vmem:[#allocation9 + $0x190] sm:$0xff] }
 0x3e6   : > { %v2154_v34 = vmax.f32 %v2142_v29, 0.0  ;;  %v2125_v35 = vmul.f32 %v11876_v47, %v2087_v33  ;;  %9197 = vmatprep.subr.bf16.mxu1 %v9196_v24  ;;  %v2185_v47 = vld [vmem:[#allocation9 + $0x48] sm:$0xff]  ;;  %v9256_v29 = vpack.c.bf16 %v2537_v28, %v2536_v27  ;;  %v2666_v18 = vld [vmem:[#allocation9 + $0x230] sm:$0xff]  ;;  %v2667_v19 = vld [vmem:[#allocation9 + $0x238] sm:$0xff] }
 0x3e7   : > { %2167 = vst [vmem:[#allocation2 + $0x49] sm:$0xff] %v2155_v31  ;;  %v2145_v37 = vadd.f32 %v11878_v49, %v2126_v32  ;;  %v2194_v38 = vld [vmem:[#allocation2 + $0x21] ss:$2 sm:$0xff]  ;;  %v9208_v48 = vpack.c.bf16 %v2185_v47, %v2184_v46  ;;  %v2172_v6 = vld [vmem:[#allocation2 + $0x20] ss:$2 sm:$0xff]  ;;  %v9300_v21 = vpack.c.bf16 %v2667_v19, %v2666_v18  ;;  %v2670_v27 = vld [vmem:[#allocation9 + $0x250] sm:$0xff] }
 0x3e8   : > { %2166 = vst [vmem:[#allocation2 + $0x41] sm:$0xff] %v2154_v34  ;;  %v2144_v41 = vadd.f32 %v11878_v49, %v2125_v35  ;;  %7802 = vmatprep.mubr.f32.mxu1 %v2194_v38  ;;  %v9212_v49 = vpack.c.bf16 %v2187_v52, %v2186_v51  ;;  %v2539_v31 = vld [vmem:[#allocation9 + $0x198] sm:$0xff]  ;;  %v2540_v34 = vld [vmem:[#allocation9 + $0x1a0] sm:$0xff]  ;;  %v2541_v35 = vld [vmem:[#allocation9 + $0x1a8] sm:$0xff] }
 0x3e9   : > { %v2157_v42 = vmax.f32 %v2145_v37, 0.0  ;;  %9199 = vmatpush3.bf16.msra.mxu1 %v9196_v24  ;;  %v2426_v24 = vld [vmem:[#allocation9 + $0x170] sm:$0xff]  ;;  %v9260_v32 = vpack.c.bf16 %v2539_v31, %v2538_v30  ;;  %v9264_v37 = vpack.c.bf16 %v2541_v35, %v2540_v34  ;;  %v2545_v46 = vld [vmem:[#allocation9 + $0x1c8] sm:$0xff]  ;;  %v3089_v52 = vld [vmem:[#allocation14 + $0x98] sm:$0xff] }
 0x3ea   : > { %v2156_v43 = vmax.f32 %v2144_v41, 0.0  ;;  %9201 = vmatprep.subr.bf16.mxu1 %v9200_v36  ;;  %v9252_v26 = vpack.c.bf16 %v2427_v25, %v2426_v24  ;;  %v2406_v33 = vld [vmem:[#allocation2 + $0x12] ss:$2 sm:$0xff]  ;;  %v3086_v47 = vld [vmem:[#allocation14 + $0x80] sm:$0xff] }
 0x3eb   : > { %2169 = vst [vmem:[#allocation2 + $0x59] sm:$0xf] %v2157_v42  ;;  %v2195_v45 = vld [vmem:[#allocation2 + $0x31] ss:$2 sm:$0xff]  ;;  %v2173_v8 = vld [vmem:[#allocation2 + $0x30] ss:$2 sm:$0xff]  ;;  %v9268_v42 = vpack.c.bf16 %v2543_v40, %v2542_v39 }
 0x3ec   : > { %2168 = vst [vmem:[#allocation2 + $0x51] sm:$0xff] %v2156_v43  ;;  %7803 = vmatmul.mubr.f32.gmra.mrb[2].mxu1 %v2195_v45  ;;  %v2408_v38 = vld [vmem:[#allocation2 + $0x32] ss:$2 sm:$0xff]  ;;  %v2544_v43 = vld [vmem:[#allocation9 + $0x1c0] sm:$0xff] }
 0x3ed   : > { %9203 = vmatpush3.bf16.msra.mxu1 %v9200_v36  ;;  %v2407_v36 = vld [vmem:[#allocation2 + $0x22] ss:$2 sm:$0xff]  ;;  %v2529_v45 = vld [vmem:[#allocation2 + $0x3] ss:$2 sm:$0xff]  ;;  %v2786_v39 = vld [vmem:[#allocation9 + $0x290] sm:$0xff] }
 0x3ee   : > { %9205 = vmatprep.subr.bf16.mxu1 %v9204_v44  ;;  %v2531_v15 = vld [vmem:[#allocation2 + $0x23] ss:$2 sm:$0xff]  ;;  %v2653_v25 = vld [vmem:[#allocation2 + $0x4] ss:$2 sm:$0xff] }
 0x3ef   : > { %v2196_v50 = vld [vmem:[#allocation2 + $0x41] ss:$2 sm:$0xff]  ;;  %v2174_v11 = vld [vmem:[#allocation2 + $0x40] ss:$2 sm:$0xff] }
 0x3f0   : > { %7805 = vmatprep.mubr.f32.mxu1 %v2196_v50  ;;  %v2409_v41 = vld [vmem:[#allocation2 + $0x42] ss:$2 sm:$0xff]  ;;  %v3088_v50 = vld [vmem:[#allocation14 + $0x90] sm:$0xff] }
 0x3f1   : > { %9207 = vmatpush3.bf16.msra.mxu1 %v9204_v44  ;;  %v2669_v24 = vld [vmem:[#allocation9 + $0x248] sm:$0xff]  ;;  %v2671_v28 = vld [vmem:[#allocation9 + $0x258] sm:$0xff]  ;;  %v2672_v30 = vld [vmem:[#allocation9 + $0x260] sm:$0xff] }
 0x3f2   : > { %9209 = vmatprep.subr.bf16.mxu1 %v9208_v48  ;;  %v2673_v31 = vld [vmem:[#allocation9 + $0x268] sm:$0xff]  ;;  %v2675_v34 = vld [vmem:[#allocation9 + $0x278] sm:$0xff] }
 0x3f3   : > { %v2197_v53 = vld [vmem:[#allocation2 + $0x51] ss:$2 sm:$0xf]  ;;  %v2175_v13 = vld [vmem:[#allocation2 + $0x50] ss:$2 sm:$0xf] }
 0x3f4   : > { %7806 = vmatmul.mubr.f32.gmra.mrb[4].mxu1 %v2197_v53  ;;  %v2410_v44 = vld [vmem:[#allocation2 + $0x52] ss:$2 sm:$0xf]  ;;  %v11280_v53 = vmov 0.0|0.0   ;;  %v2787_v40 = vld [vmem:[#allocation9 + $0x298] sm:$0xff] }
 0x3f5   : > { %9211 = vmatpush3.bf16.msra.mxu1 %v9208_v48  ;;  %7840 = vmatprep.mubr.f32.mxu1 %v2170_v56  ;;  %v3087_v48 = vld [vmem:[#allocation14 + $0x88] sm:$0xff]  ;;  %v9388_v56 = vpack.c.bf16 %v3089_v52, %v3088_v50  ;;  %v2791_v50 = vld [vmem:[#allocation9 + $0x2b8] sm:$0xff] }
 0x3f6   : > { %9213 = vmatprep.subr.bf16.mxu1 %v9212_v49  ;;  %v9385_v51 = vpack.c.bf16 %v3087_v48, %v3086_v47  ;;  %9384 = vmatprep.subr.bf16.mxu0 %v11280_v53  ;;  %v2534_v22 = vld [vmem:[#allocation2 + $0x53] ss:$2 sm:$0xf]  ;;  %v2656_v47 = vld [vmem:[#allocation2 + $0x34] ss:$2 sm:$0xff] }
 0x3f7   : > { %v2790_v48 = vld [vmem:[#allocation9 + $0x2b0] sm:$0xff] }
 0x3f8   : > { %9386 = vmatpush3.bf16.msra.mxu0 %v9385_v51  ;;  %v2657_v51 = vld [vmem:[#allocation2 + $0x44] ss:$2 sm:$0xff]  ;;  %v9332_v52 = vpack.c.bf16 %v2791_v50, %v2790_v48  ;;  %v2782_v19 = vld [vmem:[#allocation2 + $0x55] ss:$2 sm:$0xf] }
 0x3f9   : > { %9215 = vmatpush3.bf16.msra.mxu1 %v9212_v49  ;;  %v9272_v49 = vpack.c.bf16 %v2545_v46, %v2544_v43  ;;  %9387 = vmatprep.subr.bf16.mxu0 %v11280_v53  ;;  %v2788_v43 = vld [vmem:[#allocation9 + $0x2a0] sm:$0xff] }
 0x3fa   : > { %9217 = vmatprep.subr.bf16.mxu1 %v9216_v57  ;;  %v3101_v48 = vld [vmem:[#allocation14 + $0xf8] sm:$0xff] }
 0x3fc   : > { %9389 = vmatpush3.bf16.msra.mxu0 %v9388_v56  ;;  %v2777_v56 = vld [vmem:[#allocation2 + $0x5] ss:$2 sm:$0xff] }
 0x3fd   : > { %9219 = vmatpush3.bf16.msra.mxu1 %v9216_v57  ;;  %v3090_v57 = vld [vmem:[#allocation14 + $0xa0] sm:$0xff]  ;;  %9390 = vmatprep.subr.bf16.mxu0 %v11280_v53 }
 0x3fe   : > { %9221 = vmatprep.subr.bf16.mxu1 %v9220_v60  ;;  %v9391_v62 = vpack.c.bf16 %v3091_v58, %v3090_v57  ;;  %v9336_v57 = vpack.c.bf16 %v2793_v55, %v2792_v54  ;;  %v2794_v58 = vld [vmem:[#allocation9 + $0x2d0] sm:$0xff]  ;;  %v6601_v54 = vld [vmem:[#allocation12] ss:$0 sm:$0xff] }
 0x400   : > { %9392 = vmatpush3.bf16.msra.mxu0 %v9391_v62  ;;  %v2797_v62 = vld [vmem:[#allocation9 + $0x2e8] sm:$0xff] }
 0x401   : > { %9223 = vmatpush3.bf16.msra.mxu1 %v9220_v60  ;;  %v2548_v60 = vld [vmem:[#allocation9 + $0x1e0] sm:$0xff]  ;;  %9393 = vmatprep.subr.bf16.mxu0 %v11280_v53 }
 0x402   : > { %9225 = vmatprep.subr.bf16.mxu1 %v9224_v63  ;;  %v9280_v1 = vpack.c.bf16 %v2549_v61, %v2548_v60  ;;  %v2796_v61 = vld [vmem:[#allocation9 + $0x2e0] sm:$0xff] }
 0x404   : > { %7841 = vmatmul.mubr.f32.vlgmr.msra.gmra.mrb[0].mxu1 %v2171_v3  ;;  %v2551_v3 = vld [vmem:[#allocation9 + $0x1f8] sm:$0xff] }
 0x405   : > { %7843 = vmatprep.mubr.f32.mxu1 %v2172_v6  ;;  %9227 = vmatpush3.bf16.msra.mxu1 %v9224_v63  ;;  %v3092_v63 = vld [vmem:[#allocation14 + $0xb0] sm:$0xff]  ;;  %v2660_v6 = vld [vmem:[#allocation9 + $0x200] sm:$0xff] }
 0x406   : > { %9229 = vmatprep.subr.bf16.mxu1 %v9228_v2  ;;  %v9394_v4 = vpack.c.bf16 %v3093_v0, %v3092_v63  ;;  %v9344_v63 = vpack.c.bf16 %v2797_v62, %v2796_v61  ;;  %v2798_v0 = vld [vmem:[#allocation9 + $0x2f0] sm:$0xff] }
 0x408   : > { %7844 = vmatmul.mubr.f32.gmra.mrb[2].mxu1 %v2173_v8  ;;  %9395 = vmatpush3.bf16.msra.mxu0 %v9394_v4  ;;  %v2909_v4 = vld [vmem:[#allocation9 + $0x308] sm:$0xff] }
 0x409   : > { %7846 = vmatprep.mubr.f32.mxu1 %v2174_v11  ;;  %9231 = vmatpush3.bf16.msra.mxu1 %v9228_v2  ;;  %v2550_v2 = vld [vmem:[#allocation9 + $0x1f0] sm:$0xff]  ;;  %v9292_v11 = vpack.c.bf16 %v2663_v10, %v2662_v9  ;;  %v2912_v10 = vld [vmem:[#allocation9 + $0x320] sm:$0xff] }
 0x40a   : > { %9233 = vmatprep.subr.bf16.mxu1 %v9232_v7  ;;  %v9284_v5 = vpack.c.bf16 %v2551_v3, %v2550_v2  ;;  %9396 = vmatprep.subr.bf16.mxu0 %v11280_v53  ;;  %v2908_v3 = vld [vmem:[#allocation9 + $0x300] sm:$0xff]  ;;  %v2778_v9 = vld [vmem:[#allocation2 + $0x15] ss:$2 sm:$0xff] }
 0x40c   : > { %7847 = vmatmul.mubr.f32.gmra.mrb[4].mxu1 %v2175_v13  ;;  %v2664_v13 = vld [vmem:[#allocation9 + $0x220] sm:$0xff] }
 0x40d   : > { %9235 = vmatpush3.bf16.msra.mxu1 %v9232_v7  ;;  %7881 = vmatprep.mubr.f32.mxu1 %v2405_v16  ;;  %v2661_v7 = vld [vmem:[#allocation9 + $0x208] sm:$0xff]  ;;  %v9296_v16 = vpack.c.bf16 %v2665_v14, %v2664_v13  ;;  %v2780_v14 = vld [vmem:[#allocation2 + $0x35] ss:$2 sm:$0xff] }
 0x40e   : > { %9237 = vmatprep.subr.bf16.mxu1 %v9236_v12  ;;  %v9288_v8 = vpack.c.bf16 %v2661_v7, %v2660_v6  ;;  %v2910_v6 = vld [vmem:[#allocation9 + $0x310] sm:$0xff]  ;;  %v2911_v7 = vld [vmem:[#allocation9 + $0x318] sm:$0xff] }
 0x411   : > { %9239 = vmatpush3.bf16.msra.mxu1 %v9236_v12  ;;  %v2530_v12 = vld [vmem:[#allocation2 + $0x13] ss:$2 sm:$0xff] }
 0x412   : > { %9241 = vmatprep.subr.bf16.mxu1 %v9240_v17 }
 0x415   : > { %9243 = vmatpush3.bf16.msra.mxu1 %v9240_v17  ;;  %v2532_v17 = vld [vmem:[#allocation2 + $0x33] ss:$2 sm:$0xff] }
 0x416   : > { %9245 = vmatprep.subr.bf16.mxu1 %v9244_v20 }
 0x419   : > { %9247 = vmatpush3.bf16.msra.mxu1 %v9244_v20  ;;  %v2533_v20 = vld [vmem:[#allocation2 + $0x43] ss:$2 sm:$0xff] }
 0x41a   : > { %9249 = vmatprep.subr.bf16.mxu1 %v9248_v23 }
 0x41d   : > { %9251 = vmatpush3.bf16.msra.mxu1 %v9248_v23  ;;  %v2668_v23 = vld [vmem:[#allocation9 + $0x240] sm:$0xff] }
 0x41e   : > { %9253 = vmatprep.subr.bf16.mxu1 %v9252_v26 }
 0x421   : > { %9255 = vmatpush3.bf16.msra.mxu1 %v9252_v26  ;;  %v9304_v26 = vpack.c.bf16 %v2669_v24, %v2668_v23  ;;  %v2918_v24 = vld [vmem:[#allocation9 + $0x350] sm:$0xff] }
 0x422   : > { %9257 = vmatprep.subr.bf16.mxu1 %v9256_v29 }
 0x424   : > { %7882 = vmatmul.mubr.f32.vlgmr.msra.gmra.mrb[0].mxu1 %v2406_v33  ;;  %v2674_v33 = vld [vmem:[#allocation9 + $0x270] sm:$0xff] }
 0x425   : > { %7884 = vmatprep.mubr.f32.mxu1 %v2407_v36  ;;  %9259 = vmatpush3.bf16.msra.mxu1 %v9256_v29  ;;  %v9308_v29 = vpack.c.bf16 %v2671_v28, %v2670_v27  ;;  %v9316_v35 = vpack.c.bf16 %v2675_v34, %v2674_v33  ;;  %v2784_v36 = vld [vmem:[#allocation9 + $0x280] sm:$0xff]  ;;  %v2921_v28 = vld [vmem:[#allocation9 + $0x368] sm:$0xff] }
 0x426   : > { %9261 = vmatprep.subr.bf16.mxu1 %v9260_v32  ;;  %v2920_v27 = vld [vmem:[#allocation9 + $0x360] sm:$0xff] }
 0x427   : > { %v2902_v33 = vld [vmem:[#allocation2 + $0x16] ss:$2 sm:$0xff]  ;;  %v2903_v34 = vld [vmem:[#allocation2 + $0x26] ss:$2 sm:$0xff] }
 0x428   : > { %7885 = vmatmul.mubr.f32.gmra.mrb[2].mxu1 %v2408_v38 }
 0x429   : > { %7887 = vmatprep.mubr.f32.mxu1 %v2409_v41  ;;  %9263 = vmatpush3.bf16.msra.mxu1 %v9260_v32  ;;  %v9312_v32 = vpack.c.bf16 %v2673_v31, %v2672_v30  ;;  %v9324_v41 = vpack.c.bf16 %v2787_v40, %v2786_v39  ;;  %v2922_v30 = vld [vmem:[#allocation9 + $0x370] sm:$0xff]  ;;  %v2923_v31 = vld [vmem:[#allocation9 + $0x378] sm:$0xff] }
 0x42a   : > { %9265 = vmatprep.subr.bf16.mxu1 %v9264_v37  ;;  %v3095_v39 = vld [vmem:[#allocation14 + $0xc8] sm:$0xff] }
 0x42c   : > { %7888 = vmatmul.mubr.f32.gmra.mrb[4].mxu1 %v2410_v44  ;;  %v2789_v44 = vld [vmem:[#allocation9 + $0x2a8] sm:$0xff] }
 0x42d   : > { %9267 = vmatpush3.bf16.msra.mxu1 %v9264_v37  ;;  %7922 = vmatprep.mubr.f32.mxu1 %v2529_v45  ;;  %v2785_v37 = vld [vmem:[#allocation9 + $0x288] sm:$0xff]  ;;  %v9328_v46 = vpack.c.bf16 %v2789_v44, %v2788_v43 }
 0x42e   : > { %9269 = vmatprep.subr.bf16.mxu1 %v9268_v42  ;;  %v9320_v38 = vpack.c.bf16 %v2785_v37, %v2784_v36  ;;  %v2655_v45 = vld [vmem:[#allocation2 + $0x24] ss:$2 sm:$0xff]  ;;  %v2906_v37 = vld [vmem:[#allocation2 + $0x56] ss:$2 sm:$0xf] }
 0x42f   : > { %v2905_v36 = vld [vmem:[#allocation2 + $0x46] ss:$2 sm:$0xff] }
 0x430   : > { %v3098_v44 = vld [vmem:[#allocation14 + $0xe0] sm:$0xff] }
 0x431   : > { %9271 = vmatpush3.bf16.msra.mxu1 %v9268_v42  ;;  %v2654_v42 = vld [vmem:[#allocation2 + $0x14] ss:$2 sm:$0xff] }
 0x432   : > { %9273 = vmatprep.subr.bf16.mxu1 %v9272_v49 }
 0x435   : > { %9275 = vmatpush3.bf16.msra.mxu1 %v9272_v49  ;;  %v2658_v49 = vld [vmem:[#allocation2 + $0x54] ss:$2 sm:$0xf] }
 0x436   : > { %9277 = vmatprep.subr.bf16.mxu1 %v9276_v59 }
 0x439   : > { %9279 = vmatpush3.bf16.msra.mxu1 %v9276_v59  ;;  %v2795_v59 = vld [vmem:[#allocation9 + $0x2d8] sm:$0xff] }
 0x43a   : > { %9281 = vmatprep.subr.bf16.mxu1 %v9280_v1  ;;  %v9340_v60 = vpack.c.bf16 %v2795_v59, %v2794_v58 }
 0x43d   : > { %9283 = vmatpush3.bf16.msra.mxu1 %v9280_v1  ;;  %v2799_v1 = vld [vmem:[#allocation9 + $0x2f8] sm:$0xff] }
 0x43e   : > { %9285 = vmatprep.subr.bf16.mxu1 %v9284_v5  ;;  %v9348_v2 = vpack.c.bf16 %v2799_v1, %v2798_v0 }
 0x441   : > { %9287 = vmatpush3.bf16.msra.mxu1 %v9284_v5  ;;  %v9352_v5 = vpack.c.bf16 %v2909_v4, %v2908_v3 }
 0x442   : > { %9289 = vmatprep.subr.bf16.mxu1 %v9288_v8 }
 0x444   : > { %7923 = vmatmul.mubr.f32.vlgmr.msra.gmra.mrb[0].mxu1 %v2530_v12  ;;  %v2779_v12 = vld [vmem:[#allocation2 + $0x25] ss:$2 sm:$0xff] }
 0x445   : > { %7925 = vmatprep.mubr.f32.mxu1 %v2531_v15  ;;  %9291 = vmatpush3.bf16.msra.mxu1 %v9288_v8  ;;  %v9356_v8 = vpack.c.bf16 %v2911_v7, %v2910_v6  ;;  %v2914_v15 = vld [vmem:[#allocation9 + $0x330] sm:$0xff] }
 0x446   : > { %9293 = vmatprep.subr.bf16.mxu1 %v9292_v11 }
 0x448   : > { %7926 = vmatmul.mubr.f32.gmra.mrb[2].mxu1 %v2532_v17  ;;  %v2781_v17 = vld [vmem:[#allocation2 + $0x45] ss:$2 sm:$0xff] }
 0x449   : > { %7928 = vmatprep.mubr.f32.mxu1 %v2533_v20  ;;  %9295 = vmatpush3.bf16.msra.mxu1 %v9292_v11  ;;  %v2913_v11 = vld [vmem:[#allocation9 + $0x328] sm:$0xff]  ;;  %v2916_v20 = vld [vmem:[#allocation9 + $0x340] sm:$0xff] }
 0x44a   : > { %9297 = vmatprep.subr.bf16.mxu1 %v9296_v16  ;;  %v9360_v13 = vpack.c.bf16 %v2913_v11, %v2912_v10  ;;  %v3066_v10 = vld [vmem:[#allocation14] sm:$0xff]  ;;  %v3067_v11 = vld [vmem:[#allocation14 + $0x8] sm:$0xff] }
 0x44c   : > { %7929 = vmatmul.mubr.f32.gmra.mrb[4].mxu1 %v2534_v22  ;;  %v2901_v22 = vld [vmem:[#allocation2 + $0x6] ss:$2 sm:$0xff] }
 0x44d   : > { %9299 = vmatpush3.bf16.msra.mxu1 %v9296_v16  ;;  %7963 = vmatprep.mubr.f32.mxu1 %v2653_v25  ;;  %v2915_v16 = vld [vmem:[#allocation9 + $0x338] sm:$0xff] }
 0x44e   : > { %9301 = vmatprep.subr.bf16.mxu1 %v9300_v21  ;;  %v9364_v18 = vpack.c.bf16 %v2915_v16, %v2914_v15  ;;  %v2919_v25 = vld [vmem:[#allocation9 + $0x358] sm:$0xff]  ;;  %v9409_v15 = vpack.c.bf16 %v3067_v11, %v3066_v10 }
 0x44f   : > { %v3372_v10 = vld [vmem:[#allocation14 + $0x198] sm:$0xff] }
 0x451   : > { %9303 = vmatpush3.bf16.msra.mxu1 %v9300_v21  ;;  %v2917_v21 = vld [vmem:[#allocation9 + $0x348] sm:$0xff] }
 0x452   : > { %9305 = vmatprep.subr.bf16.mxu1 %v9304_v26  ;;  %v9368_v23 = vpack.c.bf16 %v2917_v21, %v2916_v20  ;;  %v3070_v21 = vld [vmem:[#allocation14 + $0x20] sm:$0xff] }
 0x455   : > { %9307 = vmatpush3.bf16.msra.mxu1 %v9304_v26  ;;  %v9372_v26 = vpack.c.bf16 %v2919_v25, %v2918_v24  ;;  %v3072_v25 = vld [vmem:[#allocation14 + $0x30] sm:$0xff] }
 0x456   : > { %9309 = vmatprep.subr.bf16.mxu1 %v9308_v29 }
 0x459   : > { %9311 = vmatpush3.bf16.msra.mxu1 %v9308_v29  ;;  %v9376_v29 = vpack.c.bf16 %v2921_v28, %v2920_v27 }
 0x45a   : > { %9313 = vmatprep.subr.bf16.mxu1 %v9312_v32 }
 0x45d   : > { %9315 = vmatpush3.bf16.msra.mxu1 %v9312_v32  ;;  %v9380_v32 = vpack.c.bf16 %v2923_v31, %v2922_v30  ;;  %v3075_v30 = vld [vmem:[#allocation14 + $0x48] sm:$0xff] }
 0x45e   : > { %9317 = vmatprep.subr.bf16.mxu1 %v9316_v35 }
 0x461   : > { %9319 = vmatpush3.bf16.msra.mxu1 %v9316_v35  ;;  %v2904_v35 = vld [vmem:[#allocation2 + $0x36] ss:$2 sm:$0xff] }
 0x462   : > { %9321 = vmatprep.subr.bf16.mxu1 %v9320_v38 }
 0x464   : > { %7964 = vmatmul.mubr.f32.vlgmr.msra.gmra.mrb[0].mxu1 %v2654_v42  ;;  %v3097_v42 = vld [vmem:[#allocation14 + $0xd8] sm:$0xff] }
 0x465   : > { %7966 = vmatprep.mubr.f32.mxu1 %v2655_v45  ;;  %9323 = vmatpush3.bf16.msra.mxu1 %v9320_v38  ;;  %v3094_v38 = vld [vmem:[#allocation14 + $0xc0] sm:$0xff]  ;;  %v3099_v45 = vld [vmem:[#allocation14 + $0xe8] sm:$0xff] }
 0x466   : > { %9325 = vmatprep.subr.bf16.mxu1 %v9324_v41  ;;  %v9397_v40 = vpack.c.bf16 %v3095_v39, %v3094_v38  ;;  %v3080_v38 = vld [vmem:[#allocation14 + $0x70] sm:$0xff]  ;;  %v3081_v39 = vld [vmem:[#allocation14 + $0x78] sm:$0xff] }
 0x468   : > { %7967 = vmatmul.mubr.f32.gmra.mrb[2].mxu1 %v2656_v47  ;;  %9398 = vmatpush3.bf16.msra.mxu0 %v9397_v40  ;;  %v3100_v47 = vld [vmem:[#allocation14 + $0xf0] sm:$0xff]  ;;  %v9430_v40 = vpack.c.bf16 %v3081_v39, %v3080_v38  ;;  %v3381_v38 = vld [vmem:[#allocation14 + $0x1e0] sm:$0xff]  ;;  %v3382_v39 = vld [vmem:[#allocation14 + $0x1e8] sm:$0xff] }
 0x469   : > { %7969 = vmatprep.mubr.f32.mxu1 %v2657_v51  ;;  %9327 = vmatpush3.bf16.msra.mxu1 %v9324_v41  ;;  %v3096_v41 = vld [vmem:[#allocation14 + $0xd0] sm:$0xff]  ;;  %v9406_v50 = vpack.c.bf16 %v3101_v48, %v3100_v47  ;;  %v11282_v51 = vmov 0.0   ;;  %v3270_v48 = vld [vmem:[#allocation14 + $0x120] sm:$0xff] }
 0x46a   : > { %9329 = vmatprep.subr.bf16.mxu1 %v9328_v46  ;;  %9399 = vmatprep.subr.bf16.mxu0 %v11280_v53  ;;  %v9400_v43 = vpack.c.bf16 %v3097_v42, %v3096_v41  ;;  %v3266_v41 = vld [vmem:[#allocation14 + $0x100] sm:$0xff]  ;;  %v3267_v42 = vld [vmem:[#allocation14 + $0x108] sm:$0xff] }
 0x46b   : > { %8086 = vmatprep.mubr.msk.f32.mxu0 %vm11281_vm0, %v11282_v51 }
 0x46c   : > { %7970 = vmatmul.mubr.f32.gmra.mrb[4].mxu1 %v2658_v49  ;;  %9401 = vmatpush3.bf16.msra.mxu0 %v9400_v43  ;;  %v9433_v43 = vpack.c.bf16 %v3267_v42, %v3266_v41  ;;  %v9475_v41 = vpack.c.bf16 %v3382_v39, %v3381_v38  ;;  %v3383_v42 = vld [vmem:[#allocation14 + $0x1f0] sm:$0xff]  ;;  %v3679_v38 = vld [vmem:[#allocation14 + $0x308] sm:$0xff] }
 0x46d   : > { %9331 = vmatpush3.bf16.msra.mxu1 %v9328_v46  ;;  %8004 = vmatprep.mubr.f32.mxu1 %v2777_v56  ;;  %v9403_v46 = vpack.c.bf16 %v3099_v45, %v3098_v44  ;;  %v3268_v44 = vld [vmem:[#allocation14 + $0x110] sm:$0xff]  ;;  %v3269_v45 = vld [vmem:[#allocation14 + $0x118] sm:$0xff] }
 0x46e   : > { %9333 = vmatprep.subr.bf16.mxu1 %v9332_v52  ;;  %9402 = vmatprep.subr.bf16.mxu0 %v11280_v53  ;;  %v9436_v47 = vpack.c.bf16 %v3269_v45, %v3268_v44  ;;  %v3472_v45 = vld [vmem:[#allocation14 + $0x200] sm:$0xff] }
 0x470   : > { %9404 = vmatpush3.bf16.msra.mxu0 %v9403_v46 }
 0x471   : > { %9335 = vmatpush3.bf16.msra.mxu1 %v9332_v52  ;;  %9405 = vmatprep.subr.bf16.mxu0 %v11280_v53  ;;  %v6600_v52 = vld [vmem:[#allocation11] ss:$0 sm:$0xff] }
 0x472   : > { %9337 = vmatprep.subr.bf16.mxu1 %v9336_v57 }
 0x474   : > { %9407 = vmatpush3.bf16.msra.mxu0 %v9406_v50  ;;  %v3271_v50 = vld [vmem:[#allocation14 + $0x128] sm:$0xff] }
 0x475   : > { %9339 = vmatpush3.bf16.msra.mxu1 %v9336_v57  ;;  %9408 = vmatprep.subr.bf16.mxu0 %v11280_v53 }
 0x476   : > { %9341 = vmatprep.subr.bf16.mxu1 %v9340_v60 }
 0x479   : > { %9343 = vmatpush3.bf16.msra.mxu1 %v9340_v60 }
 0x47a   : > { %9345 = vmatprep.subr.bf16.mxu1 %v9344_v63 }
 0x47d   : > { %9347 = vmatpush3.bf16.msra.mxu1 %v9344_v63 }
 0x47e   : > { %9349 = vmatprep.subr.bf16.mxu1 %v9348_v2 }
 0x481   : > { %9351 = vmatpush3.bf16.msra.mxu1 %v9348_v2 }
 0x482   : > { %9353 = vmatprep.subr.bf16.mxu1 %v9352_v5 }
 0x484   : > { %8005 = vmatmul.mubr.f32.vlgmr.msra.gmra.mrb[0].mxu1 %v2778_v9 }
 0x485   : > { %8007 = vmatprep.mubr.f32.mxu1 %v2779_v12  ;;  %9355 = vmatpush3.bf16.msra.mxu1 %v9352_v5 }
 0x486   : > { %9357 = vmatprep.subr.bf16.mxu1 %v9356_v8 }
 0x488   : > { %8008 = vmatmul.mubr.f32.gmra.mrb[2].mxu1 %v2780_v14 }
 0x489   : > { %8010 = vmatprep.mubr.f32.mxu1 %v2781_v17  ;;  %9359 = vmatpush3.bf16.msra.mxu1 %v9356_v8  ;;  %v3068_v17 = vld [vmem:[#allocation14 + $0x10] sm:$0xff] }
 0x48a   : > { %9361 = vmatprep.subr.bf16.mxu1 %v9360_v13 }
 0x48c   : > { %8011 = vmatmul.mubr.f32.gmra.mrb[4].mxu1 %v2782_v19 }
 0x48d   : > { %9363 = vmatpush3.bf16.msra.mxu1 %v9360_v13  ;;  %8045 = vmatprep.mubr.f32.mxu1 %v2901_v22  ;;  %v3071_v22 = vld [vmem:[#allocation14 + $0x28] sm:$0xff] }
 0x48e   : > { %9365 = vmatprep.subr.bf16.mxu1 %v9364_v18  ;;  %v9415_v24 = vpack.c.bf16 %v3071_v22, %v3070_v21  ;;  %v3823_v21 = vld [vmem:[#allocation18 + $0x88] sm:$0xff]  ;;  %v3824_v22 = vld [vmem:[#allocation18 + $0x90] sm:$0xff] }
 0x491   : > { %9367 = vmatpush3.bf16.msra.mxu1 %v9364_v18  ;;  %v3069_v18 = vld [vmem:[#allocation14 + $0x18] sm:$0xff] }
 0x492   : > { %9369 = vmatprep.subr.bf16.mxu1 %v9368_v23  ;;  %v9412_v20 = vpack.c.bf16 %v3069_v18, %v3068_v17  ;;  %v3375_v17 = vld [vmem:[#allocation14 + $0x1b0] sm:$0xff]  ;;  %v3376_v18 = vld [vmem:[#allocation14 + $0x1b8] sm:$0xff] }
 0x495   : > { %9371 = vmatpush3.bf16.msra.mxu1 %v9368_v23 }
 0x496   : > { %9373 = vmatprep.subr.bf16.mxu1 %v9372_v26 }
 0x499   : > { %9375 = vmatpush3.bf16.msra.mxu1 %v9372_v26  ;;  %v3073_v26 = vld [vmem:[#allocation14 + $0x38] sm:$0xff] }
 0x49a   : > { %9377 = vmatprep.subr.bf16.mxu1 %v9376_v29  ;;  %v9418_v28 = vpack.c.bf16 %v3073_v26, %v3072_v25  ;;  %v3825_v25 = vld [vmem:[#allocation18 + $0x98] sm:$0xff] }
 0x49b   : > { %v3377_v26 = vld [vmem:[#allocation14 + $0x1c0] sm:$0xff] }
 0x49d   : > { %9379 = vmatpush3.bf16.msra.mxu1 %v9376_v29  ;;  %v3074_v29 = vld [vmem:[#allocation14 + $0x40] sm:$0xff] }
 0x49e   : > { %9381 = vmatprep.subr.bf16.mxu1 %v9380_v32  ;;  %v9421_v31 = vpack.c.bf16 %v3075_v30, %v3074_v29  ;;  %v3826_v29 = vld [vmem:[#allocation18 + $0xa0] sm:$0xff]  ;;  %v3827_v30 = vld [vmem:[#allocation18 + $0xa8] sm:$0xff] }
 0x4a1   : > { %9383 = vmatpush3.bf16.msra.mxu1 %v9380_v32  ;;  %v3076_v32 = vld [vmem:[#allocation14 + $0x50] sm:$0xff] }
 0x4a2   : > { %9552 = vmatprep.subr.bf16.mxu1 %v11280_v53 }
 0x4a4   : > { %8046 = vmatmul.mubr.f32.vlgmr.msra.gmra.mrb[0].mxu1 %v2902_v33  ;;  %v3077_v33 = vld [vmem:[#allocation14 + $0x58] sm:$0xff] }
 0x4a5   : > { %8048 = vmatprep.mubr.f32.mxu1 %v2903_v34  ;;  %v9424_v34 = vpack.c.bf16 %v3077_v33, %v3076_v32  ;;  %v3379_v32 = vld [vmem:[#allocation14 + $0x1d0] sm:$0xff]  ;;  %v3380_v33 = vld [vmem:[#allocation14 + $0x1d8] sm:$0xff] }
 0x4a8   : > { %8049 = vmatmul.mubr.f32.gmra.mrb[2].mxu1 %v2904_v35  ;;  %v3078_v35 = vld [vmem:[#allocation14 + $0x60] sm:$0xff] }
 0x4a9   : > { %8051 = vmatprep.mubr.f32.mxu1 %v2905_v36  ;;  %v3079_v36 = vld [vmem:[#allocation14 + $0x68] sm:$0xff] }
 0x4ac   : > { %8052 = vmatmul.mubr.f32.gmra.mrb[4].mxu1 %v2906_v37  ;;  %v9427_v37 = vpack.c.bf16 %v3079_v36, %v3078_v35  ;;  %v3828_v35 = vld [vmem:[#allocation18 + $0xb0] sm:$0xff]  ;;  %v3829_v36 = vld [vmem:[#allocation18 + $0xb8] sm:$0xff] }
 0x4ad   : > { %8373 = vmatprep.mubr.msk.f32.mxu1 %vm11281_vm0, %v11282_v51 }
 0x577   : > { %v8047_v49 = vpop.f32.mrb[0].mxu1 }
 0x578   : > { %v3033_v55 = vmul.f32 %v8047_v49, %v6600_v52  ;;  %v2990_v56 = vpop.f32.mrb[1].mxu1  ;;  %v9439_v49 = vpack.c.bf16 %v3271_v50, %v3270_v48  ;;  %v3474_v48 = vld [vmem:[#allocation14 + $0x210] sm:$0xff]  ;;  %v3475_v50 = vld [vmem:[#allocation14 + $0x218] sm:$0xff] }
 0x579   : > { %v3032_v57 = vmul.f32 %v6600_v52, %v2990_v56 }
 0x57a   : > { %v3046_v58 = vadd.f32 %v6601_v54, %v3033_v55  ;;  %v3273_v55 = vld [vmem:[#allocation14 + $0x138] sm:$0xff] }
 0x57b   : > { %v3045_v59 = vadd.f32 %v6601_v54, %v3032_v57  ;;  %v8050_v60 = vpop.f32.mrb[2].mxu1 }
 0x57c   : > { %v3052_v61 = vmax.f32 %v3046_v58, 0.0  ;;  %v3035_v62 = vmul.f32 %v8050_v60, %v6600_v52  ;;  %v3000_v63 = vpop.f32.mrb[3].mxu1  ;;  %v3274_v58 = vld [vmem:[#allocation14 + $0x140] sm:$0xff] }
 0x57d   : > { %v3051_v0 = vmax.f32 %v3045_v59, 0.0  ;;  %v3034_v1 = vmul.f32 %v6600_v52, %v3000_v63  ;;  %v3275_v59 = vld [vmem:[#allocation14 + $0x148] sm:$0xff] }
 0x57e   : > { %3058 = vst [vmem:[#allocation2 + $0x9] sm:$0xff] %v3052_v61  ;;  %v3048_v2 = vadd.f32 %v6601_v54, %v3035_v62  ;;  %v9445_v60 = vpack.c.bf16 %v3275_v59, %v3274_v58  ;;  %v3276_v61 = vld [vmem:[#allocation14 + $0x150] sm:$0xff]  ;;  %v3277_v62 = vld [vmem:[#allocation14 + $0x158] sm:$0xff] }
 0x57f   : > { %3057 = vst [vmem:[#allocation2 + $0x1] sm:$0xff] %v3051_v0  ;;  %v3047_v3 = vadd.f32 %v6601_v54, %v3034_v1  ;;  %v8053_v4 = vpop.f32.mrb[4].mxu1  ;;  %v9448_v63 = vpack.c.bf16 %v3277_v62, %v3276_v61  ;;  %v3278_v0 = vld [vmem:[#allocation14 + $0x160] sm:$0xff]  ;;  %v3279_v1 = vld [vmem:[#allocation14 + $0x168] sm:$0xff]  ;;  %v3478_v58 = vld [vmem:[#allocation14 + $0x230] sm:$0xff] }
 0x580   : > { %v3054_v5 = vmax.f32 %v3048_v2, 0.0  ;;  %v3037_v6 = vmul.f32 %v8053_v4, %v6600_v52  ;;  %v3010_v7 = vpop.f32.mrb[5].mxu1  ;;  %v9451_v2 = vpack.c.bf16 %v3279_v1, %v3278_v0  ;;  %v3281_v4 = vld [vmem:[#allocation14 + $0x178] sm:$0xff]  ;;  %v3480_v62 = vld [vmem:[#allocation14 + $0x240] sm:$0xff]  ;;  %v3482_v1 = vld [vmem:[#allocation14 + $0x250] sm:$0xff] }
 0x581   : > { %v3053_v8 = vmax.f32 %v3047_v3, 0.0  ;;  %v3036_v9 = vmul.f32 %v6600_v52, %v3010_v7  ;;  %v3280_v3 = vld [vmem:[#allocation14 + $0x170] sm:$0xff]  ;;  %v3370_v7 = vld [vmem:[#allocation14 + $0x188] sm:$0xff]  ;;  %v3479_v59 = vld [vmem:[#allocation14 + $0x238] sm:$0xff] }
 0x582   : > { %3060 = vst [vmem:[#allocation2 + $0x19] sm:$0xff] %v3054_v5  ;;  %v3050_v12 = vadd.f32 %v6601_v54, %v3037_v6  ;;  %v9454_v5 = vpack.c.bf16 %v3281_v4, %v3280_v3  ;;  %v3369_v6 = vld [vmem:[#allocation14 + $0x180] sm:$0xff]  ;;  %v9490_v61 = vpack.c.bf16 %v3479_v59, %v3478_v58  ;;  %v3689_v58 = vld [vmem:[#allocation14 + $0x358] sm:$0xff] }
 0x583   : > { %3059 = vst [vmem:[#allocation2 + $0x11] sm:$0xff] %v3053_v8  ;;  %v3049_v13 = vadd.f32 %v6601_v54, %v3036_v9  ;;  %v3272_v54 = vld [vmem:[#allocation14 + $0x130] sm:$0xff]  ;;  %v9457_v8 = vpack.c.bf16 %v3370_v7, %v3369_v6  ;;  %v3484_v4 = vld [vmem:[#allocation14 + $0x260] sm:$0xff] }
 0x584   : > { %v3056_v14 = vmax.f32 %v3050_v12, 0.0  ;;  %v9442_v57 = vpack.c.bf16 %v3273_v55, %v3272_v54  ;;  %v3371_v9 = vld [vmem:[#allocation14 + $0x190] sm:$0xff]  ;;  %v3476_v54 = vld [vmem:[#allocation14 + $0x220] sm:$0xff]  ;;  %v3477_v55 = vld [vmem:[#allocation14 + $0x228] sm:$0xff] }
 0x585   : > { %v3055_v16 = vmax.f32 %v3049_v13, 0.0  ;;  %v9460_v12 = vpack.c.bf16 %v3372_v10, %v3371_v9  ;;  %v3373_v13 = vld [vmem:[#allocation14 + $0x1a0] sm:$0xff]  ;;  %v3486_v7 = vld [vmem:[#allocation14 + $0x270] sm:$0xff] }
 0x586   : > { %3062 = vst [vmem:[#allocation2 + $0x29] sm:$0xf] %v3056_v14  ;;  %v3082_v19 = vld [vmem:[#allocation2 + $0x1] ss:$2 sm:$0xff]  ;;  %v3063_v46 = vld [vmem:[#allocation2] ss:$2 sm:$0xff] }
 0x587   : > { %3061 = vst [vmem:[#allocation2 + $0x21] sm:$0xff] %v3055_v16  ;;  %8087 = vmatmul.mubr.f32.vlgmr.msra.gmra.mrb[12].mxu0 %v3082_v19  ;;  %v3262_v11 = vld [vmem:[#allocation2 + $0x2] ss:$2 sm:$0xff] }
 0x588   : > { %9410 = vmatpush3.bf16.msra.mxu0 %v9409_v15  ;;  %8089 = vmatprep.mubr.msk.f32.mxu0 %vm11281_vm0, %v11282_v51  ;;  %v3374_v14 = vld [vmem:[#allocation14 + $0x1a8] sm:$0xff]  ;;  %v3575_v10 = vld [vmem:[#allocation14 + $0x280] sm:$0xff] }
 0x589   : > { %9411 = vmatprep.subr.bf16.mxu0 %v11280_v53  ;;  %v9463_v16 = vpack.c.bf16 %v3374_v14, %v3373_v13  ;;  %v3577_v13 = vld [vmem:[#allocation14 + $0x290] sm:$0xff]  ;;  %v3578_v14 = vld [vmem:[#allocation14 + $0x298] sm:$0xff] }
 0x58a   : > { %v3083_v23 = vld [vmem:[#allocation2 + $0x11] ss:$2 sm:$0xff]  ;;  %v3064_v52 = vld [vmem:[#allocation2 + $0x10] ss:$2 sm:$0xff] }
 0x58b   : > { %8090 = vmatmul.mubr.f32.gmra.mrb[14].mxu0 %v3083_v23  ;;  %v3263_v15 = vld [vmem:[#allocation2 + $0x12] ss:$2 sm:$0xff]  ;;  %v9466_v23 = vpack.c.bf16 %v3376_v18, %v3375_v17  ;;  %v3579_v17 = vld [vmem:[#allocation14 + $0x2a0] sm:$0xff] }
 0x58c   : > { %9413 = vmatpush3.bf16.msra.mxu0 %v9412_v20  ;;  %8092 = vmatprep.mubr.msk.f32.mxu0 %vm11281_vm0, %v11282_v51  ;;  %v3822_v20 = vld [vmem:[#allocation18 + $0x80] sm:$0xff] }
 0x58d   : > { %9414 = vmatprep.subr.bf16.mxu0 %v11280_v53  ;;  %v3580_v18 = vld [vmem:[#allocation14 + $0x2a8] sm:$0xff] }
 0x58e   : > { %v3084_v27 = vld [vmem:[#allocation2 + $0x21] ss:$2 sm:$0xf]  ;;  %v3065_v56 = vld [vmem:[#allocation2 + $0x20] ss:$2 sm:$0xf] }
 0x58f   : > { %8093 = vmatmul.mubr.f32.gmra.mrb[16].mxu0 %v3084_v27  ;;  %v3264_v19 = vld [vmem:[#allocation2 + $0x22] ss:$2 sm:$0xf]  ;;  %v3378_v27 = vld [vmem:[#allocation14 + $0x1c8] sm:$0xff] }
 0x590   : > { %9416 = vmatpush3.bf16.msra.mxu0 %v9415_v24  ;;  %8127 = vmatprep.mubr.msk.f32.mxu0 %vm11281_vm0, %v11282_v51  ;;  %v9553_v24 = vpack.c.bf16 %v3823_v21, %v3822_v20  ;;  %v9511_v20 = vpack.c.bf16 %v3580_v18, %v3579_v17  ;;  %v3581_v21 = vld [vmem:[#allocation14 + $0x2b0] sm:$0xff]  ;;  %v6602_v17 = vld [vmem:[#allocation15] ss:$0 sm:$0xff] }
 0x591   : > { %9417 = vmatprep.subr.bf16.mxu0 %v11280_v53 }
 0x592   : > { %9554 = vmatpush3.bf16.msra.mxu1 %v9553_v24 }
 0x593   : > { %9555 = vmatprep.subr.bf16.mxu1 %v11280_v53 }
 0x594   : > { %9419 = vmatpush3.bf16.msra.mxu0 %v9418_v28  ;;  %v9556_v28 = vpack.c.bf16 %v3825_v25, %v3824_v22  ;;  %v3582_v22 = vld [vmem:[#allocation14 + $0x2b8] sm:$0xff]  ;;  %v3583_v25 = vld [vmem:[#allocation14 + $0x2c0] sm:$0xff] }
 0x595   : > { %9420 = vmatprep.subr.bf16.mxu0 %v11280_v53  ;;  %v9514_v24 = vpack.c.bf16 %v3582_v22, %v3581_v21 }
 0x596   : > { %9557 = vmatpush3.bf16.msra.mxu1 %v9556_v28  ;;  %v3585_v28 = vld [vmem:[#allocation14 + $0x2d0] sm:$0xff] }
 0x597   : > { %9558 = vmatprep.subr.bf16.mxu1 %v11280_v53 }
 0x598   : > { %9422 = vmatpush3.bf16.msra.mxu0 %v9421_v31  ;;  %v9469_v31 = vpack.c.bf16 %v3378_v27, %v3377_v26  ;;  %v3584_v26 = vld [vmem:[#allocation14 + $0x2c8] sm:$0xff] }
 0x599   : > { %9423 = vmatprep.subr.bf16.mxu0 %v11280_v53  ;;  %v9517_v27 = vpack.c.bf16 %v3584_v26, %v3583_v25 }
 0x59c   : > { %9425 = vmatpush3.bf16.msra.mxu0 %v9424_v34  ;;  %v9559_v34 = vpack.c.bf16 %v3827_v30, %v3826_v29  ;;  %v3586_v29 = vld [vmem:[#allocation14 + $0x2d8] sm:$0xff] }
 0x59d   : > { %9426 = vmatprep.subr.bf16.mxu0 %v11280_v53  ;;  %v9520_v30 = vpack.c.bf16 %v3586_v29, %v3585_v28 }
 0x59e   : > { %9560 = vmatpush3.bf16.msra.mxu1 %v9559_v34  ;;  %v3589_v34 = vld [vmem:[#allocation14 + $0x2f0] sm:$0xff] }
 0x59f   : > { %9561 = vmatprep.subr.bf16.mxu1 %v11280_v53 }
 0x5a0   : > { %9428 = vmatpush3.bf16.msra.mxu0 %v9427_v37  ;;  %v9472_v37 = vpack.c.bf16 %v3380_v33, %v3379_v32  ;;  %v3588_v32 = vld [vmem:[#allocation14 + $0x2e8] sm:$0xff] }
 0x5a1   : > { %9429 = vmatprep.subr.bf16.mxu0 %v11280_v53 }
 0x5a4   : > { %9431 = vmatpush3.bf16.msra.mxu0 %v9430_v40  ;;  %v9562_v40 = vpack.c.bf16 %v3829_v36, %v3828_v35  ;;  %v3590_v35 = vld [vmem:[#allocation14 + $0x2f8] sm:$0xff] }
 0x5a5   : > { %9432 = vmatprep.subr.bf16.mxu0 %v11280_v53  ;;  %v9526_v36 = vpack.c.bf16 %v3590_v35, %v3589_v34  ;;  %v3804_v34 = vld [vmem:[#allocation18] sm:$0xff]  ;;  %v3805_v35 = vld [vmem:[#allocation18 + $0x8] sm:$0xff] }
 0x5a6   : > { %9563 = vmatpush3.bf16.msra.mxu1 %v9562_v40  ;;  %v3680_v40 = vld [vmem:[#allocation14 + $0x310] sm:$0xff] }
 0x5a7   : > { %8128 = vmatmul.mubr.f32.vlgmr.msra.gmra.mrb[12].mxu0 %v3063_v46  ;;  %9564 = vmatprep.subr.bf16.mxu1 %v11280_v53  ;;  %v3473_v46 = vld [vmem:[#allocation14 + $0x208] sm:$0xff] }
 0x5a8   : > { %9434 = vmatpush3.bf16.msra.mxu0 %v9433_v43  ;;  %8130 = vmatprep.mubr.msk.f32.mxu0 %vm11281_vm0, %v11282_v51  ;;  %v3384_v43 = vld [vmem:[#allocation14 + $0x1f8] sm:$0xff] }
 0x5a9   : > { %9435 = vmatprep.subr.bf16.mxu0 %v11280_v53  ;;  %v9478_v44 = vpack.c.bf16 %v3384_v43, %v3383_v42  ;;  %v3571_v42 = vld [vmem:[#allocation2 + $0x5] ss:$2 sm:$0xff] }
 0x5ab   : > { %8131 = vmatmul.mubr.f32.gmra.mrb[14].mxu0 %v3064_v52  ;;  %v3365_v52 = vld [vmem:[#allocation2 + $0x3] ss:$2 sm:$0xff] }
 0x5ac   : > { %9437 = vmatpush3.bf16.msra.mxu0 %v9436_v47  ;;  %8133 = vmatprep.mubr.msk.f32.mxu0 %vm11281_vm0, %v11282_v51  ;;  %v9481_v47 = vpack.c.bf16 %v3473_v46, %v3472_v45  ;;  %v3683_v45 = vld [vmem:[#allocation14 + $0x328] sm:$0xff] }
 0x5ad   : > { %9438 = vmatprep.subr.bf16.mxu0 %v11280_v53  ;;  %v3572_v46 = vld [vmem:[#allocation2 + $0x15] ss:$2 sm:$0xff] }
 0x5af   : > { %8134 = vmatmul.mubr.f32.gmra.mrb[16].mxu0 %v3065_v56  ;;  %v3366_v56 = vld [vmem:[#allocation2 + $0x13] ss:$2 sm:$0xff] }
 0x5b0   : > { %9440 = vmatpush3.bf16.msra.mxu0 %v9439_v49  ;;  %8168 = vmatprep.mubr.msk.f32.mxu0 %vm11281_vm0, %v11282_v51  ;;  %v9484_v49 = vpack.c.bf16 %v3475_v50, %v3474_v48  ;;  %v3684_v48 = vld [vmem:[#allocation14 + $0x330] sm:$0xff]  ;;  %v3685_v50 = vld [vmem:[#allocation14 + $0x338] sm:$0xff] }
 0x5b1   : > { %9441 = vmatprep.subr.bf16.mxu0 %v11280_v53 }
 0x5b4   : > { %9443 = vmatpush3.bf16.msra.mxu0 %v9442_v57  ;;  %v9487_v57 = vpack.c.bf16 %v3477_v55, %v3476_v54  ;;  %v3686_v54 = vld [vmem:[#allocation14 + $0x340] sm:$0xff]  ;;  %v3687_v55 = vld [vmem:[#allocation14 + $0x348] sm:$0xff] }
 0x5b5   : > { %9444 = vmatprep.subr.bf16.mxu0 %v11280_v53 }
 0x5b8   : > { %9446 = vmatpush3.bf16.msra.mxu0 %v9445_v60  ;;  %v3367_v60 = vld [vmem:[#allocation2 + $0x23] ss:$2 sm:$0xf] }
 0x5b9   : > { %9447 = vmatprep.subr.bf16.mxu0 %v11280_v53 }
 0x5bc   : > { %9449 = vmatpush3.bf16.msra.mxu0 %v9448_v63  ;;  %v3481_v63 = vld [vmem:[#allocation14 + $0x248] sm:$0xff] }
 0x5bd   : > { %9450 = vmatprep.subr.bf16.mxu0 %v11280_v53  ;;  %v9493_v0 = vpack.c.bf16 %v3481_v63, %v3480_v62  ;;  %v3692_v63 = vld [vmem:[#allocation14 + $0x370] sm:$0xff] }
 0x5c0   : > { %9452 = vmatpush3.bf16.msra.mxu0 %v9451_v2  ;;  %v3483_v2 = vld [vmem:[#allocation14 + $0x258] sm:$0xff] }
 0x5c1   : > { %9453 = vmatprep.subr.bf16.mxu0 %v11280_v53  ;;  %v9496_v3 = vpack.c.bf16 %v3483_v2, %v3482_v1  ;;  %v3674_v2 = vld [vmem:[#allocation2 + $0x6] ss:$2 sm:$0xff] }
 0x5c4   : > { %9455 = vmatpush3.bf16.msra.mxu0 %v9454_v5  ;;  %v3485_v5 = vld [vmem:[#allocation14 + $0x268] sm:$0xff] }
 0x5c5   : > { %9456 = vmatprep.subr.bf16.mxu0 %v11280_v53  ;;  %v9499_v6 = vpack.c.bf16 %v3485_v5, %v3484_v4  ;;  %v3676_v4 = vld [vmem:[#allocation2 + $0x26] ss:$2 sm:$0xf] }
 0x5c6   : > { %v3830_v5 = vld [vmem:[#allocation18 + $0xc0] sm:$0xff] }
 0x5c7   : > { %8169 = vmatmul.mubr.f32.vlgmr.msra.gmra.mrb[12].mxu0 %v3262_v11  ;;  %v3576_v11 = vld [vmem:[#allocation14 + $0x288] sm:$0xff] }
 0x5c8   : > { %9458 = vmatpush3.bf16.msra.mxu0 %v9457_v8  ;;  %8171 = vmatprep.mubr.msk.f32.mxu0 %vm11281_vm0, %v11282_v51  ;;  %v3487_v8 = vld [vmem:[#allocation14 + $0x278] sm:$0xff] }
 0x5c9   : > { %9459 = vmatprep.subr.bf16.mxu0 %v11280_v53  ;;  %v9502_v9 = vpack.c.bf16 %v3487_v8, %v3486_v7  ;;  %v3832_v8 = vld [vmem:[#allocation18 + $0xd0] sm:$0xff] }
 0x5cb   : > { %8172 = vmatmul.mubr.f32.gmra.mrb[14].mxu0 %v3263_v15  ;;  %v3468_v15 = vld [vmem:[#allocation2 + $0x4] ss:$2 sm:$0xff] }
 0x5cc   : > { %9461 = vmatpush3.bf16.msra.mxu0 %v9460_v12  ;;  %8174 = vmatprep.mubr.msk.f32.mxu0 %vm11281_vm0, %v11282_v51  ;;  %v9505_v12 = vpack.c.bf16 %v3576_v11, %v3575_v10  ;;  %v3834_v11 = vld [vmem:[#allocation18 + $0xe0] sm:$0xff] }
 0x5cd   : > { %9462 = vmatprep.subr.bf16.mxu0 %v11280_v53 }
 0x5cf   : > { %8175 = vmatmul.mubr.f32.gmra.mrb[16].mxu0 %v3264_v19  ;;  %v3469_v19 = vld [vmem:[#allocation2 + $0x14] ss:$2 sm:$0xff] }
 0x5d0   : > { %9464 = vmatpush3.bf16.msra.mxu0 %v9463_v16  ;;  %8209 = vmatprep.mubr.msk.f32.mxu0 %vm11281_vm0, %v11282_v51  ;;  %v9508_v16 = vpack.c.bf16 %v3578_v14, %v3577_v13  ;;  %v3836_v14 = vld [vmem:[#allocation18 + $0xf0] sm:$0xff] }
 0x5d1   : > { %9465 = vmatprep.subr.bf16.mxu0 %v11280_v53 }
 0x5d4   : > { %9467 = vmatpush3.bf16.msra.mxu0 %v9466_v23  ;;  %v3470_v23 = vld [vmem:[#allocation2 + $0x24] ss:$2 sm:$0xf] }
 0x5d5   : > { %9468 = vmatprep.subr.bf16.mxu0 %v11280_v53 }
 0x5d8   : > { %9470 = vmatpush3.bf16.msra.mxu0 %v9469_v31  ;;  %v3587_v31 = vld [vmem:[#allocation14 + $0x2e0] sm:$0xff] }
 0x5d9   : > { %9471 = vmatprep.subr.bf16.mxu0 %v11280_v53  ;;  %v9523_v33 = vpack.c.bf16 %v3588_v32, %v3587_v31 }
 0x5dc   : > { %9473 = vmatpush3.bf16.msra.mxu0 %v9472_v37  ;;  %v3678_v37 = vld [vmem:[#allocation14 + $0x300] sm:$0xff] }
 0x5dd   : > { %9474 = vmatprep.subr.bf16.mxu0 %v11280_v53  ;;  %v9529_v39 = vpack.c.bf16 %v3679_v38, %v3678_v37  ;;  %v3806_v37 = vld [vmem:[#allocation18 + $0x10] sm:$0xff]  ;;  %v3807_v38 = vld [vmem:[#allocation18 + $0x18] sm:$0xff] }
 0x5e0   : > { %9476 = vmatpush3.bf16.msra.mxu0 %v9475_v41  ;;  %v3681_v41 = vld [vmem:[#allocation14 + $0x318] sm:$0xff] }
 0x5e1   : > { %9477 = vmatprep.subr.bf16.mxu0 %v11280_v53  ;;  %v9532_v43 = vpack.c.bf16 %v3681_v41, %v3680_v40  ;;  %v9580_v40 = vpack.c.bf16 %v3807_v38, %v3806_v37  ;;  %v3808_v41 = vld [vmem:[#allocation18 + $0x20] sm:$0xff]  ;;  %v4499_v38 = vld [vmem:[#allocation23 + $0x1d0] sm:$0xff] }
 0x5e2   : > { %v4496_v37 = vld [vmem:[#allocation23 + $0x1b8] sm:$0xff] }
 0x5e4   : > { %9479 = vmatpush3.bf16.msra.mxu0 %v9478_v44  ;;  %v3682_v44 = vld [vmem:[#allocation14 + $0x320] sm:$0xff] }
 0x5e5   : > { %9480 = vmatprep.subr.bf16.mxu0 %v11280_v53 }
 0x5e7   : > { %8210 = vmatmul.mubr.f32.vlgmr.msra.gmra.mrb[12].mxu0 %v3365_v52  ;;  %v3573_v52 = vld [vmem:[#allocation2 + $0x25] ss:$2 sm:$0xf] }
 0x5e8   : > { %9482 = vmatpush3.bf16.msra.mxu0 %v9481_v47  ;;  %8212 = vmatprep.mubr.msk.f32.mxu0 %vm11281_vm0, %v11282_v51  ;;  %v9535_v47 = vpack.c.bf16 %v3683_v45, %v3682_v44  ;;  %v3810_v44 = vld [vmem:[#allocation18 + $0x30] sm:$0xff]  ;;  %v3811_v45 = vld [vmem:[#allocation18 + $0x38] sm:$0xff] }
 0x5e9   : > { %9483 = vmatprep.subr.bf16.mxu0 %v11280_v53 }
 0x5eb   : > { %8213 = vmatmul.mubr.f32.gmra.mrb[14].mxu0 %v3366_v56  ;;  %v9541_v56 = vpack.c.bf16 %v3687_v55, %v3686_v54  ;;  %v3816_v55 = vld [vmem:[#allocation18 + $0x60] sm:$0xff] }
 0x5ec   : > { %9485 = vmatpush3.bf16.msra.mxu0 %v9484_v49  ;;  %8215 = vmatprep.mubr.msk.f32.mxu0 %vm11281_vm0, %v11282_v51  ;;  %v9538_v49 = vpack.c.bf16 %v3685_v50, %v3684_v48  ;;  %v3813_v48 = vld [vmem:[#allocation18 + $0x48] sm:$0xff] }
 0x5ed   : > { %9486 = vmatprep.subr.bf16.mxu0 %v11280_v53 }
 0x5ef   : > { %8216 = vmatmul.mubr.f32.gmra.mrb[16].mxu0 %v3367_v60  ;;  %v3690_v60 = vld [vmem:[#allocation14 + $0x360] sm:$0xff] }
 0x5f0   : > { %9488 = vmatpush3.bf16.msra.mxu0 %v9487_v57  ;;  %8250 = vmatprep.mubr.msk.f32.mxu0 %vm11281_vm0, %v11282_v51  ;;  %v3688_v57 = vld [vmem:[#allocation14 + $0x350] sm:$0xff] }
 0x5f1   : > { %9489 = vmatprep.subr.bf16.mxu0 %v11280_v53  ;;  %v9544_v59 = vpack.c.bf16 %v3689_v58, %v3688_v57  ;;  %v3818_v58 = vld [vmem:[#allocation18 + $0x70] sm:$0xff] }
 0x5f4   : > { %9491 = vmatpush3.bf16.msra.mxu0 %v9490_v61  ;;  %v3691_v61 = vld [vmem:[#allocation14 + $0x368] sm:$0xff] }
 0x5f5   : > { %9492 = vmatprep.subr.bf16.mxu0 %v11280_v53  ;;  %v9547_v62 = vpack.c.bf16 %v3691_v61, %v3690_v60  ;;  %v3980_v61 = vld [vmem:[#allocation18 + $0x100] sm:$0xff] }
 0x5f8   : > { %9494 = vmatpush3.bf16.msra.mxu0 %v9493_v0  ;;  %v3693_v0 = vld [vmem:[#allocation14 + $0x378] sm:$0xff] }
 0x5f9   : > { %9495 = vmatprep.subr.bf16.mxu0 %v11280_v53  ;;  %v9550_v1 = vpack.c.bf16 %v3693_v0, %v3692_v63  ;;  %v3982_v0 = vld [vmem:[#allocation18 + $0x110] sm:$0xff] }
 0x5fc   : > { %9497 = vmatpush3.bf16.msra.mxu0 %v9496_v3  ;;  %v3675_v3 = vld [vmem:[#allocation2 + $0x16] ss:$2 sm:$0xff] }
 0x5fd   : > { %9498 = vmatprep.subr.bf16.mxu0 %v11280_v53 }
 0x600   : > { %9500 = vmatpush3.bf16.msra.mxu0 %v9499_v6  ;;  %v3831_v6 = vld [vmem:[#allocation18 + $0xc8] sm:$0xff] }
 0x601   : > { %9501 = vmatprep.subr.bf16.mxu0 %v11280_v53  ;;  %v9565_v7 = vpack.c.bf16 %v3831_v6, %v3830_v5  ;;  %v3985_v5 = vld [vmem:[#allocation18 + $0x128] sm:$0xff] }
 0x603   : > { %9566 = vmatpush3.bf16.msra.mxu1 %v9565_v7  ;;  %v3986_v7 = vld [vmem:[#allocation18 + $0x130] sm:$0xff] }
 0x604   : > { %9503 = vmatpush3.bf16.msra.mxu0 %v9502_v9  ;;  %9567 = vmatprep.subr.bf16.mxu1 %v11280_v53  ;;  %v3833_v9 = vld [vmem:[#allocation18 + $0xd8] sm:$0xff] }
 0x605   : > { %9504 = vmatprep.subr.bf16.mxu0 %v11280_v53  ;;  %v9568_v10 = vpack.c.bf16 %v3833_v9, %v3832_v8  ;;  %v3987_v8 = vld [vmem:[#allocation18 + $0x138] sm:$0xff] }
 0x606   : > { %v9610_v9 = vpack.c.bf16 %v3987_v8, %v3986_v7 }
 0x607   : > { %8251 = vmatmul.mubr.f32.vlgmr.msra.gmra.mrb[12].mxu0 %v3468_v15  ;;  %9569 = vmatpush3.bf16.msra.mxu1 %v9568_v10  ;;  %v3837_v15 = vld [vmem:[#allocation18 + $0xf8] sm:$0xff]  ;;  %v3988_v10 = vld [vmem:[#allocation18 + $0x140] sm:$0xff] }
 0x608   : > { %9506 = vmatpush3.bf16.msra.mxu0 %v9505_v12  ;;  %8253 = vmatprep.mubr.msk.f32.mxu0 %vm11281_vm0, %v11282_v51  ;;  %v3835_v12 = vld [vmem:[#allocation18 + $0xe8] sm:$0xff] }
 0x609   : > { %9507 = vmatprep.subr.bf16.mxu0 %v11280_v53  ;;  %9570 = vmatprep.subr.bf16.mxu1 %v11280_v53  ;;  %v9571_v13 = vpack.c.bf16 %v3835_v12, %v3834_v11  ;;  %v3989_v11 = vld [vmem:[#allocation18 + $0x148] sm:$0xff] }
 0x60a   : > { %v9613_v12 = vpack.c.bf16 %v3989_v11, %v3988_v10  ;;  %v4520_v10 = vld [vmem:[#allocation23 + $0x278] sm:$0xff]  ;;  %v4523_v11 = vld [vmem:[#allocation23 + $0x290] sm:$0xff] }
 0x60b   : > { %8254 = vmatmul.mubr.f32.gmra.mrb[14].mxu0 %v3469_v19  ;;  %9572 = vmatpush3.bf16.msra.mxu1 %v9571_v13  ;;  %v6603_v19 = vld [vmem:[#allocation17] ss:$0 sm:$0xff]  ;;  %v3990_v13 = vld [vmem:[#allocation18 + $0x150] sm:$0xff] }
 0x60c   : > { %9509 = vmatpush3.bf16.msra.mxu0 %v9508_v16  ;;  %8256 = vmatprep.mubr.msk.f32.mxu0 %vm11281_vm0, %v11282_v51  ;;  %v9574_v16 = vpack.c.bf16 %v3837_v15, %v3836_v14  ;;  %v3991_v14 = vld [vmem:[#allocation18 + $0x158] sm:$0xff] }
 0x60d   : > { %9510 = vmatprep.subr.bf16.mxu0 %v11280_v53  ;;  %9573 = vmatprep.subr.bf16.mxu1 %v11280_v53  ;;  %v9616_v15 = vpack.c.bf16 %v3991_v14, %v3990_v13  ;;  %v9740_v13 = vpack.c.bf16 %v4523_v11, %v4520_v10  ;;  %v4519_v14 = vld [vmem:[#allocation23 + $0x270] sm:$0xff]  ;;  %v4337_v10 = vld [vmem:[#allocation18 + $0x308] sm:$0xff] }
 0x60f   : > { %8257 = vmatmul.mubr.f32.gmra.mrb[16].mxu0 %v3470_v23  ;;  %9575 = vmatpush3.bf16.msra.mxu1 %v9574_v16  ;;  %v3992_v16 = vld [vmem:[#allocation18 + $0x160] sm:$0xff] }
 0x610   : > { %9512 = vmatpush3.bf16.msra.mxu0 %v9511_v20  ;;  %8291 = vmatprep.mubr.msk.f32.mxu0 %vm11281_vm0, %v11282_v51 }
 0x611   : > { %9513 = vmatprep.subr.bf16.mxu0 %v11280_v53  ;;  %9576 = vmatprep.subr.bf16.mxu1 %v11280_v53 }
 0x614   : > { %9515 = vmatpush3.bf16.msra.mxu0 %v9514_v24 }
 0x615   : > { %9516 = vmatprep.subr.bf16.mxu0 %v11280_v53 }
 0x618   : > { %9518 = vmatpush3.bf16.msra.mxu0 %v9517_v27 }
 0x619   : > { %9519 = vmatprep.subr.bf16.mxu0 %v11280_v53 }
 0x61c   : > { %9521 = vmatpush3.bf16.msra.mxu0 %v9520_v30 }
 0x61d   : > { %9522 = vmatprep.subr.bf16.mxu0 %v11280_v53 }
 0x620   : > { %9524 = vmatpush3.bf16.msra.mxu0 %v9523_v33 }
 0x621   : > { %9525 = vmatprep.subr.bf16.mxu0 %v11280_v53 }
 0x624   : > { %9527 = vmatpush3.bf16.msra.mxu0 %v9526_v36  ;;  %v9577_v36 = vpack.c.bf16 %v3805_v35, %v3804_v34  ;;  %v4492_v35 = vld [vmem:[#allocation23 + $0x198] sm:$0xff] }
 0x625   : > { %9528 = vmatprep.subr.bf16.mxu0 %v11280_v53 }
 0x627   : > { %8292 = vmatmul.mubr.f32.vlgmr.msra.gmra.mrb[12].mxu0 %v3571_v42  ;;  %v3809_v42 = vld [vmem:[#allocation18 + $0x28] sm:$0xff] }
 0x628   : > { %9530 = vmatpush3.bf16.msra.mxu0 %v9529_v39  ;;  %8294 = vmatprep.mubr.msk.f32.mxu0 %vm11281_vm0, %v11282_v51 }
 0x629   : > { %9531 = vmatprep.subr.bf16.mxu0 %v11280_v53 }
 0x62b   : > { %8295 = vmatmul.mubr.f32.gmra.mrb[14].mxu0 %v3572_v46  ;;  %v9586_v46 = vpack.c.bf16 %v3811_v45, %v3810_v44  ;;  %v4075_v44 = vld [vmem:[#allocation18 + $0x1b0] sm:$0xff] }
 0x62c   : > { %9533 = vmatpush3.bf16.msra.mxu0 %v9532_v43  ;;  %8297 = vmatprep.mubr.msk.f32.mxu0 %vm11281_vm0, %v11282_v51  ;;  %v9583_v43 = vpack.c.bf16 %v3809_v42, %v3808_v41  ;;  %v4498_v41 = vld [vmem:[#allocation23 + $0x1c8] sm:$0xff] }
 0x62d   : > { %9534 = vmatprep.subr.bf16.mxu0 %v11280_v53  ;;  %v4502_v45 = vld [vmem:[#allocation23 + $0x1e8] sm:$0xff] }
 0x62f   : > { %8298 = vmatmul.mubr.f32.gmra.mrb[16].mxu0 %v3573_v52  ;;  %v3814_v52 = vld [vmem:[#allocation18 + $0x50] sm:$0xff] }
 0x630   : > { %9536 = vmatpush3.bf16.msra.mxu0 %v9535_v47  ;;  %8332 = vmatprep.mubr.msk.f32.mxu0 %vm11281_vm0, %v11282_v51  ;;  %v3812_v47 = vld [vmem:[#allocation18 + $0x40] sm:$0xff] }
 0x631   : > { %9537 = vmatprep.subr.bf16.mxu0 %v11280_v53  ;;  %v9589_v50 = vpack.c.bf16 %v3813_v48, %v3812_v47  ;;  %v4076_v47 = vld [vmem:[#allocation18 + $0x1b8] sm:$0xff] }
 0x634   : > { %9539 = vmatpush3.bf16.msra.mxu0 %v9538_v49  ;;  %v3815_v49 = vld [vmem:[#allocation18 + $0x58] sm:$0xff] }
 0x635   : > { %9540 = vmatprep.subr.bf16.mxu0 %v11280_v53  ;;  %v9592_v54 = vpack.c.bf16 %v3815_v49, %v3814_v52  ;;  %v4504_v52 = vld [vmem:[#allocation23 + $0x1f8] sm:$0xff] }
 0x638   : > { %9542 = vmatpush3.bf16.msra.mxu0 %v9541_v56  ;;  %v3817_v56 = vld [vmem:[#allocation18 + $0x68] sm:$0xff] }
 0x639   : > { %9543 = vmatprep.subr.bf16.mxu0 %v11280_v53  ;;  %v9595_v57 = vpack.c.bf16 %v3817_v56, %v3816_v55  ;;  %v4077_v55 = vld [vmem:[#allocation18 + $0x1c0] sm:$0xff] }
 0x63a   : > { %v4508_v56 = vld [vmem:[#allocation23 + $0x218] sm:$0xff] }
 0x63c   : > { %9545 = vmatpush3.bf16.msra.mxu0 %v9544_v59  ;;  %v3819_v59 = vld [vmem:[#allocation18 + $0x78] sm:$0xff] }
 0x63d   : > { %9546 = vmatprep.subr.bf16.mxu0 %v11280_v53  ;;  %v9598_v60 = vpack.c.bf16 %v3819_v59, %v3818_v58  ;;  %v4078_v58 = vld [vmem:[#allocation18 + $0x1c8] sm:$0xff] }
 0x640   : > { %9548 = vmatpush3.bf16.msra.mxu0 %v9547_v62  ;;  %v3981_v62 = vld [vmem:[#allocation18 + $0x108] sm:$0xff] }
 0x641   : > { %9549 = vmatprep.subr.bf16.mxu0 %v11280_v53  ;;  %v9601_v63 = vpack.c.bf16 %v3981_v62, %v3980_v61  ;;  %v4510_v61 = vld [vmem:[#allocation23 + $0x228] sm:$0xff] }
 0x644   : > { %9551 = vmatpush3.bf16.msra.mxu0 %v9550_v1  ;;  %v3983_v1 = vld [vmem:[#allocation18 + $0x118] sm:$0xff] }
 0x647   : > { %8333 = vmatmul.mubr.f32.vlgmr.msra.gmra.mrb[12].mxu0 %v3674_v2 }
 0x648   : > { %8335 = vmatprep.mubr.msk.f32.mxu0 %vm11281_vm0, %v11282_v51 }
 0x64b   : > { %8336 = vmatmul.mubr.f32.gmra.mrb[14].mxu0 %v3675_v3  ;;  %v9604_v3 = vpack.c.bf16 %v3983_v1, %v3982_v0  ;;  %v4079_v0 = vld [vmem:[#allocation18 + $0x1d0] sm:$0xff] }
 0x64c   : > { %8338 = vmatprep.mubr.msk.f32.mxu0 %vm11281_vm0, %v11282_v51  ;;  %v4514_v1 = vld [vmem:[#allocation23 + $0x248] sm:$0xff] }
 0x64f   : > { %8339 = vmatmul.mubr.f32.gmra.mrb[16].mxu0 %v3676_v4  ;;  %v3984_v4 = vld [vmem:[#allocation18 + $0x120] sm:$0xff] }
 0x650   : > { %4604 = vmatprep.mubr.f32.mxu0 %v11282_v51  ;;  %v9607_v6 = vpack.c.bf16 %v3985_v5, %v3984_v4  ;;  %v4513_v5 = vld [vmem:[#allocation23 + $0x240] sm:$0xff] }
 0x71a   : > { %v3760_v18 = vpop.f32.mrb[12].mxu0 }
 0x71b   : > { %v3784_v20 = vmul.f32 %v6602_v17, %v3760_v18  ;;  %v8334_v21 = vpop.f32.mrb[13].mxu0 }
 0x71d   : > { %v3794_v22 = vadd.f32 %v6603_v19, %v3784_v20  ;;  %v3995_v20 = vld [vmem:[#allocation18 + $0x178] sm:$0xff] }
 0x71e   : > { %v3765_v23 = vpop.f32.mrb[14].mxu0 }
 0x71f   : > { %v3797_v24 = vmax.f32 %v3794_v22, 0.0  ;;  %v3785_v25 = vmul.f32 %v6602_v17, %v3765_v23  ;;  %v8337_v26 = vpop.f32.mrb[15].mxu0  ;;  %v4069_v22 = vld [vmem:[#allocation18 + $0x180] sm:$0xff]  ;;  %v4070_v23 = vld [vmem:[#allocation18 + $0x188] sm:$0xff] }
 0x720   : > { %v4072_v26 = vld [vmem:[#allocation18 + $0x198] sm:$0xff] }
 0x721   : > { %3800 = vst [vmem:[#allocation2 + $0x1] sm:$0xff] %v3797_v24  ;;  %v3795_v27 = vadd.f32 %v6603_v19, %v3785_v25  ;;  %v9625_v24 = vpack.c.bf16 %v4070_v23, %v4069_v22  ;;  %v4071_v25 = vld [vmem:[#allocation18 + $0x190] sm:$0xff]  ;;  %v4159_v22 = vld [vmem:[#allocation18 + $0x208] sm:$0xff] }
 0x722   : > { %v3770_v28 = vpop.f32.mrb[16].mxu0 }
 0x723   : > { %v3798_v29 = vmax.f32 %v3795_v27, 0.0  ;;  %v3786_v30 = vmul.f32 %v6602_v17, %v3770_v28  ;;  %v8340_v31 = vpop.f32.mrb[17].mxu0  ;;  %v3993_v17 = vld [vmem:[#allocation18 + $0x168] sm:$0xff] }
 0x724   : > { %v9619_v18 = vpack.c.bf16 %v3993_v17, %v3992_v16  ;;  %v4490_v28 = vld [vmem:[#allocation23 + $0x188] sm:$0xff]  ;;  %v9628_v31 = vpack.c.bf16 %v4072_v26, %v4071_v25  ;;  %v4161_v25 = vld [vmem:[#allocation18 + $0x218] sm:$0xff] }
 0x725   : > { %3801 = vst [vmem:[#allocation2 + $0x9] sm:$0xff] %v3798_v29  ;;  %v3796_v32 = vadd.f32 %v6603_v19, %v3786_v30  ;;  %v3994_v19 = vld [vmem:[#allocation18 + $0x170] sm:$0xff]  ;;  %v4493_v29 = vld [vmem:[#allocation23 + $0x1a0] sm:$0xff] }
 0x726   : > { %v9622_v21 = vpack.c.bf16 %v3995_v20, %v3994_v19  ;;  %v4489_v30 = vld [vmem:[#allocation23 + $0x180] sm:$0xff]  ;;  %v9720_v34 = vpack.c.bf16 %v4493_v29, %v4490_v28  ;;  %v4084_v19 = vld [vmem:[#allocation18 + $0x1f8] sm:$0xff] }
 0x727   : > { %v3799_v33 = vmax.f32 %v3796_v32, 0.0  ;;  %v4073_v32 = vld [vmem:[#allocation18 + $0x1a0] sm:$0xff]  ;;  %v4163_v29 = vld [vmem:[#allocation18 + $0x228] sm:$0xff] }
 0x728   : > { %9721 = vmatprep.subr.bf16.mxu0 %v9720_v34  ;;  %v4162_v28 = vld [vmem:[#allocation18 + $0x220] sm:$0xff] }
 0x729   : > { %3802 = vst [vmem:[#allocation2 + $0x11] sm:$0xf] %v3799_v33  ;;  %v4074_v33 = vld [vmem:[#allocation18 + $0x1a8] sm:$0xff]  ;;  %v4166_v34 = vld [vmem:[#allocation18 + $0x240] sm:$0xff] }
 0x72c   : > { %v3820_v39 = vld [vmem:[#allocation2 + $0x1] ss:$2 sm:$0xff]  ;;  %v3803_v2 = vld [vmem:[#allocation2] ss:$2 sm:$0xff] }
 0x72d   : > { %8374 = vmatmul.mubr.f32.vlgmr.msra.gmra.mrb[6].mxu1 %v3820_v39  ;;  %v3978_v27 = vld [vmem:[#allocation2 + $0x2] ss:$2 sm:$0xff] }
 0x72e   : > { %9578 = vmatpush3.bf16.msra.mxu1 %v9577_v36  ;;  %8408 = vmatprep.mubr.msk.f32.mxu1 %vm11281_vm0, %v11282_v51  ;;  %v9722_v36 = vpack.c.bf16 %v4492_v35, %v4489_v30  ;;  %v4495_v39 = vld [vmem:[#allocation23 + $0x1b0] sm:$0xff]  ;;  %v9655_v30 = vpack.c.bf16 %v4163_v29, %v4162_v28  ;;  %v4167_v35 = vld [vmem:[#allocation18 + $0x248] sm:$0xff]  ;;  %v4348_v28 = vld [vmem:[#allocation18 + $0x360] sm:$0xff] }
 0x72f   : > { %9579 = vmatprep.subr.bf16.mxu1 %v11280_v53  ;;  %v9726_v42 = vpack.c.bf16 %v4498_v41, %v4495_v39  ;;  %v4171_v41 = vld [vmem:[#allocation18 + $0x268] sm:$0xff] }
 0x730   : > { %9723 = vmatpush1.bf16.msra.mxu0 %v9722_v36  ;;  %v4067_v26 = vld [vmem:[#allocation2 + $0x3] ss:$2 sm:$0xff]  ;;  %v9661_v36 = vpack.c.bf16 %v4167_v35, %v4166_v34  ;;  %v4349_v29 = vld [vmem:[#allocation18 + $0x368] sm:$0xff] }
 0x731   : > { %v4491_v34 = vld [vmem:[#allocation23 + $0x190] sm:$0xff]  ;;  %v4494_v35 = vld [vmem:[#allocation23 + $0x1a8] sm:$0xff] }
 0x732   : > { %9581 = vmatpush3.bf16.msra.mxu1 %v9580_v40  ;;  %v9724_v40 = vpack.c.bf16 %v4499_v38, %v4496_v37  ;;  %v4168_v37 = vld [vmem:[#allocation18 + $0x250] sm:$0xff]  ;;  %v4169_v38 = vld [vmem:[#allocation18 + $0x258] sm:$0xff] }
 0x733   : > { %9582 = vmatprep.subr.bf16.mxu1 %v11280_v53  ;;  %v9664_v39 = vpack.c.bf16 %v4169_v38, %v4168_v37  ;;  %v4497_v37 = vld [vmem:[#allocation23 + $0x1c0] sm:$0xff]  ;;  %v4500_v38 = vld [vmem:[#allocation23 + $0x1d8] sm:$0xff] }
 0x734   : > { %9725 = vmatprep.subr.bf16.mxu0 %v9724_v40  ;;  %v4170_v40 = vld [vmem:[#allocation18 + $0x260] sm:$0xff] }
 0x735   : > { %9727 = vmatpush1.bf16.msra.mxu0 %v9726_v42  ;;  %v9667_v42 = vpack.c.bf16 %v4171_v41, %v4170_v40  ;;  %v9756_v40 = vpack.c.bf16 %v4500_v38, %v4497_v37  ;;  %v4503_v41 = vld [vmem:[#allocation23 + $0x1f0] sm:$0xff]  ;;  %v4452_v37 = vld [vmem:[#allocation23 + $0x60] sm:$0xff] }
 0x736   : > { %9584 = vmatpush3.bf16.msra.mxu1 %v9583_v43  ;;  %v9631_v43 = vpack.c.bf16 %v4074_v33, %v4073_v32  ;;  %v4165_v32 = vld [vmem:[#allocation18 + $0x238] sm:$0xff] }
 0x737   : > { %9585 = vmatprep.subr.bf16.mxu1 %v11280_v53 }
 0x73a   : > { %9587 = vmatpush3.bf16.msra.mxu1 %v9586_v46  ;;  %v4505_v46 = vld [vmem:[#allocation23 + $0x200] sm:$0xff] }
 0x73b   : > { %9588 = vmatprep.subr.bf16.mxu1 %v11280_v53  ;;  %v9728_v48 = vpack.c.bf16 %v4505_v46, %v4502_v45  ;;  %v4247_v46 = vld [vmem:[#allocation18 + $0x280] sm:$0xff] }
 0x73d   : > { %9729 = vmatprep.subr.bf16.mxu0 %v9728_v48 }
 0x73e   : > { %9590 = vmatpush3.bf16.msra.mxu1 %v9589_v50  ;;  %v4501_v50 = vld [vmem:[#allocation23 + $0x1e0] sm:$0xff] }
 0x73f   : > { %9591 = vmatprep.subr.bf16.mxu1 %v11280_v53  ;;  %v9730_v49 = vpack.c.bf16 %v4504_v52, %v4501_v50  ;;  %v4249_v50 = vld [vmem:[#allocation18 + $0x290] sm:$0xff]  ;;  %v4250_v52 = vld [vmem:[#allocation18 + $0x298] sm:$0xff] }
 0x741   : > { %9731 = vmatpush1.bf16.msra.mxu0 %v9730_v49  ;;  %v4156_v49 = vld [vmem:[#allocation2 + $0x4] ss:$2 sm:$0xff] }
 0x742   : > { %9593 = vmatpush3.bf16.msra.mxu1 %v9592_v54  ;;  %v9634_v54 = vpack.c.bf16 %v4076_v47, %v4075_v44  ;;  %v4173_v44 = vld [vmem:[#allocation18 + $0x278] sm:$0xff]  ;;  %v4248_v47 = vld [vmem:[#allocation18 + $0x288] sm:$0xff] }
 0x743   : > { %9594 = vmatprep.subr.bf16.mxu1 %v11280_v53  ;;  %v9673_v48 = vpack.c.bf16 %v4248_v47, %v4247_v46  ;;  %v4515_v47 = vld [vmem:[#allocation23 + $0x250] sm:$0xff] }
 0x746   : > { %9596 = vmatpush3.bf16.msra.mxu1 %v9595_v57  ;;  %v4511_v57 = vld [vmem:[#allocation23 + $0x230] sm:$0xff] }
 0x747   : > { %9597 = vmatprep.subr.bf16.mxu1 %v11280_v53  ;;  %v9732_v59 = vpack.c.bf16 %v4511_v57, %v4508_v56  ;;  %v4252_v56 = vld [vmem:[#allocation18 + $0x2a8] sm:$0xff] }
 0x749   : > { %9733 = vmatprep.subr.bf16.mxu0 %v9732_v59  ;;  %v4254_v59 = vld [vmem:[#allocation18 + $0x2b8] sm:$0xff] }
 0x74a   : > { %9599 = vmatpush3.bf16.msra.mxu1 %v9598_v60  ;;  %v4507_v60 = vld [vmem:[#allocation23 + $0x210] sm:$0xff] }
 0x74b   : > { %9600 = vmatprep.subr.bf16.mxu1 %v11280_v53  ;;  %v9734_v62 = vpack.c.bf16 %v4510_v61, %v4507_v60  ;;  %v4255_v61 = vld [vmem:[#allocation18 + $0x2c0] sm:$0xff] }
 0x74d   : > { %8409 = vmatmul.mubr.f32.vlgmr.msra.gmra.mrb[6].mxu1 %v3803_v2  ;;  %v4517_v2 = vld [vmem:[#allocation23 + $0x260] sm:$0xff]  ;;  %9735 = vmatpush1.bf16.msra.mxu0 %v9734_v62 }
 0x74e   : > { %9602 = vmatpush3.bf16.msra.mxu1 %v9601_v63  ;;  %8443 = vmatprep.mubr.msk.f32.mxu1 %vm11281_vm0, %v11282_v51  ;;  %v9637_v63 = vpack.c.bf16 %v4078_v58, %v4077_v55  ;;  %v9736_v4 = vpack.c.bf16 %v4517_v2, %v4514_v1  ;;  %v4251_v55 = vld [vmem:[#allocation18 + $0x2a0] sm:$0xff]  ;;  %v4253_v58 = vld [vmem:[#allocation18 + $0x2b0] sm:$0xff]  ;;  %v4256_v62 = vld [vmem:[#allocation18 + $0x2c8] sm:$0xff] }
 0x74f   : > { %9603 = vmatprep.subr.bf16.mxu1 %v11280_v53  ;;  %v9679_v57 = vpack.c.bf16 %v4252_v56, %v4251_v55  ;;  %v9682_v60 = vpack.c.bf16 %v4254_v59, %v4253_v58  ;;  %v4258_v1 = vld [vmem:[#allocation18 + $0x2d8] sm:$0xff]  ;;  %v4526_v55 = vld [vmem:[#allocation23 + $0x2a8] sm:$0xff]  ;;  %v4529_v56 = vld [vmem:[#allocation23 + $0x2c0] sm:$0xff] }
 0x750   : > { %9737 = vmatprep.subr.bf16.mxu0 %v9736_v4  ;;  %v4260_v4 = vld [vmem:[#allocation18 + $0x2e8] sm:$0xff]  ;;  %v4528_v59 = vld [vmem:[#allocation23 + $0x2b8] sm:$0xff] }
 0x751   : > { %v4525_v58 = vld [vmem:[#allocation23 + $0x2a0] sm:$0xff] }
 0x752   : > { %9605 = vmatpush3.bf16.msra.mxu1 %v9604_v3  ;;  %v4080_v3 = vld [vmem:[#allocation18 + $0x1d8] sm:$0xff] }
 0x753   : > { %9606 = vmatprep.subr.bf16.mxu1 %v11280_v53  ;;  %v9640_v8 = vpack.c.bf16 %v4080_v3, %v4079_v0  ;;  %v4257_v0 = vld [vmem:[#allocation18 + $0x2d0] sm:$0xff]  ;;  %v4259_v3 = vld [vmem:[#allocation18 + $0x2e0] sm:$0xff] }
 0x754   : > { %v9688_v2 = vpack.c.bf16 %v4258_v1, %v4257_v0  ;;  %v4532_v0 = vld [vmem:[#allocation23 + $0x2d8] sm:$0xff]  ;;  %v4535_v1 = vld [vmem:[#allocation23 + $0x2f0] sm:$0xff] }
 0x756   : > { %9608 = vmatpush3.bf16.msra.mxu1 %v9607_v6  ;;  %v4516_v6 = vld [vmem:[#allocation23 + $0x258] sm:$0xff] }
 0x757   : > { %9609 = vmatprep.subr.bf16.mxu1 %v11280_v53  ;;  %v9738_v7 = vpack.c.bf16 %v4516_v6, %v4513_v5  ;;  %v9691_v5 = vpack.c.bf16 %v4260_v4, %v4259_v3  ;;  %v4261_v6 = vld [vmem:[#allocation18 + $0x2f0] sm:$0xff] }
 0x758   : > { %v4531_v3 = vld [vmem:[#allocation23 + $0x2d0] sm:$0xff]  ;;  %v4534_v4 = vld [vmem:[#allocation23 + $0x2e8] sm:$0xff] }
 0x759   : > { %9739 = vmatpush1.bf16.msra.mxu0 %v9738_v7  ;;  %v4262_v7 = vld [vmem:[#allocation18 + $0x2f8] sm:$0xff] }
 0x75a   : > { %9611 = vmatpush3.bf16.msra.mxu1 %v9610_v9  ;;  %v4081_v9 = vld [vmem:[#allocation18 + $0x1e0] sm:$0xff]  ;;  %9741 = vmatprep.subr.bf16.mxu0 %v9740_v13  ;;  %v4339_v13 = vld [vmem:[#allocation18 + $0x318] sm:$0xff] }
 0x75b   : > { %9612 = vmatprep.subr.bf16.mxu1 %v11280_v53 }
 0x75e   : > { %9614 = vmatpush3.bf16.msra.mxu1 %v9613_v12  ;;  %v4082_v12 = vld [vmem:[#allocation18 + $0x1e8] sm:$0xff] }
 0x75f   : > { %9615 = vmatprep.subr.bf16.mxu1 %v11280_v53  ;;  %v9643_v17 = vpack.c.bf16 %v4082_v12, %v4081_v9  ;;  %v4336_v9 = vld [vmem:[#allocation18 + $0x300] sm:$0xff]  ;;  %v4338_v12 = vld [vmem:[#allocation18 + $0x310] sm:$0xff] }
 0x760   : > { %v9697_v11 = vpack.c.bf16 %v4337_v10, %v4336_v9  ;;  %v4444_v9 = vld [vmem:[#allocation23 + $0x20] sm:$0xff] }
 0x762   : > { %9617 = vmatpush3.bf16.msra.mxu1 %v9616_v15  ;;  %v4522_v15 = vld [vmem:[#allocation23 + $0x288] sm:$0xff] }
 0x763   : > { %9618 = vmatprep.subr.bf16.mxu1 %v11280_v53  ;;  %v9742_v16 = vpack.c.bf16 %v4522_v15, %v4519_v14  ;;  %v4245_v14 = vld [vmem:[#allocation2 + $0x5] ss:$2 sm:$0xff]  ;;  %v9700_v15 = vpack.c.bf16 %v4339_v13, %v4338_v12  ;;  %v6604_v12 = vld [vmem:[#allocation20] ss:$0 sm:$0xff] }
 0x765   : > { %9743 = vmatpush1.bf16.msra.mxu0 %v9742_v16  ;;  %v4340_v16 = vld [vmem:[#allocation18 + $0x320] sm:$0xff] }
 0x766   : > { %9620 = vmatpush3.bf16.msra.mxu1 %v9619_v18  ;;  %v4083_v18 = vld [vmem:[#allocation18 + $0x1f0] sm:$0xff] }
 0x767   : > { %9621 = vmatprep.subr.bf16.mxu1 %v11280_v53  ;;  %v9646_v20 = vpack.c.bf16 %v4084_v19, %v4083_v18  ;;  %v4342_v19 = vld [vmem:[#allocation18 + $0x330] sm:$0xff] }
 0x76a   : > { %9623 = vmatpush3.bf16.msra.mxu1 %v9622_v21  ;;  %v4158_v21 = vld [vmem:[#allocation18 + $0x200] sm:$0xff] }
 0x76b   : > { %9624 = vmatprep.subr.bf16.mxu1 %v11280_v53  ;;  %v9649_v23 = vpack.c.bf16 %v4159_v22, %v4158_v21  ;;  %v4344_v22 = vld [vmem:[#allocation18 + $0x340] sm:$0xff] }
 0x76d   : > { %8444 = vmatmul.mubr.f32.vlgmr.msra.gmra.mrb[6].mxu1 %v3978_v27 }
 0x76e   : > { %9626 = vmatpush3.bf16.msra.mxu1 %v9625_v24  ;;  %8478 = vmatprep.mubr.msk.f32.mxu1 %vm11281_vm0, %v11282_v51  ;;  %v4160_v24 = vld [vmem:[#allocation18 + $0x210] sm:$0xff] }
 0x76f   : > { %9627 = vmatprep.subr.bf16.mxu1 %v11280_v53  ;;  %v9652_v27 = vpack.c.bf16 %v4161_v25, %v4160_v24  ;;  %v4346_v25 = vld [vmem:[#allocation18 + $0x350] sm:$0xff] }
 0x772   : > { %9629 = vmatpush3.bf16.msra.mxu1 %v9628_v31  ;;  %v4164_v31 = vld [vmem:[#allocation18 + $0x230] sm:$0xff] }
 0x773   : > { %9630 = vmatprep.subr.bf16.mxu1 %v11280_v53  ;;  %v9658_v33 = vpack.c.bf16 %v4165_v32, %v4164_v31  ;;  %v4350_v31 = vld [vmem:[#allocation18 + $0x370] sm:$0xff]  ;;  %v4351_v32 = vld [vmem:[#allocation18 + $0x378] sm:$0xff] }
 0x776   : > { %9632 = vmatpush3.bf16.msra.mxu1 %v9631_v43  ;;  %v4172_v43 = vld [vmem:[#allocation18 + $0x270] sm:$0xff] }
 0x777   : > { %9633 = vmatprep.subr.bf16.mxu1 %v11280_v53  ;;  %v9670_v45 = vpack.c.bf16 %v4173_v44, %v4172_v43  ;;  %v4509_v44 = vld [vmem:[#allocation23 + $0x220] sm:$0xff] }
 0x77a   : > { %9635 = vmatpush3.bf16.msra.mxu1 %v9634_v54  ;;  %v9676_v54 = vpack.c.bf16 %v4250_v52, %v4249_v50  ;;  %v4521_v52 = vld [vmem:[#allocation23 + $0x280] sm:$0xff] }
 0x77b   : > { %9636 = vmatprep.subr.bf16.mxu1 %v11280_v53 }
 0x77e   : > { %9638 = vmatpush3.bf16.msra.mxu1 %v9637_v63  ;;  %v9685_v63 = vpack.c.bf16 %v4256_v62, %v4255_v61  ;;  %v4527_v61 = vld [vmem:[#allocation23 + $0x2b0] sm:$0xff]  ;;  %v4530_v62 = vld [vmem:[#allocation23 + $0x2c8] sm:$0xff] }
 0x77f   : > { %9639 = vmatprep.subr.bf16.mxu1 %v11280_v53 }
 0x782   : > { %9641 = vmatpush3.bf16.msra.mxu1 %v9640_v8  ;;  %v9694_v8 = vpack.c.bf16 %v4262_v7, %v4261_v6  ;;  %v9750_v6 = vpack.c.bf16 %v4534_v4, %v4531_v3  ;;  %v4536_v7 = vld [vmem:[#allocation23 + $0x2f8] sm:$0xff]  ;;  %v4473_v4 = vld [vmem:[#allocation23 + $0x108] sm:$0xff] }
 0x783   : > { %9642 = vmatprep.subr.bf16.mxu1 %v11280_v53 }
 0x786   : > { %9644 = vmatpush3.bf16.msra.mxu1 %v9643_v17  ;;  %v4341_v17 = vld [vmem:[#allocation18 + $0x328] sm:$0xff] }
 0x787   : > { %9645 = vmatprep.subr.bf16.mxu1 %v11280_v53  ;;  %v9703_v18 = vpack.c.bf16 %v4341_v17, %v4340_v16  ;;  %v4440_v17 = vld [vmem:[#allocation23] sm:$0xff] }
 0x78a   : > { %9647 = vmatpush3.bf16.msra.mxu1 %v9646_v20  ;;  %v4343_v20 = vld [vmem:[#allocation18 + $0x338] sm:$0xff] }
 0x78b   : > { %9648 = vmatprep.subr.bf16.mxu1 %v11280_v53  ;;  %v9706_v21 = vpack.c.bf16 %v4343_v20, %v4342_v19  ;;  %v4443_v19 = vld [vmem:[#allocation23 + $0x18] sm:$0xff]  ;;  %v4442_v20 = vld [vmem:[#allocation23 + $0x10] sm:$0xff] }
 0x78d   : > { %8479 = vmatmul.mubr.f32.vlgmr.msra.gmra.mrb[6].mxu1 %v4067_v26  ;;  %v4347_v26 = vld [vmem:[#allocation18 + $0x358] sm:$0xff] }
 0x78e   : > { %9650 = vmatpush3.bf16.msra.mxu1 %v9649_v23  ;;  %8513 = vmatprep.mubr.msk.f32.mxu1 %vm11281_vm0, %v11282_v51  ;;  %v4345_v23 = vld [vmem:[#allocation18 + $0x348] sm:$0xff] }
 0x78f   : > { %9651 = vmatprep.subr.bf16.mxu1 %v11280_v53  ;;  %v9709_v24 = vpack.c.bf16 %v4345_v23, %v4344_v22  ;;  %v4447_v22 = vld [vmem:[#allocation23 + $0x38] sm:$0xff]  ;;  %v4450_v23 = vld [vmem:[#allocation23 + $0x50] sm:$0xff] }
 0x792   : > { %9653 = vmatpush3.bf16.msra.mxu1 %v9652_v27  ;;  %v9712_v27 = vpack.c.bf16 %v4347_v26, %v4346_v25  ;;  %v9778_v25 = vpack.c.bf16 %v4443_v19, %v4440_v17  ;;  %v4486_v17 = vld [vmem:[#allocation23 + $0x170] sm:$0xff] }
 0x793   : > { %9654 = vmatprep.subr.bf16.mxu1 %v11280_v53 }
 0x796   : > { %9656 = vmatpush3.bf16.msra.mxu1 %v9655_v30  ;;  %v9715_v30 = vpack.c.bf16 %v4349_v29, %v4348_v28  ;;  %v9780_v29 = vpack.c.bf16 %v4450_v23, %v4447_v22  ;;  %v4485_v22 = vld [vmem:[#allocation23 + $0x168] sm:$0xff]  ;;  %v4484_v23 = vld [vmem:[#allocation23 + $0x160] sm:$0xff] }
 0x797   : > { %9657 = vmatprep.subr.bf16.mxu1 %v11280_v53 }
 0x79a   : > { %9659 = vmatpush3.bf16.msra.mxu1 %v9658_v33  ;;  %v9718_v33 = vpack.c.bf16 %v4351_v32, %v4350_v31  ;;  %v4448_v31 = vld [vmem:[#allocation23 + $0x40] sm:$0xff]  ;;  %v4451_v32 = vld [vmem:[#allocation23 + $0x58] sm:$0xff] }
 0x79b   : > { %9660 = vmatprep.subr.bf16.mxu1 %v11280_v53 }
 0x79e   : > { %9662 = vmatpush3.bf16.msra.mxu1 %v9661_v36  ;;  %v9753_v36 = vpack.c.bf16 %v4494_v35, %v4491_v34  ;;  %v4456_v34 = vld [vmem:[#allocation23 + $0x80] sm:$0xff] }
 0x79f   : > { %9663 = vmatprep.subr.bf16.mxu1 %v11280_v53 }
 0x7a2   : > { %9665 = vmatpush3.bf16.msra.mxu1 %v9664_v39  ;;  %v4334_v39 = vld [vmem:[#allocation2 + $0x6] ss:$2 sm:$0xff] }
 0x7a3   : > { %9666 = vmatprep.subr.bf16.mxu1 %v11280_v53 }
 0x7a6   : > { %9668 = vmatpush3.bf16.msra.mxu1 %v9667_v42  ;;  %v4506_v42 = vld [vmem:[#allocation23 + $0x208] sm:$0xff] }
 0x7a7   : > { %9669 = vmatprep.subr.bf16.mxu1 %v11280_v53  ;;  %v9759_v43 = vpack.c.bf16 %v4506_v42, %v4503_v41  ;;  %v4457_v41 = vld [vmem:[#allocation23 + $0x88] sm:$0xff]  ;;  %v4459_v42 = vld [vmem:[#allocation23 + $0x98] sm:$0xff] }
 0x7aa   : > { %9671 = vmatpush3.bf16.msra.mxu1 %v9670_v45  ;;  %v4512_v45 = vld [vmem:[#allocation23 + $0x238] sm:$0xff] }
 0x7ab   : > { %9672 = vmatprep.subr.bf16.mxu1 %v11280_v53  ;;  %v9762_v46 = vpack.c.bf16 %v4512_v45, %v4509_v44 }
 0x7ad   : > { %8514 = vmatmul.mubr.f32.vlgmr.msra.gmra.mrb[6].mxu1 %v4156_v49  ;;  %v4524_v49 = vld [vmem:[#allocation23 + $0x298] sm:$0xff] }
 0x7ae   : > { %9674 = vmatpush3.bf16.msra.mxu1 %v9673_v48  ;;  %8548 = vmatprep.mubr.msk.f32.mxu1 %vm11281_vm0, %v11282_v51  ;;  %v4518_v48 = vld [vmem:[#allocation23 + $0x268] sm:$0xff] }
 0x7af   : > { %9675 = vmatprep.subr.bf16.mxu1 %v11280_v53  ;;  %v9765_v50 = vpack.c.bf16 %v4518_v48, %v4515_v47  ;;  %v4461_v48 = vld [vmem:[#allocation23 + $0xa8] sm:$0xff] }
 0x7b2   : > { %9677 = vmatpush3.bf16.msra.mxu1 %v9676_v54  ;;  %v9768_v54 = vpack.c.bf16 %v4524_v49, %v4521_v52  ;;  %v4463_v52 = vld [vmem:[#allocation23 + $0xb8] sm:$0xff]  ;;  %v4465_v49 = vld [vmem:[#allocation23 + $0xc8] sm:$0xff] }
 0x7b3   : > { %9678 = vmatprep.subr.bf16.mxu1 %v11280_v53 }
 0x7b6   : > { %9680 = vmatpush3.bf16.msra.mxu1 %v9679_v57  ;;  %v9744_v57 = vpack.c.bf16 %v4529_v56, %v4526_v55 }
 0x7b7   : > { %9681 = vmatprep.subr.bf16.mxu1 %v11280_v53 }
 0x7b8   : > { %9745 = vmatprep.subr.bf16.mxu0 %v9744_v57  ;;  %v4464_v57 = vld [vmem:[#allocation23 + $0xc0] sm:$0xff] }
 0x7ba   : > { %9683 = vmatpush3.bf16.msra.mxu1 %v9682_v60  ;;  %v9746_v60 = vpack.c.bf16 %v4528_v59, %v4525_v58  ;;  %v4467_v59 = vld [vmem:[#allocation23 + $0xd8] sm:$0xff] }
 0x7bb   : > { %9684 = vmatprep.subr.bf16.mxu1 %v11280_v53 }
 0x7bc   : > { %9747 = vmatpush1.bf16.msra.mxu0 %v9746_v60  ;;  %v4466_v60 = vld [vmem:[#allocation23 + $0xd0] sm:$0xff] }
 0x7be   : > { %9686 = vmatpush3.bf16.msra.mxu1 %v9685_v63  ;;  %v9771_v63 = vpack.c.bf16 %v4530_v62, %v4527_v61  ;;  %v4469_v61 = vld [vmem:[#allocation23 + $0xe8] sm:$0xff]  ;;  %v4471_v62 = vld [vmem:[#allocation23 + $0xf8] sm:$0xff] }
 0x7bf   : > { %9687 = vmatprep.subr.bf16.mxu1 %v11280_v53 }
 0x7c2   : > { %9689 = vmatpush3.bf16.msra.mxu1 %v9688_v2  ;;  %v9748_v2 = vpack.c.bf16 %v4535_v1, %v4532_v0  ;;  %v9794_v0 = vpack.c.bf16 %v4467_v59, %v4464_v57  ;;  %v9821_v1 = vpack.c.bf16 %v4469_v61, %v4466_v60  ;;  %v4841_v59 = vld [vmem:[#allocation23 + $0x390] sm:$0xff]  ;;  %v4844_v61 = vld [vmem:[#allocation23 + $0x3a8] sm:$0xff] }
 0x7c3   : > { %9690 = vmatprep.subr.bf16.mxu1 %v11280_v53 }
 0x7c4   : > { %9749 = vmatprep.subr.bf16.mxu0 %v9748_v2  ;;  %v4470_v2 = vld [vmem:[#allocation23 + $0xf0] sm:$0xff] }
 0x7c5   : > { %9751 = vmatpush1.bf16.msra.mxu0 %v9750_v6  ;;  %v4475_v6 = vld [vmem:[#allocation23 + $0x118] sm:$0xff] }
 0x7c6   : > { %9692 = vmatpush3.bf16.msra.mxu1 %v9691_v5  ;;  %v4533_v5 = vld [vmem:[#allocation23 + $0x2e0] sm:$0xff] }
 0x7c7   : > { %9693 = vmatprep.subr.bf16.mxu1 %v11280_v53  ;;  %v9774_v10 = vpack.c.bf16 %v4536_v7, %v4533_v5  ;;  %v4472_v5 = vld [vmem:[#allocation23 + $0x100] sm:$0xff]  ;;  %v4477_v7 = vld [vmem:[#allocation23 + $0x128] sm:$0xff] }
 0x7ca   : > { %9695 = vmatpush3.bf16.msra.mxu1 %v9694_v8  ;;  %v4441_v8 = vld [vmem:[#allocation23 + $0x8] sm:$0xff] }
 0x7cb   : > { %9696 = vmatprep.subr.bf16.mxu1 %v11280_v53 }
 0x7cd   : > { %8549 = vmatmul.mubr.f32.vlgmr.msra.gmra.mrb[6].mxu1 %v4245_v14  ;;  %v6605_v14 = vld [vmem:[#allocation21] ss:$0 sm:$0xff] }
 0x7ce   : > { %9698 = vmatpush3.bf16.msra.mxu1 %v9697_v11  ;;  %8583 = vmatprep.mubr.msk.f32.mxu1 %vm11281_vm0, %v11282_v51  ;;  %v9776_v11 = vpack.c.bf16 %v4444_v9, %v4441_v8  ;;  %v4480_v8 = vld [vmem:[#allocation23 + $0x140] sm:$0xff]  ;;  %v9798_v9 = vpack.c.bf16 %v4473_v4, %v4470_v2  ;;  %v9846_v2 = vpack.c.bf16 %v4844_v61, %v4841_v59 }
 0x7cf   : > { %9699 = vmatprep.subr.bf16.mxu1 %v11280_v53  ;;  %v4847_v4 = vld [vmem:[#allocation23 + $0x3c0] sm:$0xff] }
 0x7d0   : > { %9777 = vmatprep.subr.bf16.mxu0 %v9776_v11  ;;  %v4476_v11 = vld [vmem:[#allocation23 + $0x120] sm:$0xff] }
 0x7d1   : > { %v5034_v59 = vld [vmem:[#allocation23 + $0x500] sm:$0xff] }
 0x7d2   : > { %9701 = vmatpush3.bf16.msra.mxu1 %v9700_v15 }
 0x7d3   : > { %9702 = vmatprep.subr.bf16.mxu1 %v11280_v53 }
 0x7d6   : > { %9704 = vmatpush3.bf16.msra.mxu1 %v9703_v18 }
 0x7d7   : > { %9705 = vmatprep.subr.bf16.mxu1 %v11280_v53 }
 0x7da   : > { %9707 = vmatpush3.bf16.msra.mxu1 %v9706_v21  ;;  %v4445_v21 = vld [vmem:[#allocation23 + $0x28] sm:$0xff] }
 0x7db   : > { %9708 = vmatprep.subr.bf16.mxu1 %v11280_v53  ;;  %v9809_v26 = vpack.c.bf16 %v4445_v21, %v4442_v20  ;;  %v4482_v20 = vld [vmem:[#allocation23 + $0x150] sm:$0xff] }
 0x7de   : > { %9710 = vmatpush3.bf16.msra.mxu1 %v9709_v24 }
 0x7df   : > { %9711 = vmatprep.subr.bf16.mxu1 %v11280_v53 }
 0x7e2   : > { %9713 = vmatpush3.bf16.msra.mxu1 %v9712_v27  ;;  %v4446_v27 = vld [vmem:[#allocation23 + $0x30] sm:$0xff] }
 0x7e3   : > { %9714 = vmatprep.subr.bf16.mxu1 %v11280_v53 }
 0x7e6   : > { %9716 = vmatpush3.bf16.msra.mxu1 %v9715_v30  ;;  %v4449_v30 = vld [vmem:[#allocation23 + $0x48] sm:$0xff] }
 0x7e7   : > { %9717 = vmatprep.subr.bf16.mxu1 %v11280_v53  ;;  %v9782_v35 = vpack.c.bf16 %v4449_v30, %v4446_v27  ;;  %v4827_v27 = vld [vmem:[#allocation23 + $0x320] sm:$0xff] }
 0x7e8   : > { %v4823_v30 = vld [vmem:[#allocation23 + $0x300] sm:$0xff] }
 0x7ea   : > { %9719 = vmatpush3.bf16.msra.mxu1 %v9718_v33  ;;  %v4453_v33 = vld [vmem:[#allocation23 + $0x68] sm:$0xff] }
 0x7eb   : > { %9752 = vmatprep.subr.bf16.mxu1 %v11280_v53  ;;  %v9784_v38 = vpack.c.bf16 %v4456_v34, %v4453_v33  ;;  %v4825_v33 = vld [vmem:[#allocation23 + $0x310] sm:$0xff]  ;;  %v4828_v34 = vld [vmem:[#allocation23 + $0x328] sm:$0xff] }
 0x7ed   : > { %8584 = vmatmul.mubr.f32.vlgmr.msra.gmra.mrb[6].mxu1 %v4334_v39  ;;  %v4455_v39 = vld [vmem:[#allocation23 + $0x78] sm:$0xff] }
 0x7ee   : > { %9754 = vmatpush3.bf16.msra.mxu1 %v9753_v36  ;;  %8618 = vmatprep.mubr.msk.f32.mxu1 %vm11281_vm0, %v11282_v51  ;;  %v9812_v36 = vpack.c.bf16 %v4451_v32, %v4448_v31  ;;  %v9786_v44 = vpack.c.bf16 %v4455_v39, %v4452_v37  ;;  %v4826_v32 = vld [vmem:[#allocation23 + $0x318] sm:$0xff]  ;;  %v4829_v39 = vld [vmem:[#allocation23 + $0x330] sm:$0xff] }
 0x7ef   : > { %9755 = vmatprep.subr.bf16.mxu1 %v11280_v53  ;;  %v9834_v37 = vpack.c.bf16 %v4826_v32, %v4823_v30  ;;  %v4865_v32 = vld [vmem:[#allocation23 + $0x450] sm:$0xff] }
 0x7f2   : > { %9757 = vmatpush3.bf16.msra.mxu1 %v9756_v40  ;;  %v4454_v40 = vld [vmem:[#allocation23 + $0x70] sm:$0xff] }
 0x7f3   : > { %9758 = vmatprep.subr.bf16.mxu1 %v11280_v53  ;;  %v9815_v45 = vpack.c.bf16 %v4457_v41, %v4454_v40  ;;  %v4832_v41 = vld [vmem:[#allocation23 + $0x348] sm:$0xff] }
 0x7f6   : > { %9760 = vmatpush3.bf16.msra.mxu1 %v9759_v43  ;;  %v4462_v43 = vld [vmem:[#allocation23 + $0xb0] sm:$0xff] }
 0x7f7   : > { %9761 = vmatprep.subr.bf16.mxu1 %v11280_v53  ;;  %v9788_v47 = vpack.c.bf16 %v4462_v43, %v4459_v42  ;;  %v4831_v42 = vld [vmem:[#allocation23 + $0x340] sm:$0xff]  ;;  %v4834_v43 = vld [vmem:[#allocation23 + $0x358] sm:$0xff] }
 0x7fa   : > { %9763 = vmatpush3.bf16.msra.mxu1 %v9762_v46  ;;  %v4458_v46 = vld [vmem:[#allocation23 + $0x90] sm:$0xff] }
 0x7fb   : > { %9764 = vmatprep.subr.bf16.mxu1 %v11280_v53  ;;  %v9790_v55 = vpack.c.bf16 %v4461_v48, %v4458_v46  ;;  %v9838_v46 = vpack.c.bf16 %v4832_v41, %v4829_v39  ;;  %v4835_v48 = vld [vmem:[#allocation23 + $0x360] sm:$0xff] }
 0x7fc   : > { %v5018_v41 = vld [vmem:[#allocation23 + $0x480] sm:$0xff] }
 0x7fe   : > { %9766 = vmatpush3.bf16.msra.mxu1 %v9765_v50  ;;  %v4460_v50 = vld [vmem:[#allocation23 + $0xa0] sm:$0xff] }
 0x7ff   : > { %9767 = vmatprep.subr.bf16.mxu1 %v11280_v53  ;;  %v9818_v56 = vpack.c.bf16 %v4463_v52, %v4460_v50  ;;  %v4838_v52 = vld [vmem:[#allocation23 + $0x378] sm:$0xff] }
 0x800   : > { %v9842_v57 = vpack.c.bf16 %v4838_v52, %v4835_v48  ;;  %v5024_v52 = vld [vmem:[#allocation23 + $0x4b0] sm:$0xff] }
 0x802   : > { %9769 = vmatpush3.bf16.msra.mxu1 %v9768_v54  ;;  %v4468_v54 = vld [vmem:[#allocation23 + $0xe0] sm:$0xff] }
 0x803   : > { %9770 = vmatprep.subr.bf16.mxu1 %v11280_v53  ;;  %v9792_v58 = vpack.c.bf16 %v4468_v54, %v4465_v49  ;;  %v4837_v49 = vld [vmem:[#allocation23 + $0x370] sm:$0xff]  ;;  %v4840_v54 = vld [vmem:[#allocation23 + $0x388] sm:$0xff] }
 0x806   : > { %9772 = vmatpush3.bf16.msra.mxu1 %v9771_v63  ;;  %v4474_v63 = vld [vmem:[#allocation23 + $0x110] sm:$0xff] }
 0x807   : > { %9773 = vmatprep.subr.bf16.mxu1 %v11280_v53  ;;  %v9796_v3 = vpack.c.bf16 %v4474_v63, %v4471_v62  ;;  %v4843_v62 = vld [vmem:[#allocation23 + $0x3a0] sm:$0xff]  ;;  %v4846_v63 = vld [vmem:[#allocation23 + $0x3b8] sm:$0xff] }
 0x80a   : > { %9775 = vmatpush3.bf16.msra.mxu1 %v9774_v10  ;;  %v9824_v10 = vpack.c.bf16 %v4475_v6, %v4472_v5  ;;  %v4850_v6 = vld [vmem:[#allocation23 + $0x3d8] sm:$0xff] }
 0x80b   : > { %9808 = vmatprep.subr.bf16.mxu1 %v11280_v53 }
 0x8c0   : > { %v4418_v13 = vpop.f32.mrb[6].mxu1 }
 0x8c1   : > { %v4430_v15 = vmul.f32 %v6604_v12, %v4418_v13  ;;  %v8585_v16 = vpop.f32.mrb[7].mxu1  ;;  %v9800_v12 = vpack.c.bf16 %v4480_v8, %v4477_v7  ;;  %v4479_v13 = vld [vmem:[#allocation23 + $0x138] sm:$0xff]  ;;  %v4849_v7 = vld [vmem:[#allocation23 + $0x3d0] sm:$0xff]  ;;  %v4852_v8 = vld [vmem:[#allocation23 + $0x3e8] sm:$0xff] }
 0x8c2   : > { %v4483_v16 = vld [vmem:[#allocation23 + $0x158] sm:$0xff] }
 0x8c3   : > { %v4438_v18 = vadd.f32 %v6605_v14, %v4430_v15  ;;  %v4478_v14 = vld [vmem:[#allocation23 + $0x130] sm:$0xff]  ;;  %v4481_v15 = vld [vmem:[#allocation23 + $0x148] sm:$0xff]  ;;  %v9804_v21 = vpack.c.bf16 %v4486_v17, %v4483_v16  ;;  %v4855_v16 = vld [vmem:[#allocation23 + $0x400] sm:$0xff] }
 0x8c4   : > { %v9827_v19 = vpack.c.bf16 %v4481_v15, %v4478_v14  ;;  %v4856_v15 = vld [vmem:[#allocation23 + $0x408] sm:$0xff]  ;;  %v4858_v17 = vld [vmem:[#allocation23 + $0x418] sm:$0xff] }
 0x8c5   : > { %v12084_v24 = vmax.f32 %v4438_v18, 0.0  ;;  %v9802_v18 = vpack.c.bf16 %v4479_v13, %v4476_v11  ;;  %v9850_v11 = vpack.c.bf16 %v4850_v6, %v4847_v4  ;;  %v4853_v13 = vld [vmem:[#allocation23 + $0x3f0] sm:$0xff] }
 0x8c6   : > { %v5040_v4 = vld [vmem:[#allocation23 + $0x530] sm:$0xff] }
 0x8c7   : > { %v4538_v28 = vrot.slane %v12084_v24, 1 }
 0x8c9   : > { %4605 = vmatmul.mubr.f32.vlgmr.msra.gmra.mrb[18].mxu0 %v4538_v28  ;;  %8619 = vmatmul.mubr.f32.vlgmr.msra.gmra.mrb[8].mxu1 %v4538_v28  ;;  %v9806_v28 = vpack.c.bf16 %v4485_v22, %v4482_v20  ;;  %v9854_v20 = vpack.c.bf16 %v4856_v15, %v4853_v13  ;;  %v4859_v22 = vld [vmem:[#allocation23 + $0x420] sm:$0xff] }
 0x8ca   : > { %9779 = vmatpush1.bf16.msra.mxu0 %v9778_v25  ;;  %9810 = vmatpush3.bf16.msra.mxu1 %v9809_v26  ;;  %v4487_v25 = vld [vmem:[#allocation23 + $0x178] sm:$0xff]  ;;  %v4824_v26 = vld [vmem:[#allocation23 + $0x308] sm:$0xff]  ;;  %v5046_v13 = vld [vmem:[#allocation23 + $0x560] sm:$0xff] }
 0x8cb   : > { %9781 = vmatprep.subr.bf16.mxu0 %v9780_v29  ;;  %9811 = vmatprep.subr.bf16.mxu1 %v11280_v53  ;;  %v9830_v29 = vpack.c.bf16 %v4487_v25, %v4484_v23  ;;  %v9832_v31 = vpack.c.bf16 %v4827_v27, %v4824_v26  ;;  %v4862_v25 = vld [vmem:[#allocation23 + $0x438] sm:$0xff]  ;;  %v4861_v26 = vld [vmem:[#allocation23 + $0x430] sm:$0xff]  ;;  %v4864_v27 = vld [vmem:[#allocation23 + $0x448] sm:$0xff] }
 0x8cc   : > { %4745 = vmatprep.mubr.f32.mxu0 %v11282_v51  ;;  %8653 = vmatprep.mubr.msk.f32.mxu1 %vm11281_vm0, %v11282_v51  ;;  %v9858_v30 = vpack.c.bf16 %v4862_v25, %v4859_v22  ;;  %v5052_v22 = vld [vmem:[#allocation23 + $0x590] sm:$0xff] }
 0x8ce   : > { %9783 = vmatpush1.bf16.msra.mxu0 %v9782_v35  ;;  %9813 = vmatpush3.bf16.msra.mxu1 %v9812_v36  ;;  %v4830_v35 = vld [vmem:[#allocation23 + $0x338] sm:$0xff]  ;;  %v4833_v36 = vld [vmem:[#allocation23 + $0x350] sm:$0xff] }
 0x8cf   : > { %9785 = vmatprep.subr.bf16.mxu0 %v9784_v38  ;;  %9814 = vmatprep.subr.bf16.mxu1 %v11280_v53  ;;  %v9865_v38 = vpack.c.bf16 %v4828_v34, %v4825_v33  ;;  %v9836_v40 = vpack.c.bf16 %v4833_v36, %v4830_v35  ;;  %v4868_v34 = vld [vmem:[#allocation23 + $0x468] sm:$0xff]  ;;  %v4867_v35 = vld [vmem:[#allocation23 + $0x460] sm:$0xff]  ;;  %v4870_v36 = vld [vmem:[#allocation23 + $0x478] sm:$0xff] }
 0x8d0   : > { %v9862_v39 = vpack.c.bf16 %v4868_v34, %v4865_v32  ;;  %v5058_v32 = vld [vmem:[#allocation23 + $0x5c0] sm:$0xff] }
 0x8d2   : > { %9787 = vmatpush1.bf16.msra.mxu0 %v9786_v44  ;;  %9816 = vmatpush3.bf16.msra.mxu1 %v9815_v45  ;;  %v4836_v44 = vld [vmem:[#allocation23 + $0x368] sm:$0xff]  ;;  %v4839_v45 = vld [vmem:[#allocation23 + $0x380] sm:$0xff] }
 0x8d3   : > { %9789 = vmatprep.subr.bf16.mxu0 %v9788_v47  ;;  %9817 = vmatprep.subr.bf16.mxu1 %v11280_v53  ;;  %v9868_v47 = vpack.c.bf16 %v4834_v43, %v4831_v42  ;;  %v9840_v50 = vpack.c.bf16 %v4839_v45, %v4836_v44  ;;  %v5021_v43 = vld [vmem:[#allocation23 + $0x498] sm:$0xff]  ;;  %v5020_v44 = vld [vmem:[#allocation23 + $0x490] sm:$0xff]  ;;  %v5023_v45 = vld [vmem:[#allocation23 + $0x4a8] sm:$0xff] }
 0x8d4   : > { %v9890_v48 = vpack.c.bf16 %v5021_v43, %v5018_v41  ;;  %v5064_v41 = vld [vmem:[#allocation23 + $0x5f0] sm:$0xff] }
 0x8d6   : > { %9791 = vmatpush1.bf16.msra.mxu0 %v9790_v55  ;;  %9819 = vmatpush3.bf16.msra.mxu1 %v9818_v56  ;;  %v4842_v55 = vld [vmem:[#allocation23 + $0x398] sm:$0xff]  ;;  %v4845_v56 = vld [vmem:[#allocation23 + $0x3b0] sm:$0xff] }
 0x8d7   : > { %9793 = vmatprep.subr.bf16.mxu0 %v9792_v58  ;;  %9820 = vmatprep.subr.bf16.mxu1 %v11280_v53  ;;  %v9871_v58 = vpack.c.bf16 %v4840_v54, %v4837_v49  ;;  %v9844_v60 = vpack.c.bf16 %v4845_v56, %v4842_v55  ;;  %v4871_v49 = vrot.slane %v12084_v24, 2  ;;  %v5027_v55 = vld [vmem:[#allocation23 + $0x4c8] sm:$0xff]  ;;  %v5026_v56 = vld [vmem:[#allocation23 + $0x4c0] sm:$0xff] }
 0x8da   : > { %9795 = vmatpush1.bf16.msra.mxu0 %v9794_v0  ;;  %9822 = vmatpush3.bf16.msra.mxu1 %v9821_v1  ;;  %v4848_v0 = vld [vmem:[#allocation23 + $0x3c8] sm:$0xff]  ;;  %v4851_v1 = vld [vmem:[#allocation23 + $0x3e0] sm:$0xff] }
 0x8db   : > { %9797 = vmatprep.subr.bf16.mxu0 %v9796_v3  ;;  %9823 = vmatprep.subr.bf16.mxu1 %v11280_v53  ;;  %v9874_v3 = vpack.c.bf16 %v4846_v63, %v4843_v62  ;;  %v9848_v5 = vpack.c.bf16 %v4851_v1, %v4848_v0  ;;  %v5030_v62 = vld [vmem:[#allocation23 + $0x4e0] sm:$0xff]  ;;  %v5033_v0 = vld [vmem:[#allocation23 + $0x4f8] sm:$0xff]  ;;  %v5032_v1 = vld [vmem:[#allocation23 + $0x4f0] sm:$0xff] }
 0x8de   : > { %9799 = vmatpush1.bf16.msra.mxu0 %v9798_v9  ;;  %9825 = vmatpush3.bf16.msra.mxu1 %v9824_v10  ;;  %v4854_v9 = vld [vmem:[#allocation23 + $0x3f8] sm:$0xff]  ;;  %v4857_v10 = vld [vmem:[#allocation23 + $0x410] sm:$0xff] }
 0x8df   : > { %9801 = vmatprep.subr.bf16.mxu0 %v9800_v12  ;;  %9826 = vmatprep.subr.bf16.mxu1 %v11280_v53  ;;  %v9877_v12 = vpack.c.bf16 %v4852_v8, %v4849_v7  ;;  %v9852_v14 = vpack.c.bf16 %v4857_v10, %v4854_v9  ;;  %v5036_v7 = vld [vmem:[#allocation23 + $0x510] sm:$0xff]  ;;  %v5039_v9 = vld [vmem:[#allocation23 + $0x528] sm:$0xff]  ;;  %v5038_v10 = vld [vmem:[#allocation23 + $0x520] sm:$0xff] }
 0x8e2   : > { %9803 = vmatpush1.bf16.msra.mxu0 %v9802_v18  ;;  %9828 = vmatpush3.bf16.msra.mxu1 %v9827_v19  ;;  %v4860_v18 = vld [vmem:[#allocation23 + $0x428] sm:$0xff]  ;;  %v4863_v19 = vld [vmem:[#allocation23 + $0x440] sm:$0xff] }
 0x8e3   : > { %9805 = vmatprep.subr.bf16.mxu0 %v9804_v21  ;;  %9829 = vmatprep.subr.bf16.mxu1 %v11280_v53  ;;  %v9880_v21 = vpack.c.bf16 %v4858_v17, %v4855_v16  ;;  %v9856_v23 = vpack.c.bf16 %v4863_v19, %v4860_v18  ;;  %v5042_v16 = vld [vmem:[#allocation23 + $0x540] sm:$0xff]  ;;  %v5045_v18 = vld [vmem:[#allocation23 + $0x558] sm:$0xff]  ;;  %v5044_v19 = vld [vmem:[#allocation23 + $0x550] sm:$0xff] }
 0x8e6   : > { %9807 = vmatpush1.bf16.msra.mxu0 %v9806_v28  ;;  %9831 = vmatpush3.bf16.msra.mxu1 %v9830_v29  ;;  %v4866_v28 = vld [vmem:[#allocation23 + $0x458] sm:$0xff]  ;;  %v4869_v29 = vld [vmem:[#allocation23 + $0x470] sm:$0xff] }
 0x8e7   : > { %9833 = vmatprep.subr.bf16.mxu0 %v9832_v31  ;;  %9864 = vmatprep.subr.bf16.mxu1 %v11280_v53  ;;  %v9883_v31 = vpack.c.bf16 %v4864_v27, %v4861_v26  ;;  %v9860_v33 = vpack.c.bf16 %v4869_v29, %v4866_v28  ;;  %v5048_v26 = vld [vmem:[#allocation23 + $0x570] sm:$0xff]  ;;  %v5051_v28 = vld [vmem:[#allocation23 + $0x588] sm:$0xff]  ;;  %v5050_v29 = vld [vmem:[#allocation23 + $0x580] sm:$0xff] }
 0x8e9   : > { %4746 = vmatmul.mubr.f32.vlgmr.msra.gmra.mrb[18].mxu0 %v12084_v24  ;;  %8654 = vmatmul.mubr.f32.vlgmr.msra.gmra.mrb[10].mxu1 %v12084_v24 }
 0x8ea   : > { %9835 = vmatpush1.bf16.msra.mxu0 %v9834_v37  ;;  %9866 = vmatpush3.bf16.msra.mxu1 %v9865_v38  ;;  %v5019_v37 = vld [vmem:[#allocation23 + $0x488] sm:$0xff]  ;;  %v5022_v38 = vld [vmem:[#allocation23 + $0x4a0] sm:$0xff] }
 0x8eb   : > { %9837 = vmatprep.subr.bf16.mxu0 %v9836_v40  ;;  %9867 = vmatprep.subr.bf16.mxu1 %v11280_v53  ;;  %v9886_v40 = vpack.c.bf16 %v4870_v36, %v4867_v35  ;;  %v9888_v42 = vpack.c.bf16 %v5022_v38, %v5019_v37  ;;  %v5054_v35 = vld [vmem:[#allocation23 + $0x5a0] sm:$0xff]  ;;  %v5057_v37 = vld [vmem:[#allocation23 + $0x5b8] sm:$0xff]  ;;  %v5056_v38 = vld [vmem:[#allocation23 + $0x5b0] sm:$0xff] }
 0x8ec   : > { %4937 = vmatprep.mubr.f32.mxu0 %v11282_v51  ;;  %8688 = vmatprep.mubr.msk.f32.mxu1 %vm11281_vm0, %v11282_v51 }
 0x8ee   : > { %9839 = vmatpush1.bf16.msra.mxu0 %v9838_v46  ;;  %9869 = vmatpush3.bf16.msra.mxu1 %v9868_v47  ;;  %v5025_v46 = vld [vmem:[#allocation23 + $0x4b8] sm:$0xff]  ;;  %v5028_v47 = vld [vmem:[#allocation23 + $0x4d0] sm:$0xff] }
 0x8ef   : > { %9841 = vmatprep.subr.bf16.mxu0 %v9840_v50  ;;  %9870 = vmatprep.subr.bf16.mxu1 %v11280_v53  ;;  %v9921_v50 = vpack.c.bf16 %v5023_v45, %v5020_v44  ;;  %v9892_v54 = vpack.c.bf16 %v5028_v47, %v5025_v46  ;;  %v5060_v44 = vld [vmem:[#allocation23 + $0x5d0] sm:$0xff]  ;;  %v5063_v46 = vld [vmem:[#allocation23 + $0x5e8] sm:$0xff]  ;;  %v5062_v47 = vld [vmem:[#allocation23 + $0x5e0] sm:$0xff] }
 0x8f2   : > { %9843 = vmatpush1.bf16.msra.mxu0 %v9842_v57  ;;  %9872 = vmatpush3.bf16.msra.mxu1 %v9871_v58  ;;  %v5029_v57 = vld [vmem:[#allocation23 + $0x4d8] sm:$0xff]  ;;  %v5031_v58 = vld [vmem:[#allocation23 + $0x4e8] sm:$0xff] }
 0x8f3   : > { %9845 = vmatprep.subr.bf16.mxu0 %v9844_v60  ;;  %9873 = vmatprep.subr.bf16.mxu1 %v11280_v53  ;;  %v9894_v60 = vpack.c.bf16 %v5027_v55, %v5024_v52  ;;  %v9924_v61 = vpack.c.bf16 %v5029_v57, %v5026_v56  ;;  %v9896_v63 = vpack.c.bf16 %v5034_v59, %v5031_v58  ;;  %v5217_v52 = vld [vmem:[#allocation23 + $0x620] sm:$0xff]  ;;  %v5216_v57 = vld [vmem:[#allocation23 + $0x618] sm:$0xff]  ;;  %v5215_v58 = vld [vmem:[#allocation23 + $0x610] sm:$0xff] }
 0x8f4   : > { %v5213_v55 = vld [vmem:[#allocation23 + $0x600] sm:$0xff]  ;;  %v5218_v59 = vld [vmem:[#allocation23 + $0x628] sm:$0xff] }
 0x8f6   : > { %9847 = vmatpush1.bf16.msra.mxu0 %v9846_v2  ;;  %9875 = vmatpush3.bf16.msra.mxu1 %v9874_v3  ;;  %v5035_v2 = vld [vmem:[#allocation23 + $0x508] sm:$0xff]  ;;  %v5037_v3 = vld [vmem:[#allocation23 + $0x518] sm:$0xff] }
 0x8f7   : > { %9849 = vmatprep.subr.bf16.mxu0 %v9848_v5  ;;  %9876 = vmatprep.subr.bf16.mxu1 %v11280_v53  ;;  %v9898_v5 = vpack.c.bf16 %v5033_v0, %v5030_v62  ;;  %v9927_v6 = vpack.c.bf16 %v5035_v2, %v5032_v1  ;;  %v9900_v8 = vpack.c.bf16 %v5040_v4, %v5037_v3  ;;  %v5219_v0 = vld [vmem:[#allocation23 + $0x630] sm:$0xff]  ;;  %v5066_v1 = vrot.slane %v12084_v24, 3  ;;  %v5222_v3 = vld [vmem:[#allocation23 + $0x648] sm:$0xff]  ;;  %v5221_v4 = vld [vmem:[#allocation23 + $0x640] sm:$0xff] }
 0x8f8   : > { %v9946_v62 = vpack.c.bf16 %v5216_v57, %v5213_v55  ;;  %v5259_v55 = vld [vmem:[#allocation23 + $0x770] sm:$0xff] }
 0x8fa   : > { %9851 = vmatpush1.bf16.msra.mxu0 %v9850_v11  ;;  %9878 = vmatpush3.bf16.msra.mxu1 %v9877_v12  ;;  %v5041_v11 = vld [vmem:[#allocation23 + $0x538] sm:$0xff]  ;;  %v5043_v12 = vld [vmem:[#allocation23 + $0x548] sm:$0xff] }
 0x8fb   : > { %9853 = vmatprep.subr.bf16.mxu0 %v9852_v14  ;;  %9879 = vmatprep.subr.bf16.mxu1 %v11280_v53  ;;  %v9902_v14 = vpack.c.bf16 %v5039_v9, %v5036_v7  ;;  %v9930_v15 = vpack.c.bf16 %v5041_v11, %v5038_v10  ;;  %v9904_v17 = vpack.c.bf16 %v5046_v13, %v5043_v12  ;;  %v5229_v7 = vld [vmem:[#allocation23 + $0x680] sm:$0xff]  ;;  %v5228_v12 = vld [vmem:[#allocation23 + $0x678] sm:$0xff]  ;;  %v5227_v13 = vld [vmem:[#allocation23 + $0x670] sm:$0xff] }
 0x8fc   : > { %v5225_v10 = vld [vmem:[#allocation23 + $0x660] sm:$0xff] }
 0x8fe   : > { %9855 = vmatpush1.bf16.msra.mxu0 %v9854_v20  ;;  %9881 = vmatpush3.bf16.msra.mxu1 %v9880_v21  ;;  %v5047_v20 = vld [vmem:[#allocation23 + $0x568] sm:$0xff]  ;;  %v5049_v21 = vld [vmem:[#allocation23 + $0x578] sm:$0xff] }
 0x8ff   : > { %9857 = vmatprep.subr.bf16.mxu0 %v9856_v23  ;;  %9882 = vmatprep.subr.bf16.mxu1 %v11280_v53  ;;  %v9906_v23 = vpack.c.bf16 %v5045_v18, %v5042_v16  ;;  %v9933_v25 = vpack.c.bf16 %v5047_v20, %v5044_v19  ;;  %v9908_v27 = vpack.c.bf16 %v5052_v22, %v5049_v21  ;;  %v5235_v16 = vld [vmem:[#allocation23 + $0x6b0] sm:$0xff]  ;;  %v5234_v21 = vld [vmem:[#allocation23 + $0x6a8] sm:$0xff]  ;;  %v5233_v22 = vld [vmem:[#allocation23 + $0x6a0] sm:$0xff] }
 0x900   : > { %v5231_v19 = vld [vmem:[#allocation23 + $0x690] sm:$0xff] }
 0x902   : > { %9859 = vmatpush1.bf16.msra.mxu0 %v9858_v30  ;;  %9884 = vmatpush3.bf16.msra.mxu1 %v9883_v31  ;;  %v5053_v30 = vld [vmem:[#allocation23 + $0x598] sm:$0xff]  ;;  %v5055_v31 = vld [vmem:[#allocation23 + $0x5a8] sm:$0xff] }
 0x903   : > { %9861 = vmatprep.subr.bf16.mxu0 %v9860_v33  ;;  %9885 = vmatprep.subr.bf16.mxu1 %v11280_v53  ;;  %v9910_v33 = vpack.c.bf16 %v5051_v28, %v5048_v26  ;;  %v9936_v34 = vpack.c.bf16 %v5053_v30, %v5050_v29  ;;  %v9912_v36 = vpack.c.bf16 %v5058_v32, %v5055_v31  ;;  %v5241_v26 = vld [vmem:[#allocation23 + $0x6e0] sm:$0xff]  ;;  %v5240_v31 = vld [vmem:[#allocation23 + $0x6d8] sm:$0xff]  ;;  %v5239_v32 = vld [vmem:[#allocation23 + $0x6d0] sm:$0xff] }
 0x904   : > { %v5237_v29 = vld [vmem:[#allocation23 + $0x6c0] sm:$0xff] }
 0x906   : > { %9863 = vmatpush1.bf16.msra.mxu0 %v9862_v39  ;;  %9887 = vmatpush3.bf16.msra.mxu1 %v9886_v40  ;;  %v5059_v39 = vld [vmem:[#allocation23 + $0x5c8] sm:$0xff]  ;;  %v5061_v40 = vld [vmem:[#allocation23 + $0x5d8] sm:$0xff] }
 0x907   : > { %9889 = vmatprep.subr.bf16.mxu0 %v9888_v42  ;;  %9920 = vmatprep.subr.bf16.mxu1 %v11280_v53  ;;  %v9914_v42 = vpack.c.bf16 %v5057_v37, %v5054_v35  ;;  %v9939_v43 = vpack.c.bf16 %v5059_v39, %v5056_v38  ;;  %v9916_v45 = vpack.c.bf16 %v5064_v41, %v5061_v40  ;;  %v5247_v35 = vld [vmem:[#allocation23 + $0x710] sm:$0xff]  ;;  %v5246_v40 = vld [vmem:[#allocation23 + $0x708] sm:$0xff]  ;;  %v5245_v41 = vld [vmem:[#allocation23 + $0x700] sm:$0xff] }
 0x908   : > { %v5243_v38 = vld [vmem:[#allocation23 + $0x6f0] sm:$0xff] }
 0x909   : > { %4938 = vmatmul.mubr.f32.vlgmr.msra.gmra.mrb[18].mxu0 %v4871_v49  ;;  %8689 = vmatmul.mubr.f32.vlgmr.msra.gmra.mrb[12].mxu1 %v4871_v49  ;;  %v9918_v49 = vpack.c.bf16 %v5063_v46, %v5060_v44  ;;  %v5253_v44 = vld [vmem:[#allocation23 + $0x740] sm:$0xff] }
 0x90a   : > { %9891 = vmatpush1.bf16.msra.mxu0 %v9890_v48  ;;  %9922 = vmatpush3.bf16.msra.mxu1 %v9921_v50  ;;  %v5065_v48 = vld [vmem:[#allocation23 + $0x5f8] sm:$0xff]  ;;  %v5214_v50 = vld [vmem:[#allocation23 + $0x608] sm:$0xff] }
 0x90b   : > { %9893 = vmatprep.subr.bf16.mxu0 %v9892_v54  ;;  %9923 = vmatprep.subr.bf16.mxu1 %v11280_v53  ;;  %v9942_v54 = vpack.c.bf16 %v5065_v48, %v5062_v47  ;;  %v9944_v56 = vpack.c.bf16 %v5217_v52, %v5214_v50  ;;  %v5249_v47 = vld [vmem:[#allocation23 + $0x720] sm:$0xff]  ;;  %v5252_v50 = vld [vmem:[#allocation23 + $0x738] sm:$0xff]  ;;  %v5251_v52 = vld [vmem:[#allocation23 + $0x730] sm:$0xff] }
 0x90c   : > { %5132 = vmatprep.mubr.f32.mxu0 %v11282_v51  ;;  %8723 = vmatprep.mubr.msk.f32.mxu1 %vm11281_vm0, %v11282_v51 }
 0x90e   : > { %9895 = vmatpush1.bf16.msra.mxu0 %v9894_v60  ;;  %9925 = vmatpush3.bf16.msra.mxu1 %v9924_v61  ;;  %v5220_v60 = vld [vmem:[#allocation23 + $0x638] sm:$0xff]  ;;  %v5223_v61 = vld [vmem:[#allocation23 + $0x650] sm:$0xff] }
 0x90f   : > { %9897 = vmatprep.subr.bf16.mxu0 %v9896_v63  ;;  %9926 = vmatprep.subr.bf16.mxu1 %v11280_v53  ;;  %v9977_v63 = vpack.c.bf16 %v5218_v59, %v5215_v58  ;;  %v9948_v2 = vpack.c.bf16 %v5223_v61, %v5220_v60  ;;  %v5255_v58 = vld [vmem:[#allocation23 + $0x750] sm:$0xff]  ;;  %v5258_v60 = vld [vmem:[#allocation23 + $0x768] sm:$0xff]  ;;  %v5257_v61 = vld [vmem:[#allocation23 + $0x760] sm:$0xff] }
 0x912   : > { %9899 = vmatpush1.bf16.msra.mxu0 %v9898_v5  ;;  %9928 = vmatpush3.bf16.msra.mxu1 %v9927_v6  ;;  %v5224_v5 = vld [vmem:[#allocation23 + $0x658] sm:$0xff]  ;;  %v5226_v6 = vld [vmem:[#allocation23 + $0x668] sm:$0xff] }
 0x913   : > { %9901 = vmatprep.subr.bf16.mxu0 %v9900_v8  ;;  %9929 = vmatprep.subr.bf16.mxu1 %v11280_v53  ;;  %v9950_v8 = vpack.c.bf16 %v5222_v3, %v5219_v0  ;;  %v9980_v9 = vpack.c.bf16 %v5224_v5, %v5221_v4  ;;  %v9952_v11 = vpack.c.bf16 %v5229_v7, %v5226_v6  ;;  %v5412_v0 = vld [vmem:[#allocation23 + $0x7a0] sm:$0xff]  ;;  %v5411_v5 = vld [vmem:[#allocation23 + $0x798] sm:$0xff]  ;;  %v5410_v6 = vld [vmem:[#allocation23 + $0x790] sm:$0xff] }
 0x914   : > { %v5408_v3 = vld [vmem:[#allocation23 + $0x780] sm:$0xff]  ;;  %v5413_v7 = vld [vmem:[#allocation23 + $0x7a8] sm:$0xff] }
 0x916   : > { %9903 = vmatpush1.bf16.msra.mxu0 %v9902_v14  ;;  %9931 = vmatpush3.bf16.msra.mxu1 %v9930_v15  ;;  %v5230_v14 = vld [vmem:[#allocation23 + $0x688] sm:$0xff]  ;;  %v5232_v15 = vld [vmem:[#allocation23 + $0x698] sm:$0xff] }
 0x917   : > { %9905 = vmatprep.subr.bf16.mxu0 %v9904_v17  ;;  %9932 = vmatprep.subr.bf16.mxu1 %v11280_v53  ;;  %v9954_v17 = vpack.c.bf16 %v5228_v12, %v5225_v10  ;;  %v9983_v18 = vpack.c.bf16 %v5230_v14, %v5227_v13  ;;  %v9956_v20 = vpack.c.bf16 %v5235_v16, %v5232_v15  ;;  %v5414_v12 = vld [vmem:[#allocation23 + $0x7b0] sm:$0xff]  ;;  %v5261_v13 = vrot.slane %v12084_v24, 4  ;;  %v5417_v15 = vld [vmem:[#allocation23 + $0x7c8] sm:$0xff]  ;;  %v5416_v16 = vld [vmem:[#allocation23 + $0x7c0] sm:$0xff] }
 0x918   : > { %v10002_v10 = vpack.c.bf16 %v5411_v5, %v5408_v3  ;;  %v5454_v3 = vld [vmem:[#allocation23 + $0x8f0] sm:$0xff] }
 0x91a   : > { %9907 = vmatpush1.bf16.msra.mxu0 %v9906_v23  ;;  %9934 = vmatpush3.bf16.msra.mxu1 %v9933_v25  ;;  %v5236_v23 = vld [vmem:[#allocation23 + $0x6b8] sm:$0xff]  ;;  %v5238_v25 = vld [vmem:[#allocation23 + $0x6c8] sm:$0xff] }
 0x91b   : > { %9909 = vmatprep.subr.bf16.mxu0 %v9908_v27  ;;  %9935 = vmatprep.subr.bf16.mxu1 %v11280_v53  ;;  %v9958_v27 = vpack.c.bf16 %v5234_v21, %v5231_v19  ;;  %v9986_v28 = vpack.c.bf16 %v5236_v23, %v5233_v22  ;;  %v9960_v30 = vpack.c.bf16 %v5241_v26, %v5238_v25  ;;  %v5424_v19 = vld [vmem:[#allocation23 + $0x800] sm:$0xff]  ;;  %v5423_v25 = vld [vmem:[#allocation23 + $0x7f8] sm:$0xff]  ;;  %v5422_v26 = vld [vmem:[#allocation23 + $0x7f0] sm:$0xff] }
 0x91c   : > { %v5420_v22 = vld [vmem:[#allocation23 + $0x7e0] sm:$0xff] }
 0x91e   : > { %9911 = vmatpush1.bf16.msra.mxu0 %v9910_v33  ;;  %9937 = vmatpush3.bf16.msra.mxu1 %v9936_v34  ;;  %v5242_v33 = vld [vmem:[#allocation23 + $0x6e8] sm:$0xff]  ;;  %v5244_v34 = vld [vmem:[#allocation23 + $0x6f8] sm:$0xff] }
 0x91f   : > { %9913 = vmatprep.subr.bf16.mxu0 %v9912_v36  ;;  %9938 = vmatprep.subr.bf16.mxu1 %v11280_v53  ;;  %v9962_v36 = vpack.c.bf16 %v5240_v31, %v5237_v29  ;;  %v9989_v37 = vpack.c.bf16 %v5242_v33, %v5239_v32  ;;  %v9964_v39 = vpack.c.bf16 %v5247_v35, %v5244_v34  ;;  %v5430_v29 = vld [vmem:[#allocation23 + $0x830] sm:$0xff]  ;;  %v5429_v34 = vld [vmem:[#allocation23 + $0x828] sm:$0xff]  ;;  %v5428_v35 = vld [vmem:[#allocation23 + $0x820] sm:$0xff] }
 0x920   : > { %v5426_v32 = vld [vmem:[#allocation23 + $0x810] sm:$0xff] }
 0x922   : > { %9915 = vmatpush1.bf16.msra.mxu0 %v9914_v42  ;;  %9940 = vmatpush3.bf16.msra.mxu1 %v9939_v43  ;;  %v5248_v42 = vld [vmem:[#allocation23 + $0x718] sm:$0xff]  ;;  %v5250_v43 = vld [vmem:[#allocation23 + $0x728] sm:$0xff] }
 0x923   : > { %9917 = vmatprep.subr.bf16.mxu0 %v9916_v45  ;;  %9941 = vmatprep.subr.bf16.mxu1 %v11280_v53  ;;  %v9966_v45 = vpack.c.bf16 %v5246_v40, %v5243_v38  ;;  %v9992_v46 = vpack.c.bf16 %v5248_v42, %v5245_v41  ;;  %v9968_v48 = vpack.c.bf16 %v5253_v44, %v5250_v43  ;;  %v5436_v38 = vld [vmem:[#allocation23 + $0x860] sm:$0xff]  ;;  %v5435_v43 = vld [vmem:[#allocation23 + $0x858] sm:$0xff]  ;;  %v5434_v44 = vld [vmem:[#allocation23 + $0x850] sm:$0xff] }
 0x924   : > { %v5432_v41 = vld [vmem:[#allocation23 + $0x840] sm:$0xff] }
 0x926   : > { %9919 = vmatpush1.bf16.msra.mxu0 %v9918_v49  ;;  %9943 = vmatpush3.bf16.msra.mxu1 %v9942_v54  ;;  %v5254_v49 = vld [vmem:[#allocation23 + $0x748] sm:$0xff]  ;;  %v5256_v54 = vld [vmem:[#allocation23 + $0x758] sm:$0xff] }
 0x927   : > { %9945 = vmatprep.subr.bf16.mxu0 %v9944_v56  ;;  %9976 = vmatprep.subr.bf16.mxu1 %v11280_v53  ;;  %v9970_v56 = vpack.c.bf16 %v5252_v50, %v5249_v47  ;;  %v9995_v57 = vpack.c.bf16 %v5254_v49, %v5251_v52  ;;  %v9972_v59 = vpack.c.bf16 %v5259_v55, %v5256_v54  ;;  %v5442_v47 = vld [vmem:[#allocation23 + $0x890] sm:$0xff]  ;;  %v5441_v54 = vld [vmem:[#allocation23 + $0x888] sm:$0xff]  ;;  %v5440_v55 = vld [vmem:[#allocation23 + $0x880] sm:$0xff] }
 0x928   : > { %v5438_v52 = vld [vmem:[#allocation23 + $0x870] sm:$0xff] }
 0x929   : > { %5133 = vmatmul.mubr.f32.vlgmr.msra.gmra.mrb[18].mxu0 %v5066_v1  ;;  %8724 = vmatmul.mubr.f32.vlgmr.msra.gmra.mrb[14].mxu1 %v5066_v1  ;;  %v9974_v1 = vpack.c.bf16 %v5258_v60, %v5255_v58  ;;  %v5448_v58 = vld [vmem:[#allocation23 + $0x8c0] sm:$0xff] }
 0x92a   : > { %9947 = vmatpush1.bf16.msra.mxu0 %v9946_v62  ;;  %9978 = vmatpush3.bf16.msra.mxu1 %v9977_v63  ;;  %v5260_v62 = vld [vmem:[#allocation23 + $0x778] sm:$0xff]  ;;  %v5409_v63 = vld [vmem:[#allocation23 + $0x788] sm:$0xff] }
 0x92b   : > { %9949 = vmatprep.subr.bf16.mxu0 %v9948_v2  ;;  %9979 = vmatprep.subr.bf16.mxu1 %v11280_v53  ;;  %v9998_v2 = vpack.c.bf16 %v5260_v62, %v5257_v61  ;;  %v10000_v4 = vpack.c.bf16 %v5412_v0, %v5409_v63  ;;  %v5444_v61 = vld [vmem:[#allocation23 + $0x8a0] sm:$0xff]  ;;  %v5447_v63 = vld [vmem:[#allocation23 + $0x8b8] sm:$0xff]  ;;  %v5446_v0 = vld [vmem:[#allocation23 + $0x8b0] sm:$0xff] }
 0x92c   : > { %5327 = vmatprep.mubr.f32.mxu0 %v11282_v51  ;;  %8758 = vmatprep.mubr.msk.f32.mxu1 %vm11281_vm0, %v11282_v51 }
 0x92e   : > { %9951 = vmatpush1.bf16.msra.mxu0 %v9950_v8  ;;  %9981 = vmatpush3.bf16.msra.mxu1 %v9980_v9  ;;  %v5415_v8 = vld [vmem:[#allocation23 + $0x7b8] sm:$0xff]  ;;  %v5418_v9 = vld [vmem:[#allocation23 + $0x7d0] sm:$0xff] }
 0x92f   : > { %9953 = vmatprep.subr.bf16.mxu0 %v9952_v11  ;;  %9982 = vmatprep.subr.bf16.mxu1 %v11280_v53  ;;  %v10033_v11 = vpack.c.bf16 %v5413_v7, %v5410_v6  ;;  %v10004_v14 = vpack.c.bf16 %v5418_v9, %v5415_v8  ;;  %v5450_v6 = vld [vmem:[#allocation23 + $0x8d0] sm:$0xff]  ;;  %v5453_v8 = vld [vmem:[#allocation23 + $0x8e8] sm:$0xff]  ;;  %v5452_v9 = vld [vmem:[#allocation23 + $0x8e0] sm:$0xff] }
 0x932   : > { %9955 = vmatpush1.bf16.msra.mxu0 %v9954_v17  ;;  %9984 = vmatpush3.bf16.msra.mxu1 %v9983_v18  ;;  %v5419_v17 = vld [vmem:[#allocation23 + $0x7d8] sm:$0xff]  ;;  %v5421_v18 = vld [vmem:[#allocation23 + $0x7e8] sm:$0xff] }
 0x933   : > { %9957 = vmatprep.subr.bf16.mxu0 %v9956_v20  ;;  %9985 = vmatprep.subr.bf16.mxu1 %v11280_v53  ;;  %v10006_v20 = vpack.c.bf16 %v5417_v15, %v5414_v12  ;;  %v10036_v21 = vpack.c.bf16 %v5419_v17, %v5416_v16  ;;  %v10008_v23 = vpack.c.bf16 %v5424_v19, %v5421_v18  ;;  %v5607_v12 = vld [vmem:[#allocation23 + $0x920] sm:$0xff]  ;;  %v5606_v17 = vld [vmem:[#allocation23 + $0x918] sm:$0xff]  ;;  %v5605_v18 = vld [vmem:[#allocation23 + $0x910] sm:$0xff] }
 0x934   : > { %v5603_v15 = vld [vmem:[#allocation23 + $0x900] sm:$0xff]  ;;  %v5608_v19 = vld [vmem:[#allocation23 + $0x928] sm:$0xff] }
 0x936   : > { %9959 = vmatpush1.bf16.msra.mxu0 %v9958_v27  ;;  %9987 = vmatpush3.bf16.msra.mxu1 %v9986_v28  ;;  %v5425_v27 = vld [vmem:[#allocation23 + $0x808] sm:$0xff]  ;;  %v5427_v28 = vld [vmem:[#allocation23 + $0x818] sm:$0xff] }
 0x937   : > { %9961 = vmatprep.subr.bf16.mxu0 %v9960_v30  ;;  %9988 = vmatprep.subr.bf16.mxu1 %v11280_v53  ;;  %v10010_v30 = vpack.c.bf16 %v5423_v25, %v5420_v22  ;;  %v10039_v31 = vpack.c.bf16 %v5425_v27, %v5422_v26  ;;  %v10012_v33 = vpack.c.bf16 %v5430_v29, %v5427_v28  ;;  %v5609_v25 = vld [vmem:[#allocation23 + $0x930] sm:$0xff]  ;;  %v5456_v26 = vrot.slane %v12084_v24, 5  ;;  %v5612_v28 = vld [vmem:[#allocation23 + $0x948] sm:$0xff]  ;;  %v5611_v29 = vld [vmem:[#allocation23 + $0x940] sm:$0xff] }
 0x938   : > { %v10058_v22 = vpack.c.bf16 %v5606_v17, %v5603_v15  ;;  %v5649_v15 = vld [vmem:[#allocation23 + $0xa70] sm:$0xff] }
 0x93a   : > { %9963 = vmatpush1.bf16.msra.mxu0 %v9962_v36  ;;  %9990 = vmatpush3.bf16.msra.mxu1 %v9989_v37  ;;  %v5431_v36 = vld [vmem:[#allocation23 + $0x838] sm:$0xff]  ;;  %v5433_v37 = vld [vmem:[#allocation23 + $0x848] sm:$0xff] }
 0x93b   : > { %9965 = vmatprep.subr.bf16.mxu0 %v9964_v39  ;;  %9991 = vmatprep.subr.bf16.mxu1 %v11280_v53  ;;  %v10014_v39 = vpack.c.bf16 %v5429_v34, %v5426_v32  ;;  %v10042_v40 = vpack.c.bf16 %v5431_v36, %v5428_v35  ;;  %v10016_v42 = vpack.c.bf16 %v5436_v38, %v5433_v37  ;;  %v5619_v32 = vld [vmem:[#allocation23 + $0x980] sm:$0xff]  ;;  %v5618_v37 = vld [vmem:[#allocation23 + $0x978] sm:$0xff]  ;;  %v5617_v38 = vld [vmem:[#allocation23 + $0x970] sm:$0xff] }
 0x93c   : > { %v5615_v35 = vld [vmem:[#allocation23 + $0x960] sm:$0xff] }
 0x93e   : > { %9967 = vmatpush1.bf16.msra.mxu0 %v9966_v45  ;;  %9993 = vmatpush3.bf16.msra.mxu1 %v9992_v46  ;;  %v5437_v45 = vld [vmem:[#allocation23 + $0x868] sm:$0xff]  ;;  %v5439_v46 = vld [vmem:[#allocation23 + $0x878] sm:$0xff] }
 0x93f   : > { %9969 = vmatprep.subr.bf16.mxu0 %v9968_v48  ;;  %9994 = vmatprep.subr.bf16.mxu1 %v11280_v53  ;;  %v10018_v48 = vpack.c.bf16 %v5435_v43, %v5432_v41  ;;  %v10045_v50 = vpack.c.bf16 %v5437_v45, %v5434_v44  ;;  %v10020_v49 = vpack.c.bf16 %v5442_v47, %v5439_v46  ;;  %v5625_v41 = vld [vmem:[#allocation23 + $0x9b0] sm:$0xff]  ;;  %v5624_v46 = vld [vmem:[#allocation23 + $0x9a8] sm:$0xff]  ;;  %v5623_v47 = vld [vmem:[#allocation23 + $0x9a0] sm:$0xff] }
 0x940   : > { %v5621_v44 = vld [vmem:[#allocation23 + $0x990] sm:$0xff] }
 0x942   : > { %9971 = vmatpush1.bf16.msra.mxu0 %v9970_v56  ;;  %9996 = vmatpush3.bf16.msra.mxu1 %v9995_v57  ;;  %v5443_v56 = vld [vmem:[#allocation23 + $0x898] sm:$0xff]  ;;  %v5445_v57 = vld [vmem:[#allocation23 + $0x8a8] sm:$0xff] }
 0x943   : > { %9973 = vmatprep.subr.bf16.mxu0 %v9972_v59  ;;  %9997 = vmatprep.subr.bf16.mxu1 %v11280_v53  ;;  %v10022_v59 = vpack.c.bf16 %v5441_v54, %v5438_v52  ;;  %v10048_v60 = vpack.c.bf16 %v5443_v56, %v5440_v55  ;;  %v10024_v62 = vpack.c.bf16 %v5448_v58, %v5445_v57  ;;  %v5631_v52 = vld [vmem:[#allocation23 + $0x9e0] sm:$0xff]  ;;  %v5630_v57 = vld [vmem:[#allocation23 + $0x9d8] sm:$0xff]  ;;  %v5629_v58 = vld [vmem:[#allocation23 + $0x9d0] sm:$0xff] }
 0x944   : > { %v5627_v55 = vld [vmem:[#allocation23 + $0x9c0] sm:$0xff] }
 0x946   : > { %9975 = vmatpush1.bf16.msra.mxu0 %v9974_v1  ;;  %9999 = vmatpush3.bf16.msra.mxu1 %v9998_v2  ;;  %v5449_v1 = vld [vmem:[#allocation23 + $0x8c8] sm:$0xff]  ;;  %v5451_v2 = vld [vmem:[#allocation23 + $0x8d8] sm:$0xff] }
 0x947   : > { %10001 = vmatprep.subr.bf16.mxu0 %v10000_v4  ;;  %10032 = vmatprep.subr.bf16.mxu1 %v11280_v53  ;;  %v10026_v4 = vpack.c.bf16 %v5447_v63, %v5444_v61  ;;  %v10051_v5 = vpack.c.bf16 %v5449_v1, %v5446_v0  ;;  %v10028_v7 = vpack.c.bf16 %v5454_v3, %v5451_v2  ;;  %v5637_v61 = vld [vmem:[#allocation23 + $0xa10] sm:$0xff]  ;;  %v5636_v2 = vld [vmem:[#allocation23 + $0xa08] sm:$0xff]  ;;  %v5635_v3 = vld [vmem:[#allocation23 + $0xa00] sm:$0xff] }
 0x948   : > { %v5633_v0 = vld [vmem:[#allocation23 + $0x9f0] sm:$0xff] }
 0x949   : > { %5328 = vmatmul.mubr.f32.vlgmr.msra.gmra.mrb[18].mxu0 %v5261_v13  ;;  %8759 = vmatmul.mubr.f32.vlgmr.msra.gmra.mrb[16].mxu1 %v5261_v13  ;;  %v10030_v13 = vpack.c.bf16 %v5453_v8, %v5450_v6  ;;  %v5643_v6 = vld [vmem:[#allocation23 + $0xa40] sm:$0xff] }
 0x94a   : > { %10003 = vmatpush1.bf16.msra.mxu0 %v10002_v10  ;;  %10034 = vmatpush3.bf16.msra.mxu1 %v10033_v11  ;;  %v5455_v10 = vld [vmem:[#allocation23 + $0x8f8] sm:$0xff]  ;;  %v5604_v11 = vld [vmem:[#allocation23 + $0x908] sm:$0xff] }
 0x94b   : > { %10005 = vmatprep.subr.bf16.mxu0 %v10004_v14  ;;  %10035 = vmatprep.subr.bf16.mxu1 %v11280_v53  ;;  %v10054_v14 = vpack.c.bf16 %v5455_v10, %v5452_v9  ;;  %v10056_v16 = vpack.c.bf16 %v5607_v12, %v5604_v11  ;;  %v5639_v9 = vld [vmem:[#allocation23 + $0xa20] sm:$0xff]  ;;  %v5642_v11 = vld [vmem:[#allocation23 + $0xa38] sm:$0xff]  ;;  %v5641_v12 = vld [vmem:[#allocation23 + $0xa30] sm:$0xff] }
 0x94c   : > { %5522 = vmatprep.mubr.f32.mxu0 %v11282_v51  ;;  %8793 = vmatprep.mubr.msk.f32.mxu1 %vm11281_vm0, %v11282_v51 }
 0x94e   : > { %10007 = vmatpush1.bf16.msra.mxu0 %v10006_v20  ;;  %10037 = vmatpush3.bf16.msra.mxu1 %v10036_v21  ;;  %v5610_v20 = vld [vmem:[#allocation23 + $0x938] sm:$0xff]  ;;  %v5613_v21 = vld [vmem:[#allocation23 + $0x950] sm:$0xff] }
 0x94f   : > { %10009 = vmatprep.subr.bf16.mxu0 %v10008_v23  ;;  %10038 = vmatprep.subr.bf16.mxu1 %v11280_v53  ;;  %v10089_v23 = vpack.c.bf16 %v5608_v19, %v5605_v18  ;;  %v10060_v27 = vpack.c.bf16 %v5613_v21, %v5610_v20  ;;  %v5645_v18 = vld [vmem:[#allocation23 + $0xa50] sm:$0xff]  ;;  %v5648_v20 = vld [vmem:[#allocation23 + $0xa68] sm:$0xff]  ;;  %v5647_v21 = vld [vmem:[#allocation23 + $0xa60] sm:$0xff] }
 0x952   : > { %10011 = vmatpush1.bf16.msra.mxu0 %v10010_v30  ;;  %10040 = vmatpush3.bf16.msra.mxu1 %v10039_v31  ;;  %v5614_v30 = vld [vmem:[#allocation23 + $0x958] sm:$0xff]  ;;  %v5616_v31 = vld [vmem:[#allocation23 + $0x968] sm:$0xff] }
 0x953   : > { %10013 = vmatprep.subr.bf16.mxu0 %v10012_v33  ;;  %10041 = vmatprep.subr.bf16.mxu1 %v11280_v53  ;;  %v10062_v33 = vpack.c.bf16 %v5612_v28, %v5609_v25  ;;  %v10092_v34 = vpack.c.bf16 %v5614_v30, %v5611_v29  ;;  %v10064_v36 = vpack.c.bf16 %v5619_v32, %v5616_v31  ;;  %v5802_v25 = vld [vmem:[#allocation23 + $0xaa0] sm:$0xff]  ;;  %v5801_v30 = vld [vmem:[#allocation23 + $0xa98] sm:$0xff]  ;;  %v5800_v31 = vld [vmem:[#allocation23 + $0xa90] sm:$0xff] }
 0x954   : > { %v5798_v28 = vld [vmem:[#allocation23 + $0xa80] sm:$0xff]  ;;  %v5803_v32 = vld [vmem:[#allocation23 + $0xaa8] sm:$0xff] }
 0x956   : > { %10015 = vmatpush1.bf16.msra.mxu0 %v10014_v39  ;;  %10043 = vmatpush3.bf16.msra.mxu1 %v10042_v40  ;;  %v5620_v39 = vld [vmem:[#allocation23 + $0x988] sm:$0xff]  ;;  %v5622_v40 = vld [vmem:[#allocation23 + $0x998] sm:$0xff] }
 0x957   : > { %10017 = vmatprep.subr.bf16.mxu0 %v10016_v42  ;;  %10044 = vmatprep.subr.bf16.mxu1 %v11280_v53  ;;  %v10066_v42 = vpack.c.bf16 %v5618_v37, %v5615_v35  ;;  %v10095_v43 = vpack.c.bf16 %v5620_v39, %v5617_v38  ;;  %v10068_v45 = vpack.c.bf16 %v5625_v41, %v5622_v40  ;;  %v5804_v37 = vld [vmem:[#allocation23 + $0xab0] sm:$0xff]  ;;  %v5651_v38 = vrot.slane %v12084_v24, 6  ;;  %v5807_v40 = vld [vmem:[#allocation23 + $0xac8] sm:$0xff]  ;;  %v5806_v41 = vld [vmem:[#allocation23 + $0xac0] sm:$0xff] }
 0x958   : > { %v10114_v35 = vpack.c.bf16 %v5801_v30, %v5798_v28  ;;  %v5841_v28 = vld [vmem:[#allocation23 + $0xbd8] sm:$0xff] }
 0x95a   : > { %10019 = vmatpush1.bf16.msra.mxu0 %v10018_v48  ;;  %10046 = vmatpush3.bf16.msra.mxu1 %v10045_v50  ;;  %v5626_v48 = vld [vmem:[#allocation23 + $0x9b8] sm:$0xff]  ;;  %v5628_v50 = vld [vmem:[#allocation23 + $0x9c8] sm:$0xff] }
 0x95b   : > { %10021 = vmatprep.subr.bf16.mxu0 %v10020_v49  ;;  %10047 = vmatprep.subr.bf16.mxu1 %v11280_v53  ;;  %v10070_v49 = vpack.c.bf16 %v5624_v46, %v5621_v44  ;;  %v10098_v54 = vpack.c.bf16 %v5626_v48, %v5623_v47  ;;  %v10072_v56 = vpack.c.bf16 %v5631_v52, %v5628_v50  ;;  %v5814_v44 = vld [vmem:[#allocation23 + $0xb00] sm:$0xff]  ;;  %v5813_v50 = vld [vmem:[#allocation23 + $0xaf8] sm:$0xff]  ;;  %v5812_v52 = vld [vmem:[#allocation23 + $0xaf0] sm:$0xff] }
 0x95c   : > { %v5810_v47 = vld [vmem:[#allocation23 + $0xae0] sm:$0xff] }
 0x95e   : > { %10023 = vmatpush1.bf16.msra.mxu0 %v10022_v59  ;;  %10049 = vmatpush3.bf16.msra.mxu1 %v10048_v60  ;;  %v5632_v59 = vld [vmem:[#allocation23 + $0x9e8] sm:$0xff]  ;;  %v5634_v60 = vld [vmem:[#allocation23 + $0x9f8] sm:$0xff] }
 0x95f   : > { %10025 = vmatprep.subr.bf16.mxu0 %v10024_v62  ;;  %10050 = vmatprep.subr.bf16.mxu1 %v11280_v53  ;;  %v10074_v62 = vpack.c.bf16 %v5630_v57, %v5627_v55  ;;  %v10101_v63 = vpack.c.bf16 %v5632_v59, %v5629_v58  ;;  %v10076_v1 = vpack.c.bf16 %v5637_v61, %v5634_v60  ;;  %v5820_v55 = vld [vmem:[#allocation23 + $0xb30] sm:$0xff]  ;;  %v5819_v60 = vld [vmem:[#allocation23 + $0xb28] sm:$0xff]  ;;  %v5818_v61 = vld [vmem:[#allocation23 + $0xb20] sm:$0xff] }
 0x960   : > { %v5816_v58 = vld [vmem:[#allocation23 + $0xb10] sm:$0xff] }
 0x962   : > { %10027 = vmatpush1.bf16.msra.mxu0 %v10026_v4  ;;  %10052 = vmatpush3.bf16.msra.mxu1 %v10051_v5  ;;  %v5638_v4 = vld [vmem:[#allocation23 + $0xa18] sm:$0xff]  ;;  %v5640_v5 = vld [vmem:[#allocation23 + $0xa28] sm:$0xff] }
 0x963   : > { %10029 = vmatprep.subr.bf16.mxu0 %v10028_v7  ;;  %10053 = vmatprep.subr.bf16.mxu1 %v11280_v53  ;;  %v10078_v7 = vpack.c.bf16 %v5636_v2, %v5633_v0  ;;  %v10104_v8 = vpack.c.bf16 %v5638_v4, %v5635_v3  ;;  %v10080_v10 = vpack.c.bf16 %v5643_v6, %v5640_v5  ;;  %v5826_v0 = vld [vmem:[#allocation23 + $0xb60] sm:$0xff]  ;;  %v5825_v5 = vld [vmem:[#allocation23 + $0xb58] sm:$0xff]  ;;  %v5824_v6 = vld [vmem:[#allocation23 + $0xb50] sm:$0xff] }
 0x964   : > { %v5822_v3 = vld [vmem:[#allocation23 + $0xb40] sm:$0xff] }
 0x966   : > { %10031 = vmatpush1.bf16.msra.mxu0 %v10030_v13  ;;  %10055 = vmatpush3.bf16.msra.mxu1 %v10054_v14  ;;  %v5644_v13 = vld [vmem:[#allocation23 + $0xa48] sm:$0xff]  ;;  %v5646_v14 = vld [vmem:[#allocation23 + $0xa58] sm:$0xff] }
 0x967   : > { %10057 = vmatprep.subr.bf16.mxu0 %v10056_v16  ;;  %10088 = vmatprep.subr.bf16.mxu1 %v11280_v53  ;;  %v10082_v16 = vpack.c.bf16 %v5642_v11, %v5639_v9  ;;  %v10107_v17 = vpack.c.bf16 %v5644_v13, %v5641_v12  ;;  %v10084_v19 = vpack.c.bf16 %v5649_v15, %v5646_v14  ;;  %v5832_v9 = vld [vmem:[#allocation23 + $0xb90] sm:$0xff]  ;;  %v5831_v14 = vld [vmem:[#allocation23 + $0xb88] sm:$0xff]  ;;  %v5830_v15 = vld [vmem:[#allocation23 + $0xb80] sm:$0xff] }
 0x968   : > { %v5828_v12 = vld [vmem:[#allocation23 + $0xb70] sm:$0xff] }
 0x969   : > { %5523 = vmatmul.mubr.f32.vlgmr.msra.gmra.mrb[18].mxu0 %v5456_v26  ;;  %8794 = vmatmul.mubr.f32.vlgmr.msra.gmra.mrb[18].mxu1 %v5456_v26  ;;  %v10086_v26 = vpack.c.bf16 %v5648_v20, %v5645_v18  ;;  %v5838_v18 = vld [vmem:[#allocation23 + $0xbc0] sm:$0xff] }
 0x96a   : > { %10059 = vmatpush1.bf16.msra.mxu0 %v10058_v22  ;;  %10090 = vmatpush3.bf16.msra.mxu1 %v10089_v23  ;;  %v5650_v22 = vld [vmem:[#allocation23 + $0xa78] sm:$0xff]  ;;  %v5799_v23 = vld [vmem:[#allocation23 + $0xa88] sm:$0xff] }
 0x96b   : > { %10061 = vmatprep.subr.bf16.mxu0 %v10060_v27  ;;  %10091 = vmatprep.subr.bf16.mxu1 %v11280_v53  ;;  %v10110_v27 = vpack.c.bf16 %v5650_v22, %v5647_v21  ;;  %v10112_v29 = vpack.c.bf16 %v5802_v25, %v5799_v23  ;;  %v5834_v21 = vld [vmem:[#allocation23 + $0xba0] sm:$0xff]  ;;  %v5837_v23 = vld [vmem:[#allocation23 + $0xbb8] sm:$0xff]  ;;  %v5836_v25 = vld [vmem:[#allocation23 + $0xbb0] sm:$0xff] }
 0x96c   : > { %5717 = vmatprep.mubr.f32.mxu0 %v11282_v51  ;;  %8828 = vmatprep.mubr.msk.f32.mxu1 %vm11281_vm0, %v11282_v51 }
 0x96e   : > { %10063 = vmatpush1.bf16.msra.mxu0 %v10062_v33  ;;  %10093 = vmatpush3.bf16.msra.mxu1 %v10092_v34  ;;  %v5805_v33 = vld [vmem:[#allocation23 + $0xab8] sm:$0xff]  ;;  %v5808_v34 = vld [vmem:[#allocation23 + $0xad0] sm:$0xff] }
 0x96f   : > { %10065 = vmatprep.subr.bf16.mxu0 %v10064_v36  ;;  %10094 = vmatprep.subr.bf16.mxu1 %v11280_v53  ;;  %v10145_v36 = vpack.c.bf16 %v5803_v32, %v5800_v31  ;;  %v10116_v39 = vpack.c.bf16 %v5808_v34, %v5805_v33  ;;  %v10138_v31 = vpack.c.bf16 %v5837_v23, %v5834_v21  ;;  %v5840_v33 = vld [vmem:[#allocation23 + $0xbd0] sm:$0xff] }
 0x972   : > { %10067 = vmatpush1.bf16.msra.mxu0 %v10066_v42  ;;  %10096 = vmatpush3.bf16.msra.mxu1 %v10095_v43  ;;  %v5809_v42 = vld [vmem:[#allocation23 + $0xad8] sm:$0xff]  ;;  %v5811_v43 = vld [vmem:[#allocation23 + $0xae8] sm:$0xff] }
 0x973   : > { %10069 = vmatprep.subr.bf16.mxu0 %v10068_v45  ;;  %10097 = vmatprep.subr.bf16.mxu1 %v11280_v53  ;;  %v10118_v45 = vpack.c.bf16 %v5807_v40, %v5804_v37  ;;  %v10148_v46 = vpack.c.bf16 %v5809_v42, %v5806_v41  ;;  %v10120_v48 = vpack.c.bf16 %v5814_v44, %v5811_v43  ;;  %v5845_v37 = vld [vmem:[#allocation23 + $0xbf8] sm:$0xff]  ;;  %v5846_v40 = vrot.slane %v12084_v24, 7  ;;  %v6047_v24 = vld [vmem:[#allocation26 + $0x100] sm:$0xff] }
 0x976   : > { %10071 = vmatpush1.bf16.msra.mxu0 %v10070_v49  ;;  %10099 = vmatpush3.bf16.msra.mxu1 %v10098_v54  ;;  %v5815_v49 = vld [vmem:[#allocation23 + $0xb08] sm:$0xff]  ;;  %v5817_v54 = vld [vmem:[#allocation23 + $0xb18] sm:$0xff] }
 0x977   : > { %10073 = vmatprep.subr.bf16.mxu0 %v10072_v56  ;;  %10100 = vmatprep.subr.bf16.mxu1 %v11280_v53  ;;  %v10122_v56 = vpack.c.bf16 %v5813_v50, %v5810_v47  ;;  %v10151_v57 = vpack.c.bf16 %v5815_v49, %v5812_v52  ;;  %v10124_v59 = vpack.c.bf16 %v5820_v55, %v5817_v54  ;;  %v6031_v47 = vld [vmem:[#allocation26 + $0x80] sm:$0xff]  ;;  %v6016_v49 = vld [vmem:[#allocation26 + $0x8] sm:$0xff] }
 0x978   : > { %v6015_v50 = vld [vmem:[#allocation26] sm:$0xff]  ;;  %v6048_v54 = vld [vmem:[#allocation26 + $0x108] sm:$0xff] }
 0x979   : > { %v10170_v55 = vpack.c.bf16 %v6016_v49, %v6015_v50 }
 0x97a   : > { %10075 = vmatpush1.bf16.msra.mxu0 %v10074_v62  ;;  %10102 = vmatpush3.bf16.msra.mxu1 %v10101_v63  ;;  %v5821_v62 = vld [vmem:[#allocation23 + $0xb38] sm:$0xff]  ;;  %v5823_v63 = vld [vmem:[#allocation23 + $0xb48] sm:$0xff] }
 0x97b   : > { %10077 = vmatprep.subr.bf16.mxu0 %v10076_v1  ;;  %10103 = vmatprep.subr.bf16.mxu1 %v11280_v53  ;;  %v10126_v1 = vpack.c.bf16 %v5819_v60, %v5816_v58  ;;  %v10154_v2 = vpack.c.bf16 %v5821_v62, %v5818_v61  ;;  %v10128_v4 = vpack.c.bf16 %v5826_v0, %v5823_v63  ;;  %v6034_v58 = vld [vmem:[#allocation26 + $0x98] sm:$0xff]  ;;  %v6049_v62 = vld [vmem:[#allocation26 + $0x110] sm:$0xff] }
 0x97c   : > { %v6018_v61 = vld [vmem:[#allocation26 + $0x18] sm:$0xff] }
 0x97d   : > { %v6050_v63 = vld [vmem:[#allocation26 + $0x118] sm:$0xff] }
 0x97e   : > { %10079 = vmatpush1.bf16.msra.mxu0 %v10078_v7  ;;  %10105 = vmatpush3.bf16.msra.mxu1 %v10104_v8  ;;  %v5827_v7 = vld [vmem:[#allocation23 + $0xb68] sm:$0xff]  ;;  %v5829_v8 = vld [vmem:[#allocation23 + $0xb78] sm:$0xff] }
 0x97f   : > { %10081 = vmatprep.subr.bf16.mxu0 %v10080_v10  ;;  %10106 = vmatprep.subr.bf16.mxu1 %v11280_v53  ;;  %v10130_v10 = vpack.c.bf16 %v5825_v5, %v5822_v3  ;;  %v10157_v11 = vpack.c.bf16 %v5827_v7, %v5824_v6  ;;  %v10132_v13 = vpack.c.bf16 %v5832_v9, %v5829_v8  ;;  %v6036_v3 = vld [vmem:[#allocation26 + $0xa8] sm:$0xff]  ;;  %v6051_v7 = vld [vmem:[#allocation26 + $0x120] sm:$0xff]  ;;  %v6037_v9 = vld [vmem:[#allocation26 + $0xb0] sm:$0xff] }
 0x980   : > { %v6020_v6 = vld [vmem:[#allocation26 + $0x28] sm:$0xff] }
 0x981   : > { %v6052_v8 = vld [vmem:[#allocation26 + $0x128] sm:$0xff] }
 0x982   : > { %10083 = vmatpush1.bf16.msra.mxu0 %v10082_v16  ;;  %10108 = vmatpush3.bf16.msra.mxu1 %v10107_v17  ;;  %v5833_v16 = vld [vmem:[#allocation23 + $0xb98] sm:$0xff]  ;;  %v5835_v17 = vld [vmem:[#allocation23 + $0xba8] sm:$0xff] }
 0x983   : > { %10085 = vmatprep.subr.bf16.mxu0 %v10084_v19  ;;  %10109 = vmatprep.subr.bf16.mxu1 %v11280_v53  ;;  %v10134_v19 = vpack.c.bf16 %v5831_v14, %v5828_v12  ;;  %v10160_v20 = vpack.c.bf16 %v5833_v16, %v5830_v15  ;;  %v10136_v22 = vpack.c.bf16 %v5838_v18, %v5835_v17  ;;  %v6022_v15 = vld [vmem:[#allocation26 + $0x38] sm:$0xff]  ;;  %v6053_v16 = vld [vmem:[#allocation26 + $0x130] sm:$0xff]  ;;  %v6039_v18 = vld [vmem:[#allocation26 + $0xc0] sm:$0xff] }
 0x984   : > { %v10207_v12 = vpack.c.bf16 %v6052_v8, %v6051_v7  ;;  %v6054_v17 = vld [vmem:[#allocation26 + $0x138] sm:$0xff] }
 0x985   : > { %v10210_v21 = vpack.c.bf16 %v6054_v17, %v6053_v16 }
 0x986   : > { %10087 = vmatpush1.bf16.msra.mxu0 %v10086_v26  ;;  %10111 = vmatpush3.bf16.msra.mxu1 %v10110_v27  ;;  %v5839_v26 = vld [vmem:[#allocation23 + $0xbc8] sm:$0xff] }
 0x987   : > { %10113 = vmatprep.subr.bf16.mxu0 %v10112_v29  ;;  %10144 = vmatprep.subr.bf16.mxu1 %v11280_v53  ;;  %v5844_v29 = vld [vmem:[#allocation23 + $0xbf0] sm:$0xff]  ;;  %v10163_v32 = vpack.c.bf16 %v5839_v26, %v5836_v25  ;;  %v6055_v26 = vld [vmem:[#allocation26 + $0x140] sm:$0xff] }
 0x988   : > { %v10140_v34 = vpack.c.bf16 %v5844_v29, %v5841_v28  ;;  %v6024_v25 = vld [vmem:[#allocation26 + $0x48] sm:$0xff]  ;;  %v6041_v28 = vld [vmem:[#allocation26 + $0xd0] sm:$0xff]  ;;  %v6042_v29 = vld [vmem:[#allocation26 + $0xd8] sm:$0xff] }
 0x989   : > { %5718 = vmatmul.mubr.f32.vlgmr.msra.gmra.mrb[18].mxu0 %v5651_v38  ;;  %8829 = vmatmul.mubr.f32.vlgmr.msra.gmra.mrb[20].mxu1 %v5651_v38 }
 0x98a   : > { %10115 = vmatpush1.bf16.msra.mxu0 %v10114_v35  ;;  %10146 = vmatpush3.bf16.msra.mxu1 %v10145_v36  ;;  %v5843_v35 = vld [vmem:[#allocation23 + $0xbe8] sm:$0xff]  ;;  %v5842_v36 = vld [vmem:[#allocation23 + $0xbe0] sm:$0xff] }
 0x98b   : > { %10117 = vmatprep.subr.bf16.mxu0 %v10116_v39  ;;  %10147 = vmatprep.subr.bf16.mxu1 %v11280_v53  ;;  %v10142_v38 = vpack.c.bf16 %v5843_v35, %v5840_v33  ;;  %v10166_v39 = vpack.c.bf16 %v5845_v37, %v5842_v36  ;;  %v10188_v33 = vpack.c.bf16 %v6042_v29, %v6041_v28  ;;  %v6057_v35 = vld [vmem:[#allocation26 + $0x150] sm:$0xff]  ;;  %v6058_v36 = vld [vmem:[#allocation26 + $0x158] sm:$0xff]  ;;  %v6043_v37 = vld [vmem:[#allocation26 + $0xe0] sm:$0xff] }
 0x98c   : > { %5912 = vmatprep.mubr.f32.mxu0 %v11282_v51  ;;  %8863 = vmatprep.mubr.msk.f32.mxu1 %vm11281_vm0, %v11282_v51 }
 0x98e   : > { %10119 = vmatpush1.bf16.msra.mxu0 %v10118_v45  ;;  %10149 = vmatpush3.bf16.msra.mxu1 %v10148_v46 }
 0x98f   : > { %10121 = vmatprep.subr.bf16.mxu0 %v10120_v48  ;;  %10150 = vmatprep.subr.bf16.mxu1 %v11280_v53  ;;  %v6032_v48 = vld [vmem:[#allocation26 + $0x88] sm:$0xff] }
 0x990   : > { %v10168_v52 = vpack.c.bf16 %v6032_v48, %v6031_v47  ;;  %v6060_v48 = vld [vmem:[#allocation26 + $0x168] sm:$0xff] }
 0x992   : > { %10123 = vmatpush1.bf16.msra.mxu0 %v10122_v56  ;;  %10152 = vmatpush3.bf16.msra.mxu1 %v10151_v57  ;;  %v10201_v56 = vpack.c.bf16 %v6048_v54, %v6047_v24  ;;  %v6033_v57 = vld [vmem:[#allocation26 + $0x90] sm:$0xff]  ;;  %v6046_v54 = vld [vmem:[#allocation26 + $0xf8] sm:$0xff] }
 0x993   : > { %10125 = vmatprep.subr.bf16.mxu0 %v10124_v59  ;;  %10153 = vmatprep.subr.bf16.mxu1 %v11280_v53  ;;  %v6017_v59 = vld [vmem:[#allocation26 + $0x10] sm:$0xff]  ;;  %v10172_v60 = vpack.c.bf16 %v6034_v58, %v6033_v57  ;;  %v6030_v57 = vld [vmem:[#allocation26 + $0x78] sm:$0xff] }
 0x994   : > { %v10174_v0 = vpack.c.bf16 %v6018_v61, %v6017_v59  ;;  %v6045_v24 = vld [vmem:[#allocation26 + $0xf0] sm:$0xff] }
 0x995   : > { %v6061_v58 = vld [vmem:[#allocation26 + $0x170] sm:$0xff] }
 0x996   : > { %10127 = vmatpush1.bf16.msra.mxu0 %v10126_v1  ;;  %10155 = vmatpush3.bf16.msra.mxu1 %v10154_v2  ;;  %v10204_v1 = vpack.c.bf16 %v6050_v63, %v6049_v62  ;;  %v6035_v2 = vld [vmem:[#allocation26 + $0xa0] sm:$0xff] }
 0x997   : > { %10129 = vmatprep.subr.bf16.mxu0 %v10128_v4  ;;  %10156 = vmatprep.subr.bf16.mxu1 %v11280_v53  ;;  %v6019_v4 = vld [vmem:[#allocation26 + $0x20] sm:$0xff]  ;;  %v10176_v5 = vpack.c.bf16 %v6036_v3, %v6035_v2 }
 0x99a   : > { %10131 = vmatpush1.bf16.msra.mxu0 %v10130_v10  ;;  %10158 = vmatpush3.bf16.msra.mxu1 %v10157_v11  ;;  %v6038_v10 = vld [vmem:[#allocation26 + $0xb8] sm:$0xff]  ;;  %v10178_v11 = vpack.c.bf16 %v6020_v6, %v6019_v4  ;;  %v5994_v6 = vlaneseq }
 0x99b   : > { %10133 = vmatprep.subr.bf16.mxu0 %v10132_v13  ;;  %10159 = vmatprep.subr.bf16.mxu1 %v11280_v53  ;;  %v6021_v13 = vld [vmem:[#allocation26 + $0x30] sm:$0xff]  ;;  %v10180_v14 = vpack.c.bf16 %v6038_v10, %v6037_v9  ;;  %v5992_v9 = vld [vmem:[#allocation24] sm:$0x7] }
 0x99c   : > { %v4677_v27 = vpop.f32.mrb[8].mxu1  ;;  %v5995_v7 = vshrl.u32 %v5994_v6, 7 }
 0x99d   : > { %v8620_v30 = vpop.f32.mrb[9].mxu1 }
 0x99e   : > { %10135 = vmatpush1.bf16.msra.mxu0 %v10134_v19  ;;  %10161 = vmatpush3.bf16.msra.mxu1 %v10160_v20  ;;  %v6040_v19 = vld [vmem:[#allocation26 + $0xc8] sm:$0xff]  ;;  %v10182_v20 = vpack.c.bf16 %v6022_v15, %v6021_v13  ;;  %v5996_v8 = vsub.s32 0, %v5995_v7  ;;  %v6000_v10 = vsub.s32 1, %v5995_v7 }
 0x99f   : > { %10137 = vmatprep.subr.bf16.mxu0 %v10136_v22  ;;  %10162 = vmatprep.subr.bf16.mxu1 %v11280_v53  ;;  %v6023_v22 = vld [vmem:[#allocation26 + $0x40] sm:$0xff]  ;;  %v10184_v23 = vpack.c.bf16 %v6040_v19, %v6039_v18 }
 0x9a0   : > { %v10186_v30 = vpack.c.bf16 %v6024_v25, %v6023_v22  ;;  %v6001_v13 = vrot.slane %v5992_v9, %v6000_v10  ;;  %v6206_v22 = vld [vmem:[#allocation29 + $0x8] sm:$0xff] }
 0x9a2   : > { %10139 = vmatpush1.bf16.msra.mxu0 %v10138_v31  ;;  %10164 = vmatpush3.bf16.msra.mxu1 %v10163_v32  ;;  %v6025_v32 = vld [vmem:[#allocation26 + $0x50] sm:$0xff] }
 0x9a3   : > { %10141 = vmatprep.subr.bf16.mxu0 %v10140_v34  ;;  %10165 = vmatprep.subr.bf16.mxu1 %v11280_v53  ;;  %v6026_v34 = vld [vmem:[#allocation26 + $0x58] sm:$0xff] }
 0x9a6   : > { %10143 = vmatpush1.bf16.msra.mxu0 %v10142_v38  ;;  %10167 = vmatpush3.bf16.msra.mxu1 %v10166_v39  ;;  %v6044_v38 = vld [vmem:[#allocation26 + $0xe8] sm:$0xff]  ;;  %v10190_v39 = vpack.c.bf16 %v6026_v34, %v6025_v32 }
 0x9a7   : > { %10200 = vmatprep.subr.bf16.mxu1 %v11280_v53  ;;  %10169 = vmatprep.subr.bf16.mxu0 %v10168_v52  ;;  %v6210_v34 = vld [vmem:[#allocation29 + $0x28] sm:$0xff] }
 0x9a9   : > { %5913 = vmatmul.mubr.f32.vlgmr.msra.gmra.mrb[18].mxu0 %v5846_v40  ;;  %8864 = vmatmul.mubr.f32.vlgmr.msra.gmra.mrb[22].mxu1 %v5846_v40  ;;  %v10216_v40 = vpack.c.bf16 %v6058_v36, %v6057_v35  ;;  %v6211_v36 = vld [vmem:[#allocation29 + $0x30] sm:$0xff] }
 0x9aa   : > { %8898 = vmatprep.mubr.msk.f32.mxu1 %vm11281_vm0, %v11282_v51  ;;  %10171 = vmatpush3.bf16.msra.mxu0 %v10170_v55  ;;  %v10196_v55 = vpack.c.bf16 %v6046_v54, %v6045_v24 }
 0x9ab   : > { %10202 = vmatpush3.bf16.msra.mxu1 %v10201_v56  ;;  %10173 = vmatprep.subr.bf16.mxu0 %v10172_v60  ;;  %v6029_v56 = vld [vmem:[#allocation26 + $0x70] sm:$0xff]  ;;  %v6062_v60 = vld [vmem:[#allocation26 + $0x178] sm:$0xff] }
 0x9ac   : > { %10203 = vmatprep.subr.bf16.mxu1 %v11280_v53  ;;  %v10198_v59 = vpack.c.bf16 %v6030_v57, %v6029_v56  ;;  %v10222_v61 = vpack.c.bf16 %v6062_v60, %v6061_v58 }
 0x9ae   : > { %10175 = vmatpush3.bf16.msra.mxu0 %v10174_v0 }
 0x9af   : > { %10205 = vmatpush3.bf16.msra.mxu1 %v10204_v1  ;;  %10177 = vmatprep.subr.bf16.mxu0 %v10176_v5 }
 0x9b0   : > { %10206 = vmatprep.subr.bf16.mxu1 %v11280_v53 }
 0x9b2   : > { %10179 = vmatpush3.bf16.msra.mxu0 %v10178_v11  ;;  %v6004_v11 = vsub.s32 2, %v5995_v7 }
 0x9b3   : > { %10208 = vmatpush3.bf16.msra.mxu1 %v10207_v12  ;;  %10181 = vmatprep.subr.bf16.mxu0 %v10180_v14  ;;  %v5997_v12 = vrot.slane %v5992_v9, %v5996_v8 }
 0x9b4   : > { %10209 = vmatprep.subr.bf16.mxu1 %v11280_v53  ;;  %v6005_v14 = vrot.slane %v5992_v9, %v6004_v11 }
 0x9b6   : > { %10183 = vmatpush3.bf16.msra.mxu0 %v10182_v20 }
 0x9b7   : > { %10211 = vmatpush3.bf16.msra.mxu1 %v10210_v21  ;;  %10185 = vmatprep.subr.bf16.mxu0 %v10184_v23  ;;  %v6205_v21 = vld [vmem:[#allocation29] sm:$0xff] }
 0x9b8   : > { %10212 = vmatprep.subr.bf16.mxu1 %v11280_v53 }
 0x9ba   : > { %10187 = vmatpush3.bf16.msra.mxu0 %v10186_v30  ;;  %v6207_v30 = vld [vmem:[#allocation29 + $0x10] sm:$0xff] }
 0x9bb   : > { %10189 = vmatprep.subr.bf16.mxu0 %v10188_v33  ;;  %v6209_v33 = vld [vmem:[#allocation29 + $0x20] sm:$0xff] }
 0x9bc   : > { %v4818_v41 = vpop.f32.mrb[10].mxu1  ;;  %v10231_v35 = vpack.c.bf16 %v6210_v34, %v6209_v33 }
 0x9bd   : > { %v4819_v42 = vadd.f32 %v4818_v41, %v4677_v27  ;;  %v8655_v43 = vpop.f32.mrb[11].mxu1  ;;  %v6056_v27 = vld [vmem:[#allocation26 + $0x148] sm:$0xff]  ;;  %v10192_v41 = vpack.c.bf16 %v6044_v38, %v6043_v37  ;;  %v6212_v37 = vld [vmem:[#allocation29 + $0x38] sm:$0xff] }
 0x9be   : > { %v10213_v31 = vpack.c.bf16 %v6056_v27, %v6055_v26  ;;  %10191 = vmatpush3.bf16.msra.mxu0 %v10190_v39  ;;  %v6028_v43 = vld [vmem:[#allocation26 + $0x68] sm:$0xff]  ;;  %v10225_v27 = vpack.c.bf16 %v6206_v22, %v6205_v21  ;;  %v10234_v38 = vpack.c.bf16 %v6212_v37, %v6211_v36 }
 0x9bf   : > { %10193 = vmatprep.subr.bf16.mxu0 %v10192_v41  ;;  %v6213_v39 = vld [vmem:[#allocation29 + $0x40] sm:$0xff] }
 0x9c0   : > { %10214 = vmatpush3.bf16.msra.mxu1 %v10213_v31  ;;  %v6208_v31 = vld [vmem:[#allocation29 + $0x18] sm:$0xff] }
 0x9c1   : > { %10215 = vmatprep.subr.bf16.mxu1 %v11280_v53  ;;  %v10228_v32 = vpack.c.bf16 %v6208_v31, %v6207_v30 }
 0x9c4   : > { %10217 = vmatpush3.bf16.msra.mxu1 %v10216_v40  ;;  %v6214_v40 = vld [vmem:[#allocation29 + $0x48] sm:$0xff] }
 0x9c5   : > { %10218 = vmatprep.subr.bf16.mxu1 %v11280_v53  ;;  %v10237_v41 = vpack.c.bf16 %v6214_v40, %v6213_v39 }
 0x9dc   : > { %v5010_v44 = vpop.f32.mrb[12].mxu1 }
 0x9dd   : > { %v12174_v45 = vadd.f32 %v5010_v44, %v4819_v42  ;;  %v8690_v46 = vpop.f32.mrb[13].mxu1  ;;  %v6027_v42 = vld [vmem:[#allocation26 + $0x60] sm:$0xff] }
 0x9de   : > { %v6059_v44 = vld [vmem:[#allocation26 + $0x160] sm:$0xff]  ;;  %v10194_v47 = vpack.c.bf16 %v6028_v43, %v6027_v42  ;;  %v6215_v42 = vld [vmem:[#allocation29 + $0x50] sm:$0xff] }
 0x9df   : > { %v10219_v49 = vpack.c.bf16 %v6060_v48, %v6059_v44  ;;  %v6216_v43 = vld [vmem:[#allocation29 + $0x58] sm:$0xff] }
 0x9e0   : > { %10195 = vmatpush3.bf16.msra.mxu0 %v10194_v47  ;;  %v10240_v44 = vpack.c.bf16 %v6216_v43, %v6215_v42  ;;  %v6218_v47 = vld [vmem:[#allocation29 + $0x68] sm:$0xff] }
 0x9e1   : > { %10220 = vmatpush3.bf16.msra.mxu1 %v10219_v49  ;;  %10197 = vmatprep.subr.bf16.mxu0 %v10196_v55  ;;  %v6063_v55 = vld [vmem:[#allocation27] sm:$0x1] }
 0x9e2   : > { %10221 = vmatprep.subr.bf16.mxu1 %v11280_v53 }
 0x9e4   : > { %10199 = vmatpush3.bf16.msra.mxu0 %v10198_v59 }
 0x9e5   : > { %10223 = vmatpush3.bf16.msra.mxu1 %v10222_v61  ;;  %10224 = vmatprep.subr.bf16.mxu0 %v11280_v53 }
 0x9fc   : > { %v5205_v46 = vpop.f32.mrb[14].mxu1 }
 0x9fd   : > { %v5211_v50 = vadd.f32 %v5205_v46, %v12174_v45  ;;  %v8725_v52 = vpop.f32.mrb[15].mxu1  ;;  %v6217_v46 = vld [vmem:[#allocation29 + $0x60] sm:$0xff] }
 0x9fe   : > { %v10243_v48 = vpack.c.bf16 %v6218_v47, %v6217_v46  ;;  %v6220_v52 = vld [vmem:[#allocation29 + $0x78] sm:$0xff] }
 0xa1c   : > { %v5400_v45 = vpop.f32.mrb[16].mxu1 }
 0xa1d   : > { %v5406_v62 = vadd.f32 %v5400_v45, %v5211_v50  ;;  %v8760_v63 = vpop.f32.mrb[17].mxu1  ;;  %v6219_v50 = vld [vmem:[#allocation29 + $0x70] sm:$0xff]  ;;  %v6293_v45 = vand.u32 127, %v5994_v6 }
 0xa1e   : > { %v10246_v49 = vpack.c.bf16 %v6220_v52, %v6219_v50 }
 0xa1f   : > { %vm6294_vm1 = vcmp.lt.s32.totalorder %v6293_v45, 10 }
 0xa20   : > { %v6606_v7 = vsel %vm6294_vm1, 1.0, %v11282_v51 }
 0xa3c   : > { %v5595_v0 = vpop.f32.mrb[18].mxu1 }
 0xa3d   : > { %v5601_v1 = vadd.f32 %v5595_v0, %v5406_v62  ;;  %v8795_v2 = vpop.f32.mrb[19].mxu1  ;;  %v6221_v62 = vld [vmem:[#allocation30] sm:$0x1] }
 0xa5c   : > { %v5790_v3 = vpop.f32.mrb[20].mxu1 }
 0xa5d   : > { %v5796_v4 = vadd.f32 %v5790_v3, %v5601_v1  ;;  %v8830_v5 = vpop.f32.mrb[21].mxu1 }
 0xa7c   : > { %v5914_v15 = vpop.f32.mrb[18].mxu0  ;;  %v5985_v16 = vpop.f32.mrb[22].mxu1 }
 0xa7d   : > { %v6009_v17 = vadd.f32 %v5997_v12, %v5914_v15  ;;  %v5991_v18 = vadd.f32 %v5985_v16, %v5796_v4  ;;  %v5916_v19 = vpop.f32.mrb[19].mxu0  ;;  %v8865_v20 = vpop.f32.mrb[23].mxu1 }
 0xa7e   : > { %v6010_v23 = vadd.f32 %v6001_v13, %v5916_v19 }
 0xa7f   : > { %v6011_v25 = vadd.f32 %v6005_v14, %v5991_v18  ;;  %v6012_v28 = vmax.f32 %v6009_v17, 0.0 }
 0xa80   : > { %v6013_v26 = vmax.f32 %v6010_v23, 0.0 }
 0xa81   : > { %v6014_v29 = vmax.f32 %v6011_v25, 0.0 }
 0xa82   : > { %6128 = vmatprep.mubr.f32.mxu0 %v6013_v26 }
 0xa83   : > { %6129 = vmatmul.mubr.f32.vlgmr.msra.gmra.mrb[20].mxu0 %v6012_v28  ;;  %8899 = vmatmul.mubr.f32.vlgmr.msra.gmra.mrb[24].mxu1 %v6014_v29 }
 0xa84   : > { %10226 = vmatpush3.bf16.msra.mxu0 %v10225_v27  ;;  %8933 = vmatprep.mubr.msk.f32.mxu0 %vm11281_vm0, %v11282_v51 }
 0xa85   : > { %10227 = vmatprep.subr.bf16.mxu0 %v11280_v53 }
 0xa88   : > { %10229 = vmatpush3.bf16.msra.mxu0 %v10228_v32 }
 0xa89   : > { %10230 = vmatprep.subr.bf16.mxu0 %v11280_v53 }
 0xa8c   : > { %10232 = vmatpush3.bf16.msra.mxu0 %v10231_v35 }
 0xa8d   : > { %10233 = vmatprep.subr.bf16.mxu0 %v11280_v53 }
 0xa90   : > { %10235 = vmatpush3.bf16.msra.mxu0 %v10234_v38 }
 0xa91   : > { %10236 = vmatprep.subr.bf16.mxu0 %v11280_v53 }
 0xa94   : > { %10238 = vmatpush3.bf16.msra.mxu0 %v10237_v41 }
 0xa95   : > { %10239 = vmatprep.subr.bf16.mxu0 %v11280_v53 }
 0xa98   : > { %10241 = vmatpush3.bf16.msra.mxu0 %v10240_v44 }
 0xa99   : > { %10242 = vmatprep.subr.bf16.mxu0 %v11280_v53 }
 0xa9c   : > { %10244 = vmatpush3.bf16.msra.mxu0 %v10243_v48 }
 0xa9d   : > { %10245 = vmatprep.subr.bf16.mxu0 %v11280_v53 }
 0xaa0   : > { %10247 = vmatpush3.bf16.msra.mxu0 %v10246_v49 }
 0xb56   : > { %v7380_v24 = vpop.f32.mrb[20].mxu0  ;;  %v6200_v54 = vpop.f32.mrb[24].mxu1 }
 0xb57   : > { %v7381_v56 = vpop.f32.mrb[21].mxu0  ;;  %v8900_v57 = vpop.f32.mrb[25].mxu1 }
 0xb58   : > { %v7382_v58 = vadd.f32 %v7381_v56, %v7380_v24 }
 0xb5a   : > { %v6131_v59 = vadd.f32 %v7382_v58, %v6063_v55 }
 0xb5c   : > { %v6201_v60 = vadd.f32 %v6200_v54, %v6131_v59 }
 0xb5e   : > { %v6204_v61 = vmax.f32 %v6201_v60, 0.0 }
 0xb60   : > { %8934 = vmatmul.mubr.f32.vlgmr.msra.gmra.mrb[22].mxu0 %v6204_v61 }
 0xc33   : > { %v6288_v63 = vpop.f32.mrb[22].mxu0 }
 0xc34   : > { %v6289_v53 = vadd.f32 %v6288_v63, %v6221_v62  ;;  %v8935_v0 = vpop.f32.mrb[23].mxu0 }
 0xc36   : > { %v6295_v1 = vsel %vm6294_vm1, %v6289_v53, -1e+30 }
 0xc37   : > { %v6297_v2 = vsel %vm6296_vm2, %v6295_v1, -inf }
 0xc38   : > { %6298 = vmax.xlane.f32.xlu0 %v6297_v2 }
 0xcc5   : > { %v6299_v3 = vpop.xlane.xlu0 %6298 }
 0xcc6   : > { %v6300_v4 = vsub.f32 %v6295_v1, %v6299_v3 }
 0xcc8   : > { %v6301_v5 = vmul.f32 1.442695, %v6300_v4 }
 0xcca   : > { %10646 = vpow2.f32 %v6301_v5 }
 0xcd4   : > { %v10647_v8 = vpop.eup %10646 }
 0xcd5   : > { %v6305_v9 = vmul.f32 %v10647_v8, %v6606_v7 }
 0xcd7   : > { %v6306_v6 = vsel %vm6296_vm2, %v6305_v9, 0.0 }
 0xcd8   : > { %6307 = vadd.xlane.f32.xlu0 %v6306_v6 }
 0xd65   : > { %v6308_v10 = vpop.xlane.xlu0 %6307 }
 0xd66   : > { %10648 = vrcp.f32 %v6308_v10 }
 0xd70   : > { %v10649_v11 = vpop.eup %10648 }
 0xd71   : > { %v6310_v12 = vmul.f32 %v10649_v11, %v6308_v10 }
 0xd73   : > { %v6311_v13 = vsub.f32 2.0, %v6310_v12 }
 0xd75   : > { %v6312_v14 = vmul.f32 %v10649_v11, %v6311_v13 }
 0xd77   : > { %v6313_v15 = vmul.f32 %v6312_v14, %v6305_v9 }
 0xd79   : > { %6314 = vst [vmem:[%s834_s5] sm:$0x1] %v6313_v15 }
 0xd7a   : > { %11167 = shalt.err (!%p11164_p1)
}
 0xd7b   : > { %s11168_s30 = scalar_lea.hbm %s12202_s24, 16  ;;  %s11172_s3 = scalar_lea.hbm %s12351_s8, 32 }
 0xd7c   : > { %p11169_p0 = scmp.ne.s32.totalorder %s12202_s24, %s11168_s30  ;;  %p11173_p9 = scmp.lt.u32.totalorder %s12202_s24, %s12351_s8 }
 0xd7d   : > { %p11174_p12 = scmp.lt.u32.totalorder %s11172_s3, %s11168_s30  ;;  %p11176_p2 = scmp.lt.u32.totalorder %s11168_s30, %s12202_s24 }
 0xd7e   : > { %p11170_p6 = pnand %p11169_p0, %p12352_p3 }
 0xd7f   : > { %p11175_p10 = por %p11174_p12, %p11173_p9 }
 0xd80   : > { %p11171_p5 = pneg %p11170_p6 }
 0xd81   : > { %p11177_p4 = por %p11176_p2, %p11175_p10 }
 0xd83   : > { %p11178_p7 = pnand %p11177_p4, %p11171_p5 }
 0xd85   : > { %11181 = shalt.err (!%p11178_p7)
}
 0xd86   : > { %10491 = dma.vmem_to_hbm [thread:$0]  (%p12352_p3), %s12204_s7, 16, %s12202_s24, %s6316_s23  }
 0xd87 PF: > { %s12353_s10 = sld [smem:[#allocation47_spill]]  ;;  %s12354_s2 = sld [smem:[#allocation44_spill]] }
 0xd88   : > { %s12355_s4 = sld [smem:[#allocation52_spill]] }
 0xd8d   : > { %p10588_p8 = scmp.ge.s32.totalorder %s12353_s10, 2  ;;  %s6340_s5 = sand.u32 1, %s12354_s2  }
 0xd8e   : > { %p12356_p11 = scmp.ne.s32.totalorder %s12355_s4, 0  ;;  %s6341_s9 = scalar_lea.sflag [#allocation5], %s6340_s5 }
 0xd90   : > { %p10549_p13 = pnand %p10588_p8, %p12356_p11 }
 0xd92   : > { %11239 = dma.done.wait (!%p10549_p13), %s6341_s9, 16  }
 0xd93   : > { %11241 = vsyncadd (!%p10549_p13), %s6341_s9, 4294967280  ;;  %s12357_s21 = sld [smem:[#allocation49_spill]]  ;;  %s12358_s0 = sld [smem:[#allocation45_spill]] }
 0xd94   : > { %s12359_s30 = sld [smem:[#allocation46_spill]]  ;;  %s12360_s20 = sld [smem:[#allocation50_spill]] }
 0xd99   : > { %p39_p1 = scmp.ge.s32.totalorder %s12357_s21, 4  }
 0xd9b   :  { %41 = sbr.rel (!%p39_p1) target bundleno = 26 (0x1a), region = 318 }
 0xda2   :  { %6345 = vsyncpa [#allocation4], 1 }
 0xda3   :  { %6347 = vsyncpa [#allocation4 + $0x1], 1 }
 0xda4   :  { %6348 = vsyncpa [#allocation7], 1 }
 0xda5   :  { %6349 = vsyncpa [#allocation10], 1 }
 0xda6   :  { %6350 = vsyncpa [#allocation13], 1 }
 0xda7   :  { %6351 = vsyncpa [#allocation16], 1 }
 0xda8   :  { %6352 = vsyncpa [#allocation19], 1 }
 0xda9   :  { %6353 = vsyncpa [#allocation22], 1 }
 0xdaa   :  { %6354 = vsyncpa [#allocation25], 1 }
 0xdab   :  { %6355 = vsyncpa [#allocation28], 1 }
 0xdac   :  { %6356 = vsyncpa [#allocation31], 1 }
 0xdad   :  { %6357 = vsyncpa [#allocation5], 1 }
 0xdae   :  { %6359 = vsyncpa [#allocation5 + $0x1], 1 }

</bundles_post_ra>
